<compile_context>
chip_gen: v7x
topology: tpu7x:2x2x1
jax: 0.10.0
libtpu: 0.0.40
codegen_flags: <defaults>
</compile_context>

<pallas_src>
import math
import functools

import jax
import jax.numpy as jnp
from jax.experimental import pallas as pl
from jax.experimental.pallas import tpu as pltpu

NEG_INF = -1e30  # additive key-padding bias


# ---------------------------------------------------------------------------
# math helpers (shared by the Pallas kernel and the pure-JAX reference)
# ---------------------------------------------------------------------------
def _layer_norm(v, w, b, eps=1e-5):
    mean = jnp.mean(v, axis=-1, keepdims=True)
    c = v - mean
    var = jnp.mean(c * c, axis=-1, keepdims=True)
    return c * jax.lax.rsqrt(var + eps) * w + b


def _attention(q2, k2, v2, out_w, out_b, key_bias, B, Tq, Tk, num_heads,
               mm_dtype, use_pl_recip):
    """Multi-head attention core, batch-fused.

    q2: (B*Tq, D)  k2, v2: (B*Tk, D)  out_w: (D, D) [mm_dtype]  out_b: (1, D) [f32]
    key_bias: (B, 1, Tk) additive mask (0 valid / -1e30 padded key), f32.
    The softmax scale is already folded into the Q projection weights by prepare_params.
    Returns (B*Tq, D) f32.  Head outputs are folded through out_w slices (no concat).
    """
    D = q2.shape[-1]
    hd = D // num_heads

    # cast matmul operands to bf16 once (not per head); softmax math stays f32
    q3 = q2.astype(mm_dtype).reshape(B, Tq, D)
    k3 = k2.astype(mm_dtype).reshape(B, Tk, D)
    v3 = v2.astype(mm_dtype).reshape(B, Tk, D)

    # hoist the key-bias broadcast out of the per-head loop (JAX does not CSE broadcast_in_dim)
    bias = jnp.broadcast_to(key_bias, (B, Tq, Tk))

    ctx = None
    for head in range(num_heads):          # num_heads is small & static -> unrolled
        sl = slice(head * hd, (head + 1) * hd)
        s = jnp.einsum('bqd,bkd->bqk', q3[:, :, sl], k3[:, :, sl],
                       preferred_element_type=jnp.float32)            # (B, Tq, Tk) f32
        s = s + bias
        s = s - jnp.max(s, axis=-1, keepdims=True)
        e = jnp.exp(s)
        denom = jnp.sum(e, axis=-1, keepdims=True)
        if use_pl_recip:
            p = e * pl.reciprocal(denom, approx=True)                 # EUP slot
        else:
            p = e / denom
        o_h = jnp.einsum('bqk,bkd->bqd', p.astype(mm_dtype), v3[:, :, sl],
                         preferred_element_type=jnp.float32)          # (B, Tq, hd) f32
        contrib = jnp.dot(o_h.reshape(B * Tq, hd).astype(mm_dtype), out_w[sl, :],
                          preferred_element_type=jnp.float32)         # (B*Tq, D) f32
        ctx = contrib if ctx is None else ctx + contrib
    return ctx + out_b


def _layer_math(h, mem, xb, yb, p, num_heads, B, Tx, Ty, mm_dtype, use_pl_recip):
    """One post-norm TransformerDecoderLayer (dropout=0) on flattened (B*T, D) f32 slabs."""
    D = h.shape[-1]
    lnw, lnb = p["ln_w"], p["ln_b"]

    # self-attention (fused QKV; scale pre-folded into the Q columns)
    qkv = jnp.dot(h.astype(mm_dtype), p["sa_in_w"],
                  preferred_element_type=jnp.float32) + p["sa_in_b"]
    sa = _attention(qkv[:, 0:D], qkv[:, D:2 * D], qkv[:, 2 * D:3 * D],
                    p["sa_out_w"], p["sa_out_b"], xb, B, Tx, Tx, num_heads,
                    mm_dtype, use_pl_recip)
    h1 = _layer_norm(h + sa, lnw[0:1, :], lnb[0:1, :])

    # cross-attention (Q from h1; fused KV from memory)
    q = jnp.dot(h1.astype(mm_dtype), p["ca_q_w"],
                preferred_element_type=jnp.float32) + p["ca_q_b"]
    kv = jnp.dot(mem.astype(mm_dtype), p["ca_kv_w"],
                 preferred_element_type=jnp.float32) + p["ca_kv_b"]
    ca = _attention(q, kv[:, 0:D], kv[:, D:2 * D],
                    p["ca_out_w"], p["ca_out_b"], yb, B, Tx, Ty, num_heads,
                    mm_dtype, use_pl_recip)
    h2 = _layer_norm(h1 + ca, lnw[1:2, :], lnb[1:2, :])

    # FFN (relu)
    f = jnp.maximum(jnp.dot(h2.astype(mm_dtype), p["ff1_w"],
                            preferred_element_type=jnp.float32) + p["ff1_b"], 0.0)
    f = jnp.dot(f.astype(mm_dtype), p["ff2_w"],
                preferred_element_type=jnp.float32) + p["ff2_b"]
    return _layer_norm(h2 + f, lnw[2:3, :], lnb[2:3, :])


def prepare_params(params, num_heads, mm_dtype):
    """Fold the softmax scale into Q projections and cast weight matrices to the MXU dtype.

    Biases and LayerNorm parameters stay f32 (elementwise math stays f32 in the kernel).
    """
    D = params["ca_q_w"].shape[-1]
    hd = D // num_heads
    scale = 1.0 / math.sqrt(hd)
    p = dict(params)
    p["sa_in_w"] = jnp.concatenate([p["sa_in_w"][..., :D] * scale, p["sa_in_w"][..., D:]], axis=-1)
    p["sa_in_b"] = jnp.concatenate([p["sa_in_b"][..., :D] * scale, p["sa_in_b"][..., D:]], axis=-1)
    p["ca_q_w"] = p["ca_q_w"] * scale
    p["ca_q_b"] = p["ca_q_b"] * scale
    for k in ("sa_in_w", "sa_out_w", "ca_q_w", "ca_kv_w", "ca_out_w", "ff1_w", "ff2_w"):
        p[k] = p[k].astype(mm_dtype)
    return p


# ---------------------------------------------------------------------------
# Pallas kernel: grid = (batch blocks, layers); h resident in VMEM scratch per batch block
# ---------------------------------------------------------------------------
def _decoder_kernel(num_heads, Bb, Tx, Ty, mm_dtype,
                    x_ref, mem_ref, xb_ref, yb_ref,
                    sa_in_w, sa_in_b, sa_out_w, sa_out_b,
                    ca_q_w, ca_q_b, ca_kv_w, ca_kv_b, ca_out_w, ca_out_b,
                    ff1_w, ff1_b, ff2_w, ff2_b, ln_w, ln_b,
                    out_ref, h_scr):
    l = pl.program_id(1)

    @pl.when(l == 0)
    def _init():
        h_scr[...] = x_ref[...]

    p = dict(
        sa_in_w=sa_in_w[0], sa_in_b=sa_in_b[0], sa_out_w=sa_out_w[0], sa_out_b=sa_out_b[0],
        ca_q_w=ca_q_w[0], ca_q_b=ca_q_b[0], ca_kv_w=ca_kv_w[0], ca_kv_b=ca_kv_b[0],
        ca_out_w=ca_out_w[0], ca_out_b=ca_out_b[0],
        ff1_w=ff1_w[0], ff1_b=ff1_b[0], ff2_w=ff2_w[0], ff2_b=ff2_b[0],
        ln_w=ln_w[0], ln_b=ln_b[0],
    )
    h_new = _layer_math(h_scr[...], mem_ref[...], xb_ref[...], yb_ref[...],
                        p, num_heads, Bb, Tx, Ty, mm_dtype, use_pl_recip=True)
    h_scr[...] = h_new

    @pl.when(l == pl.num_programs(1) - 1)
    def _store():
        D = h_scr.shape[-1]
        # only the rows consumed downstream (sequence position 0 of each batch element);
        # per-b indexed copies avoid a full (Bb*Tx, D) reshape/relayout of the slab.
        for bb in range(Bb):   # Bb is small & static
            out_ref[pl.ds(bb, 1), :, :] = h_scr[pl.ds(bb * Tx, 1), :].reshape(1, 1, D)


def transformer_composition_pallas(params, x_embed, x_len, y_embed, y_len, num_heads,
                                   *, batch_block=None, mm_dtype=jnp.bfloat16):
    B, Tx, D = x_embed.shape
    Ty = y_embed.shape[1]
    L = params["sa_in_w"].shape[0]
    H = params["ff1_w"].shape[-1]

    # batch_block == B -> no batch splitting (best for 1-TC v5e/v6e: weights streamed once).
    # batch_block == B // 2 -> 2 parallel batch blocks for v7x's two TensorCores.
    if batch_block is None:
        batch_block = B
    assert B % batch_block == 0
    Bg = B // batch_block

    prep = prepare_params(params, num_heads, mm_dtype)

    x_mask = generate_padding_mask(x_len, Tx)
    y_mask = generate_padding_mask(y_len, Ty)
    xb = jnp.where(x_mask, NEG_INF, 0.0).astype(jnp.float32)[:, None, :]   # (B, 1, Tx)
    yb = jnp.where(y_mask, NEG_INF, 0.0).astype(jnp.float32)[:, None, :]   # (B, 1, Ty)

    x2 = x_embed.astype(jnp.float32).reshape(B * Tx, D)
    m2 = y_embed.astype(jnp.float32).reshape(B * Ty, D)

    kernel = functools.partial(_decoder_kernel, num_heads, batch_block, Tx, Ty, mm_dtype)

    def aspec(block_shape):         # batch-blocked activation / mask: block index b on leading dim
        n = len(block_shape)
        return pl.BlockSpec(block_shape, lambda b, l, _n=n: (b,) + (0,) * (_n - 1))

    def wspec(shape):               # per-layer stacked weight (L, *shape): layer-indexed block
        n = len(shape)
        return pl.BlockSpec((1,) + shape, lambda b, l, _n=n: (l,) + (0,) * _n)

    in_specs = [
        aspec((batch_block * Tx, D)),     # x (flattened, f32) -> h init
        aspec((batch_block * Ty, D)),     # memory (flattened, f32)
        aspec((batch_block, 1, Tx)),      # x key-padding bias
        aspec((batch_block, 1, Ty)),      # y key-padding bias
        wspec((D, 3 * D)), wspec((1, 3 * D)), wspec((D, D)), wspec((1, D)),   # self-attn
        wspec((D, D)), wspec((1, D)), wspec((D, 2 * D)), wspec((1, 2 * D)),   # cross Q / KV
        wspec((D, D)), wspec((1, D)),                                         # cross out
        wspec((D, H)), wspec((1, H)), wspec((H, D)), wspec((1, D)),           # FFN
        wspec((3, D)), wspec((3, D)),                                         # layernorms
    ]
    out_spec = pl.BlockSpec((batch_block, 1, D), lambda b, l: (b, 0, 0))

    # explicit VMEM budget: 2x (double-buffered) per-layer weight tiles + activations + scratch,
    # with headroom; clamped to 64 MiB so the limit is valid on v7x as well as v5e/v6e.
    per_layer_w_bytes = sum(int(v.nbytes) // L for v in prep.values())
    act_block_bytes = (int(x2.nbytes) + int(m2.nbytes) + int(xb.nbytes) + int(yb.nbytes)
                       + B * D * 4) // Bg
    scratch_bytes = batch_block * Tx * D * 4
    budget = 2 * (per_layer_w_bytes + act_block_bytes) + scratch_bytes
    vmem_limit = int(min(64 << 20, max(16 << 20, 2 * budget)))

    out = pl.pallas_call(
        kernel,
        out_shape=jax.ShapeDtypeStruct((B, 1, D), jnp.float32),
        grid=(Bg, L),
        in_specs=in_specs,
        out_specs=out_spec,
        scratch_shapes=[pltpu.VMEM((batch_block * Tx, D), jnp.float32)],
        compiler_params=pltpu.CompilerParams(
            # batch axis is independent (megacore-shardable); layer axis carries state in scratch
            dimension_semantics=("parallel", "arbitrary"),
            vmem_limit_bytes=vmem_limit),
    )(x2, m2, xb, yb,
      prep["sa_in_w"], prep["sa_in_b"], prep["sa_out_w"], prep["sa_out_b"],
      prep["ca_q_w"], prep["ca_q_b"], prep["ca_kv_w"], prep["ca_kv_b"],
      prep["ca_out_w"], prep["ca_out_b"],
      prep["ff1_w"], prep["ff1_b"], prep["ff2_w"], prep["ff2_b"],
      prep["ln_w"], prep["ln_b"])
    return out[:, 0, :]


# ---------------------------------------------------------------------------
# glue / reference / synthetic params
# ---------------------------------------------------------------------------
def generate_padding_mask(seq_len, max_len):
    # True == padded position (ignored as a key), matching the PyTorch helper.
    return jnp.arange(max_len)[None, :] >= seq_len[:, None]


def transformer_composition_reference(params, x_embed, x_len, y_embed, y_len, num_heads,
                                      mm_dtype=jnp.bfloat16):
    """Pure-JAX reference (same math incl. bf16 matmul operands, exact softmax divide)."""
    B, Tx, D = x_embed.shape
    Ty = y_embed.shape[1]
    L = params["sa_in_w"].shape[0]
    prep = prepare_params(params, num_heads, mm_dtype)
    xb = jnp.where(generate_padding_mask(x_len, Tx), NEG_INF, 0.0).astype(jnp.float32)[:, None, :]
    yb = jnp.where(generate_padding_mask(y_len, Ty), NEG_INF, 0.0).astype(jnp.float32)[:, None, :]
    h = x_embed.astype(jnp.float32).reshape(B * Tx, D)
    mem = y_embed.astype(jnp.float32).reshape(B * Ty, D)
    for l in range(L):
        p = {k: v[l] for k, v in prep.items()}
        h = _layer_math(h, mem, xb, yb, p, num_heads, B, Tx, Ty, mm_dtype, use_pl_recip=False)
    return h.reshape(B, Tx, D)[:, 0, :]


def init_stacked_params(key, d_model, hidden, num_layers):
    """Deterministic synthetic parameters, stacked along a leading layer axis."""
    L, D, H = num_layers, d_model, hidden
    ks = jax.random.split(key, 14)
    mk = lambda k, shape: 0.05 * jax.random.normal(k, shape, jnp.float32)
    return dict(
        sa_in_w=mk(ks[0], (L, D, 3 * D)), sa_in_b=mk(ks[1], (L, 1, 3 * D)),
        sa_out_w=mk(ks[2], (L, D, D)), sa_out_b=mk(ks[3], (L, 1, D)),
        ca_q_w=mk(ks[4], (L, D, D)), ca_q_b=mk(ks[5], (L, 1, D)),
        ca_kv_w=mk(ks[6], (L, D, 2 * D)), ca_kv_b=mk(ks[7], (L, 1, 2 * D)),
        ca_out_w=mk(ks[8], (L, D, D)), ca_out_b=mk(ks[9], (L, 1, D)),
        ff1_w=mk(ks[10], (L, D, H)), ff1_b=mk(ks[11], (L, 1, H)),
        ff2_w=mk(ks[12], (L, H, D)), ff2_b=mk(ks[13], (L, 1, D)),
        ln_w=jnp.ones((L, 3, D), jnp.float32),
        ln_b=jnp.zeros((L, 3, D), jnp.float32),
    )


if __name__ == "__main__":
    B, Tx, Ty = 2, 8, 16        # batch, target seq, memory seq (Ty multiple of 8 for clean tiling)
    D, H = 32, 64               # input_size (d_model), hidden_size (dim_feedforward)
    NUM_HEADS, NUM_LAYERS = 4, 2

    key = jax.random.PRNGKey(0)
    kx, ky, kp = jax.random.split(key, 3)
    x_embed = jax.random.normal(kx, (B, Tx, D), jnp.float32)
    y_embed = jax.random.normal(ky, (B, Ty, D), jnp.float32)
    x_len = jnp.array([Tx, 5], jnp.int32)
    y_len = jnp.array([Ty, 9], jnp.int32)

    params = init_stacked_params(kp, D, H, NUM_LAYERS)

    # batch_block=1 -> grid (2, L): exercises the parallel batch axis (v7x megacore path);
    # on v5e/v6e production runs pass batch_block=B (default) to stream weights only once.
    out = transformer_composition_pallas(params, x_embed, x_len, y_embed, y_len, NUM_HEADS,
                                         batch_block=1)
    out = jax.block_until_ready(out)
    assert out.shape == (B, D), out.shape

    ref = transformer_composition_reference(params, x_embed, x_len, y_embed, y_len, NUM_HEADS)
    ref = jax.block_until_ready(ref)
    max_err = float(jnp.max(jnp.abs(out - ref)))
    # bf16 MXU operands + approx reciprocal vs exact divide -> generous (still tight) tolerance
    assert jnp.allclose(out, ref, rtol=2e-2, atol=2e-2), max_err

    print("KERNEL_OK")
</pallas_src>

<mosaic_0001>
module attributes {stable_mosaic.version = 11 : i64} {
  func.func @_decoder_kernel(%arg0: i32, %arg1: i32, %arg2: memref<8x32xf32, #tpu.memory_space<vmem>>, %arg3: memref<16x32xf32, #tpu.memory_space<vmem>>, %arg4: memref<1x1x8xf32, #tpu.memory_space<vmem>>, %arg5: memref<1x1x16xf32, #tpu.memory_space<vmem>>, %arg6: memref<1x32x96xbf16, #tpu.memory_space<vmem>>, %arg7: memref<1x1x96xf32, #tpu.memory_space<vmem>>, %arg8: memref<1x32x32xbf16, #tpu.memory_space<vmem>>, %arg9: memref<1x1x32xf32, #tpu.memory_space<vmem>>, %arg10: memref<1x32x32xbf16, #tpu.memory_space<vmem>>, %arg11: memref<1x1x32xf32, #tpu.memory_space<vmem>>, %arg12: memref<1x32x64xbf16, #tpu.memory_space<vmem>>, %arg13: memref<1x1x64xf32, #tpu.memory_space<vmem>>, %arg14: memref<1x32x32xbf16, #tpu.memory_space<vmem>>, %arg15: memref<1x1x32xf32, #tpu.memory_space<vmem>>, %arg16: memref<1x32x64xbf16, #tpu.memory_space<vmem>>, %arg17: memref<1x1x64xf32, #tpu.memory_space<vmem>>, %arg18: memref<1x64x32xbf16, #tpu.memory_space<vmem>>, %arg19: memref<1x1x32xf32, #tpu.memory_space<vmem>>, %arg20: memref<1x3x32xf32, #tpu.memory_space<vmem>>, %arg21: memref<1x3x32xf32, #tpu.memory_space<vmem>>, %arg22: memref<1x1x32xf32, #tpu.memory_space<vmem>>, %arg23: memref<8x32xf32, #tpu.memory_space<vmem>>) attributes {dimension_semantics = [#tpu.dimension_semantics<parallel>, #tpu.dimension_semantics<arbitrary>], iteration_bounds = array<i64: 2, 2>, scalar_prefetch = 0 : i64, scratch_operands = 1 : i64, tpu.core_type = #tpu.core_type<tc>, window_params = [{transform_indices = @transform_0, window_bounds = array<i64: 8, 32>}, {transform_indices = @transform_1, window_bounds = array<i64: 16, 32>}, {transform_indices = @transform_2, window_bounds = array<i64: 1, 1, 8>}, {transform_indices = @transform_3, window_bounds = array<i64: 1, 1, 16>}, {transform_indices = @transform_4, window_bounds = array<i64: 1, 32, 96>}, {transform_indices = @transform_5, window_bounds = array<i64: 1, 1, 96>}, {transform_indices = @transform_6, window_bounds = array<i64: 1, 32, 32>}, {transform_indices = @transform_7, window_bounds = array<i64: 1, 1, 32>}, {transform_indices = @transform_8, window_bounds = array<i64: 1, 32, 32>}, {transform_indices = @transform_9, window_bounds = array<i64: 1, 1, 32>}, {transform_indices = @transform_10, window_bounds = array<i64: 1, 32, 64>}, {transform_indices = @transform_11, window_bounds = array<i64: 1, 1, 64>}, {transform_indices = @transform_12, window_bounds = array<i64: 1, 32, 32>}, {transform_indices = @transform_13, window_bounds = array<i64: 1, 1, 32>}, {transform_indices = @transform_14, window_bounds = array<i64: 1, 32, 64>}, {transform_indices = @transform_15, window_bounds = array<i64: 1, 1, 64>}, {transform_indices = @transform_16, window_bounds = array<i64: 1, 64, 32>}, {transform_indices = @transform_17, window_bounds = array<i64: 1, 1, 32>}, {transform_indices = @transform_18, window_bounds = array<i64: 1, 3, 32>}, {transform_indices = @transform_19, window_bounds = array<i64: 1, 3, 32>}, {transform_indices = @transform_20, window_bounds = array<i64: 1, 1, 32>}]} {
    %c0_i32 = arith.constant 0 : i32
    %0 = arith.cmpi eq, %arg1, %c0_i32 : i32
    %1 = arith.extui %0 : i1 to i32
    %c0_i32_0 = arith.constant 0 : i32
    %2 = arith.cmpi ne, %1, %c0_i32_0 : i32
    scf.if %2 {
      %c0_121 = arith.constant 0 : index
      %c0_122 = arith.constant 0 : index
      %333 = vector.load %arg2[%c0_121, %c0_122] : memref<8x32xf32, #tpu.memory_space<vmem>>, vector<8x32xf32>
      %c0_123 = arith.constant 0 : index
      %c0_124 = arith.constant 0 : index
      %334 = vector.load %arg23[%c0_123, %c0_124] : memref<8x32xf32, #tpu.memory_space<vmem>>, vector<8x32xf32>
      tpu.vector_store %arg23[%c0_123, %c0_124], %333 {strides = array<i32>} : memref<8x32xf32, #tpu.memory_space<vmem>>, vector<8x32xf32>,
    } else {
    }
    %c0 = arith.constant 0 : index
    %c0_1 = arith.constant 0 : index
    %c0_2 = arith.constant 0 : index
    %3 = vector.load %arg6[%c0, %c0_1, %c0_2] : memref<1x32x96xbf16, #tpu.memory_space<vmem>>, vector<1x32x96xbf16>
    %4 = vector.shape_cast %3 : vector<1x32x96xbf16> to vector<32x96xbf16>
    %c0_3 = arith.constant 0 : index
    %c0_4 = arith.constant 0 : index
    %c0_5 = arith.constant 0 : index
    %5 = vector.load %arg7[%c0_3, %c0_4, %c0_5] : memref<1x1x96xf32, #tpu.memory_space<vmem>>, vector<1x1x96xf32>
    %6 = vector.shape_cast %5 : vector<1x1x96xf32> to vector<1x96xf32>
    %c0_6 = arith.constant 0 : index
    %c0_7 = arith.constant 0 : index
    %c0_8 = arith.constant 0 : index
    %7 = vector.load %arg8[%c0_6, %c0_7, %c0_8] : memref<1x32x32xbf16, #tpu.memory_space<vmem>>, vector<1x32x32xbf16>
    %8 = vector.shape_cast %7 : vector<1x32x32xbf16> to vector<32x32xbf16>
    %c0_9 = arith.constant 0 : index
    %c0_10 = arith.constant 0 : index
    %c0_11 = arith.constant 0 : index
    %9 = vector.load %arg9[%c0_9, %c0_10, %c0_11] : memref<1x1x32xf32, #tpu.memory_space<vmem>>, vector<1x1x32xf32>
    %10 = vector.shape_cast %9 : vector<1x1x32xf32> to vector<1x32xf32>
    %c0_12 = arith.constant 0 : index
    %c0_13 = arith.constant 0 : index
    %c0_14 = arith.constant 0 : index
    %11 = vector.load %arg10[%c0_12, %c0_13, %c0_14] : memref<1x32x32xbf16, #tpu.memory_space<vmem>>, vector<1x32x32xbf16>
    %12 = vector.shape_cast %11 : vector<1x32x32xbf16> to vector<32x32xbf16>
    %c0_15 = arith.constant 0 : index
    %c0_16 = arith.constant 0 : index
    %c0_17 = arith.constant 0 : index
    %13 = vector.load %arg11[%c0_15, %c0_16, %c0_17] : memref<1x1x32xf32, #tpu.memory_space<vmem>>, vector<1x1x32xf32>
    %14 = vector.shape_cast %13 : vector<1x1x32xf32> to vector<1x32xf32>
    %c0_18 = arith.constant 0 : index
    %c0_19 = arith.constant 0 : index
    %c0_20 = arith.constant 0 : index
    %15 = vector.load %arg12[%c0_18, %c0_19, %c0_20] : memref<1x32x64xbf16, #tpu.memory_space<vmem>>, vector<1x32x64xbf16>
    %16 = vector.shape_cast %15 : vector<1x32x64xbf16> to vector<32x64xbf16>
    %c0_21 = arith.constant 0 : index
    %c0_22 = arith.constant 0 : index
    %c0_23 = arith.constant 0 : index
    %17 = vector.load %arg13[%c0_21, %c0_22, %c0_23] : memref<1x1x64xf32, #tpu.memory_space<vmem>>, vector<1x1x64xf32>
    %18 = vector.shape_cast %17 : vector<1x1x64xf32> to vector<1x64xf32>
    %c0_24 = arith.constant 0 : index
    %c0_25 = arith.constant 0 : index
    %c0_26 = arith.constant 0 : index
    %19 = vector.load %arg14[%c0_24, %c0_25, %c0_26] : memref<1x32x32xbf16, #tpu.memory_space<vmem>>, vector<1x32x32xbf16>
    %20 = vector.shape_cast %19 : vector<1x32x32xbf16> to vector<32x32xbf16>
    %c0_27 = arith.constant 0 : index
    %c0_28 = arith.constant 0 : index
    %c0_29 = arith.constant 0 : index
    %21 = vector.load %arg15[%c0_27, %c0_28, %c0_29] : memref<1x1x32xf32, #tpu.memory_space<vmem>>, vector<1x1x32xf32>
    %22 = vector.shape_cast %21 : vector<1x1x32xf32> to vector<1x32xf32>
    %c0_30 = arith.constant 0 : index
    %c0_31 = arith.constant 0 : index
    %c0_32 = arith.constant 0 : index
    %23 = vector.load %arg16[%c0_30, %c0_31, %c0_32] : memref<1x32x64xbf16, #tpu.memory_space<vmem>>, vector<1x32x64xbf16>
    %24 = vector.shape_cast %23 : vector<1x32x64xbf16> to vector<32x64xbf16>
    %c0_33 = arith.constant 0 : index
    %c0_34 = arith.constant 0 : index
    %c0_35 = arith.constant 0 : index
    %25 = vector.load %arg17[%c0_33, %c0_34, %c0_35] : memref<1x1x64xf32, #tpu.memory_space<vmem>>, vector<1x1x64xf32>
    %26 = vector.shape_cast %25 : vector<1x1x64xf32> to vector<1x64xf32>
    %c0_36 = arith.constant 0 : index
    %c0_37 = arith.constant 0 : index
    %c0_38 = arith.constant 0 : index
    %27 = vector.load %arg18[%c0_36, %c0_37, %c0_38] : memref<1x64x32xbf16, #tpu.memory_space<vmem>>, vector<1x64x32xbf16>
    %28 = vector.shape_cast %27 : vector<1x64x32xbf16> to vector<64x32xbf16>
    %c0_39 = arith.constant 0 : index
    %c0_40 = arith.constant 0 : index
    %c0_41 = arith.constant 0 : index
    %29 = vector.load %arg19[%c0_39, %c0_40, %c0_41] : memref<1x1x32xf32, #tpu.memory_space<vmem>>, vector<1x1x32xf32>
    %30 = vector.shape_cast %29 : vector<1x1x32xf32> to vector<1x32xf32>
    %c0_42 = arith.constant 0 : index
    %c0_43 = arith.constant 0 : index
    %c0_44 = arith.constant 0 : index
    %31 = vector.load %arg20[%c0_42, %c0_43, %c0_44] : memref<1x3x32xf32, #tpu.memory_space<vmem>>, vector<1x3x32xf32>
    %32 = vector.shape_cast %31 : vector<1x3x32xf32> to vector<3x32xf32>
    %c0_45 = arith.constant 0 : index
    %c0_46 = arith.constant 0 : index
    %c0_47 = arith.constant 0 : index
    %33 = vector.load %arg21[%c0_45, %c0_46, %c0_47] : memref<1x3x32xf32, #tpu.memory_space<vmem>>, vector<1x3x32xf32>
    %34 = vector.shape_cast %33 : vector<1x3x32xf32> to vector<3x32xf32>
    %c0_48 = arith.constant 0 : index
    %c0_49 = arith.constant 0 : index
    %35 = vector.load %arg23[%c0_48, %c0_49] : memref<8x32xf32, #tpu.memory_space<vmem>>, vector<8x32xf32>
    %c0_50 = arith.constant 0 : index
    %c0_51 = arith.constant 0 : index
    %36 = vector.load %arg3[%c0_50, %c0_51] : memref<16x32xf32, #tpu.memory_space<vmem>>, vector<16x32xf32>
    %c0_52 = arith.constant 0 : index
    %c0_53 = arith.constant 0 : index
    %c0_54 = arith.constant 0 : index
    %37 = vector.load %arg4[%c0_52, %c0_53, %c0_54] : memref<1x1x8xf32, #tpu.memory_space<vmem>>, vector<1x1x8xf32>
    %c0_55 = arith.constant 0 : index
    %c0_56 = arith.constant 0 : index
    %c0_57 = arith.constant 0 : index
    %38 = vector.load %arg5[%c0_55, %c0_56, %c0_57] : memref<1x1x16xf32, #tpu.memory_space<vmem>>, vector<1x1x16xf32>
    %39 = arith.truncf %35 : vector<8x32xf32> to vector<8x32xbf16>
    %cst = arith.constant dense<0.000000e+00> : vector<8x96xf32>
    %40 = tpu.matmul %39, %4, %cst {dimension_numbers = #tpu.dot_dimension_numbers<[1], [0], [0], [1], [0, 0, 1, 1], [], []>} : vector<8x32xbf16>, vector<32x96xbf16>, vector<8x96xf32> -> vector<8x96xf32>
    %41 = vector.broadcast %6 : vector<1x96xf32> to vector<8x96xf32>
    %42 = arith.addf %40, %41 : vector<8x96xf32>
    %43 = vector.extract_strided_slice %42 {offsets = [0, 0], sizes = [8, 32], strides = [1, 1]} : vector<8x96xf32> to vector<8x32xf32>
    %44 = vector.extract_strided_slice %42 {offsets = [0, 32], sizes = [8, 32], strides = [1, 1]} : vector<8x96xf32> to vector<8x32xf32>
    %45 = vector.extract_strided_slice %42 {offsets = [0, 64], sizes = [8, 32], strides = [1, 1]} : vector<8x96xf32> to vector<8x32xf32>
    %46 = arith.truncf %43 : vector<8x32xf32> to vector<8x32xbf16>
    %47 = vector.shape_cast %46 : vector<8x32xbf16> to vector<1x8x32xbf16>
    %48 = arith.truncf %44 : vector<8x32xf32> to vector<8x32xbf16>
    %49 = vector.shape_cast %48 : vector<8x32xbf16> to vector<1x8x32xbf16>
    %50 = arith.truncf %45 : vector<8x32xf32> to vector<8x32xbf16>
    %51 = vector.shape_cast %50 : vector<8x32xbf16> to vector<1x8x32xbf16>
    %52 = vector.shape_cast %37 : vector<1x1x8xf32> to vector<1x1x8xf32>
    %53 = vector.broadcast %52 : vector<1x1x8xf32> to vector<1x8x8xf32>
    %54 = vector.extract_strided_slice %47 {offsets = [0, 0, 0], sizes = [1, 8, 8], strides = [1, 1, 1]} : vector<1x8x32xbf16> to vector<1x8x8xbf16>
    %55 = vector.extract_strided_slice %49 {offsets = [0, 0, 0], sizes = [1, 8, 8], strides = [1, 1, 1]} : vector<1x8x32xbf16> to vector<1x8x8xbf16>
    "tpu.trace_start"() <{level = 10 : i32, message = "bqd,bkd->bqk"}> : () -> ()
    %cst_58 = arith.constant dense<0.000000e+00> : vector<1x8x8xf32>
    %56 = tpu.matmul %54, %55, %cst_58 {dimension_numbers = #tpu.dot_dimension_numbers<[2], [2], [1], [1], [0, 0, 0, 1, 1, 1], [0], [0]>} : vector<1x8x8xbf16>, vector<1x8x8xbf16>, vector<1x8x8xf32> -> vector<1x8x8xf32>
    "tpu.trace_stop"() : () -> ()
    %57 = arith.addf %56, %53 : vector<1x8x8xf32>
    %cst_59 = arith.constant dense<0xFF800000> : vector<1x8xf32>
    %58 = vector.multi_reduction <maximumf>, %57, %cst_59 [2] : vector<1x8x8xf32> to vector<1x8xf32>
    %59 = vector.shape_cast %58 : vector<1x8xf32> to vector<1x8x1xf32>
    %60 = vector.broadcast %59 : vector<1x8x1xf32> to vector<1x8x8xf32>
    %61 = arith.subf %57, %60 : vector<1x8x8xf32>
    %62 = math.exp %61 : vector<1x8x8xf32>
    %cst_60 = arith.constant dense<0.000000e+00> : vector<1x8xf32>
    %63 = vector.multi_reduction <add>, %62, %cst_60 [2] : vector<1x8x8xf32> to vector<1x8xf32>
    %64 = vector.shape_cast %63 : vector<1x8xf32> to vector<1x8x1xf32>
    %65 = tpu.reciprocal %64 {approx = true} : vector<1x8x1xf32> -> vector<1x8x1xf32>
    %66 = vector.broadcast %65 : vector<1x8x1xf32> to vector<1x8x8xf32>
    %67 = arith.mulf %62, %66 : vector<1x8x8xf32>
    %68 = arith.truncf %67 : vector<1x8x8xf32> to vector<1x8x8xbf16>
    %69 = vector.extract_strided_slice %51 {offsets = [0, 0, 0], sizes = [1, 8, 8], strides = [1, 1, 1]} : vector<1x8x32xbf16> to vector<1x8x8xbf16>
    "tpu.trace_start"() <{level = 10 : i32, message = "bqk,bkd->bqd"}> : () -> ()
    %cst_61 = arith.constant dense<0.000000e+00> : vector<1x8x8xf32>
    %70 = tpu.matmul %68, %69, %cst_61 {dimension_numbers = #tpu.dot_dimension_numbers<[2], [1], [1], [2], [0, 0, 0, 1, 1, 2], [0], [0]>} : vector<1x8x8xbf16>, vector<1x8x8xbf16>, vector<1x8x8xf32> -> vector<1x8x8xf32>
    "tpu.trace_stop"() : () -> ()
    %71 = vector.shape_cast %70 : vector<1x8x8xf32> to vector<8x8xf32>
    %72 = arith.truncf %71 : vector<8x8xf32> to vector<8x8xbf16>
    %73 = vector.extract_strided_slice %8 {offsets = [0, 0], sizes = [8, 32], strides = [1, 1]} : vector<32x32xbf16> to vector<8x32xbf16>
    %cst_62 = arith.constant dense<0.000000e+00> : vector<8x32xf32>
    %74 = tpu.matmul %72, %73, %cst_62 {dimension_numbers = #tpu.dot_dimension_numbers<[1], [0], [0], [1], [0, 0, 1, 1], [], []>} : vector<8x8xbf16>, vector<8x32xbf16>, vector<8x32xf32> -> vector<8x32xf32>
    %75 = vector.extract_strided_slice %47 {offsets = [0, 0, 8], sizes = [1, 8, 8], strides = [1, 1, 1]} : vector<1x8x32xbf16> to vector<1x8x8xbf16>
    %76 = vector.extract_strided_slice %49 {offsets = [0, 0, 8], sizes = [1, 8, 8], strides = [1, 1, 1]} : vector<1x8x32xbf16> to vector<1x8x8xbf16>
    "tpu.trace_start"() <{level = 10 : i32, message = "bqd,bkd->bqk"}> : () -> ()
    %cst_63 = arith.constant dense<0.000000e+00> : vector<1x8x8xf32>
    %77 = tpu.matmul %75, %76, %cst_63 {dimension_numbers = #tpu.dot_dimension_numbers<[2], [2], [1], [1], [0, 0, 0, 1, 1, 1], [0], [0]>} : vector<1x8x8xbf16>, vector<1x8x8xbf16>, vector<1x8x8xf32> -> vector<1x8x8xf32>
    "tpu.trace_stop"() : () -> ()
    %78 = arith.addf %77, %53 : vector<1x8x8xf32>
    %cst_64 = arith.constant dense<0xFF800000> : vector<1x8xf32>
    %79 = vector.multi_reduction <maximumf>, %78, %cst_64 [2] : vector<1x8x8xf32> to vector<1x8xf32>
    %80 = vector.shape_cast %79 : vector<1x8xf32> to vector<1x8x1xf32>
    %81 = vector.broadcast %80 : vector<1x8x1xf32> to vector<1x8x8xf32>
    %82 = arith.subf %78, %81 : vector<1x8x8xf32>
    %83 = math.exp %82 : vector<1x8x8xf32>
    %cst_65 = arith.constant dense<0.000000e+00> : vector<1x8xf32>
    %84 = vector.multi_reduction <add>, %83, %cst_65 [2] : vector<1x8x8xf32> to vector<1x8xf32>
    %85 = vector.shape_cast %84 : vector<1x8xf32> to vector<1x8x1xf32>
    %86 = tpu.reciprocal %85 {approx = true} : vector<1x8x1xf32> -> vector<1x8x1xf32>
    %87 = vector.broadcast %86 : vector<1x8x1xf32> to vector<1x8x8xf32>
    %88 = arith.mulf %83, %87 : vector<1x8x8xf32>
    %89 = arith.truncf %88 : vector<1x8x8xf32> to vector<1x8x8xbf16>
    %90 = vector.extract_strided_slice %51 {offsets = [0, 0, 8], sizes = [1, 8, 8], strides = [1, 1, 1]} : vector<1x8x32xbf16> to vector<1x8x8xbf16>
    "tpu.trace_start"() <{level = 10 : i32, message = "bqk,bkd->bqd"}> : () -> ()
    %cst_66 = arith.constant dense<0.000000e+00> : vector<1x8x8xf32>
    %91 = tpu.matmul %89, %90, %cst_66 {dimension_numbers = #tpu.dot_dimension_numbers<[2], [1], [1], [2], [0, 0, 0, 1, 1, 2], [0], [0]>} : vector<1x8x8xbf16>, vector<1x8x8xbf16>, vector<1x8x8xf32> -> vector<1x8x8xf32>
    "tpu.trace_stop"() : () -> ()
    %92 = vector.shape_cast %91 : vector<1x8x8xf32> to vector<8x8xf32>
    %93 = arith.truncf %92 : vector<8x8xf32> to vector<8x8xbf16>
    %94 = vector.extract_strided_slice %8 {offsets = [8, 0], sizes = [8, 32], strides = [1, 1]} : vector<32x32xbf16> to vector<8x32xbf16>
    %cst_67 = arith.constant dense<0.000000e+00> : vector<8x32xf32>
    %95 = tpu.matmul %93, %94, %cst_67 {dimension_numbers = #tpu.dot_dimension_numbers<[1], [0], [0], [1], [0, 0, 1, 1], [], []>} : vector<8x8xbf16>, vector<8x32xbf16>, vector<8x32xf32> -> vector<8x32xf32>
    %96 = arith.addf %74, %95 : vector<8x32xf32>
    %97 = vector.extract_strided_slice %47 {offsets = [0, 0, 16], sizes = [1, 8, 8], strides = [1, 1, 1]} : vector<1x8x32xbf16> to vector<1x8x8xbf16>
    %98 = vector.extract_strided_slice %49 {offsets = [0, 0, 16], sizes = [1, 8, 8], strides = [1, 1, 1]} : vector<1x8x32xbf16> to vector<1x8x8xbf16>
    "tpu.trace_start"() <{level = 10 : i32, message = "bqd,bkd->bqk"}> : () -> ()
    %cst_68 = arith.constant dense<0.000000e+00> : vector<1x8x8xf32>
    %99 = tpu.matmul %97, %98, %cst_68 {dimension_numbers = #tpu.dot_dimension_numbers<[2], [2], [1], [1], [0, 0, 0, 1, 1, 1], [0], [0]>} : vector<1x8x8xbf16>, vector<1x8x8xbf16>, vector<1x8x8xf32> -> vector<1x8x8xf32>
    "tpu.trace_stop"() : () -> ()
    %100 = arith.addf %99, %53 : vector<1x8x8xf32>
    %cst_69 = arith.constant dense<0xFF800000> : vector<1x8xf32>
    %101 = vector.multi_reduction <maximumf>, %100, %cst_69 [2] : vector<1x8x8xf32> to vector<1x8xf32>
    %102 = vector.shape_cast %101 : vector<1x8xf32> to vector<1x8x1xf32>
    %103 = vector.broadcast %102 : vector<1x8x1xf32> to vector<1x8x8xf32>
    %104 = arith.subf %100, %103 : vector<1x8x8xf32>
    %105 = math.exp %104 : vector<1x8x8xf32>
    %cst_70 = arith.constant dense<0.000000e+00> : vector<1x8xf32>
    %106 = vector.multi_reduction <add>, %105, %cst_70 [2] : vector<1x8x8xf32> to vector<1x8xf32>
    %107 = vector.shape_cast %106 : vector<1x8xf32> to vector<1x8x1xf32>
    %108 = tpu.reciprocal %107 {approx = true} : vector<1x8x1xf32> -> vector<1x8x1xf32>
    %109 = vector.broadcast %108 : vector<1x8x1xf32> to vector<1x8x8xf32>
    %110 = arith.mulf %105, %109 : vector<1x8x8xf32>
    %111 = arith.truncf %110 : vector<1x8x8xf32> to vector<1x8x8xbf16>
    %112 = vector.extract_strided_slice %51 {offsets = [0, 0, 16], sizes = [1, 8, 8], strides = [1, 1, 1]} : vector<1x8x32xbf16> to vector<1x8x8xbf16>
    "tpu.trace_start"() <{level = 10 : i32, message = "bqk,bkd->bqd"}> : () -> ()
    %cst_71 = arith.constant dense<0.000000e+00> : vector<1x8x8xf32>
    %113 = tpu.matmul %111, %112, %cst_71 {dimension_numbers = #tpu.dot_dimension_numbers<[2], [1], [1], [2], [0, 0, 0, 1, 1, 2], [0], [0]>} : vector<1x8x8xbf16>, vector<1x8x8xbf16>, vector<1x8x8xf32> -> vector<1x8x8xf32>
    "tpu.trace_stop"() : () -> ()
    %114 = vector.shape_cast %113 : vector<1x8x8xf32> to vector<8x8xf32>
    %115 = arith.truncf %114 : vector<8x8xf32> to vector<8x8xbf16>
    %116 = vector.extract_strided_slice %8 {offsets = [16, 0], sizes = [8, 32], strides = [1, 1]} : vector<32x32xbf16> to vector<8x32xbf16>
    %cst_72 = arith.constant dense<0.000000e+00> : vector<8x32xf32>
    %117 = tpu.matmul %115, %116, %cst_72 {dimension_numbers = #tpu.dot_dimension_numbers<[1], [0], [0], [1], [0, 0, 1, 1], [], []>} : vector<8x8xbf16>, vector<8x32xbf16>, vector<8x32xf32> -> vector<8x32xf32>
    %118 = arith.addf %96, %117 : vector<8x32xf32>
    %119 = vector.extract_strided_slice %47 {offsets = [0, 0, 24], sizes = [1, 8, 8], strides = [1, 1, 1]} : vector<1x8x32xbf16> to vector<1x8x8xbf16>
    %120 = vector.extract_strided_slice %49 {offsets = [0, 0, 24], sizes = [1, 8, 8], strides = [1, 1, 1]} : vector<1x8x32xbf16> to vector<1x8x8xbf16>
    "tpu.trace_start"() <{level = 10 : i32, message = "bqd,bkd->bqk"}> : () -> ()
    %cst_73 = arith.constant dense<0.000000e+00> : vector<1x8x8xf32>
    %121 = tpu.matmul %119, %120, %cst_73 {dimension_numbers = #tpu.dot_dimension_numbers<[2], [2], [1], [1], [0, 0, 0, 1, 1, 1], [0], [0]>} : vector<1x8x8xbf16>, vector<1x8x8xbf16>, vector<1x8x8xf32> -> vector<1x8x8xf32>
    "tpu.trace_stop"() : () -> ()
    %122 = arith.addf %121, %53 : vector<1x8x8xf32>
    %cst_74 = arith.constant dense<0xFF800000> : vector<1x8xf32>
    %123 = vector.multi_reduction <maximumf>, %122, %cst_74 [2] : vector<1x8x8xf32> to vector<1x8xf32>
    %124 = vector.shape_cast %123 : vector<1x8xf32> to vector<1x8x1xf32>
    %125 = vector.broadcast %124 : vector<1x8x1xf32> to vector<1x8x8xf32>
    %126 = arith.subf %122, %125 : vector<1x8x8xf32>
    %127 = math.exp %126 : vector<1x8x8xf32>
    %cst_75 = arith.constant dense<0.000000e+00> : vector<1x8xf32>
    %128 = vector.multi_reduction <add>, %127, %cst_75 [2] : vector<1x8x8xf32> to vector<1x8xf32>
    %129 = vector.shape_cast %128 : vector<1x8xf32> to vector<1x8x1xf32>
    %130 = tpu.reciprocal %129 {approx = true} : vector<1x8x1xf32> -> vector<1x8x1xf32>
    %131 = vector.broadcast %130 : vector<1x8x1xf32> to vector<1x8x8xf32>
    %132 = arith.mulf %127, %131 : vector<1x8x8xf32>
    %133 = arith.truncf %132 : vector<1x8x8xf32> to vector<1x8x8xbf16>
    %134 = vector.extract_strided_slice %51 {offsets = [0, 0, 24], sizes = [1, 8, 8], strides = [1, 1, 1]} : vector<1x8x32xbf16> to vector<1x8x8xbf16>
    "tpu.trace_start"() <{level = 10 : i32, message = "bqk,bkd->bqd"}> : () -> ()
    %cst_76 = arith.constant dense<0.000000e+00> : vector<1x8x8xf32>
    %135 = tpu.matmul %133, %134, %cst_76 {dimension_numbers = #tpu.dot_dimension_numbers<[2], [1], [1], [2], [0, 0, 0, 1, 1, 2], [0], [0]>} : vector<1x8x8xbf16>, vector<1x8x8xbf16>, vector<1x8x8xf32> -> vector<1x8x8xf32>
    "tpu.trace_stop"() : () -> ()
    %136 = vector.shape_cast %135 : vector<1x8x8xf32> to vector<8x8xf32>
    %137 = arith.truncf %136 : vector<8x8xf32> to vector<8x8xbf16>
    %138 = vector.extract_strided_slice %8 {offsets = [24, 0], sizes = [8, 32], strides = [1, 1]} : vector<32x32xbf16> to vector<8x32xbf16>
    %cst_77 = arith.constant dense<0.000000e+00> : vector<8x32xf32>
    %139 = tpu.matmul %137, %138, %cst_77 {dimension_numbers = #tpu.dot_dimension_numbers<[1], [0], [0], [1], [0, 0, 1, 1], [], []>} : vector<8x8xbf16>, vector<8x32xbf16>, vector<8x32xf32> -> vector<8x32xf32>
    %140 = arith.addf %118, %139 : vector<8x32xf32>
    %141 = vector.broadcast %10 : vector<1x32xf32> to vector<8x32xf32>
    %142 = arith.addf %140, %141 : vector<8x32xf32>
    %143 = arith.addf %35, %142 : vector<8x32xf32>
    %144 = vector.extract_strided_slice %32 {offsets = [0, 0], sizes = [1, 32], strides = [1, 1]} : vector<3x32xf32> to vector<1x32xf32>
    %145 = vector.extract_strided_slice %34 {offsets = [0, 0], sizes = [1, 32], strides = [1, 1]} : vector<3x32xf32> to vector<1x32xf32>
    %cst_78 = arith.constant dense<0.000000e+00> : vector<8xf32>
    %146 = vector.multi_reduction <add>, %143, %cst_78 [1] : vector<8x32xf32> to vector<8xf32>
    %147 = vector.shape_cast %146 : vector<8xf32> to vector<8x1xf32>
    %cst_79 = arith.constant 3.200000e+01 : f32
    %148 = vector.broadcast %cst_79 : f32 to vector<8x1xf32>
    %149 = arith.divf %147, %148 : vector<8x1xf32>
    %150 = vector.broadcast %149 : vector<8x1xf32> to vector<8x32xf32>
    %151 = arith.subf %143, %150 : vector<8x32xf32>
    %152 = arith.mulf %151, %151 : vector<8x32xf32>
    %cst_80 = arith.constant dense<0.000000e+00> : vector<8xf32>
    %153 = vector.multi_reduction <add>, %152, %cst_80 [1] : vector<8x32xf32> to vector<8xf32>
    %154 = vector.shape_cast %153 : vector<8xf32> to vector<8x1xf32>
    %cst_81 = arith.constant 3.200000e+01 : f32
    %155 = vector.broadcast %cst_81 : f32 to vector<8x1xf32>
    %156 = arith.divf %154, %155 : vector<8x1xf32>
    %cst_82 = arith.constant 9.99999974E-6 : f32
    %157 = vector.broadcast %cst_82 : f32 to vector<8x1xf32>
    %158 = arith.addf %156, %157 : vector<8x1xf32>
    %159 = math.rsqrt %158 : vector<8x1xf32>
    %160 = vector.broadcast %159 : vector<8x1xf32> to vector<8x32xf32>
    %161 = arith.mulf %151, %160 : vector<8x32xf32>
    %162 = vector.broadcast %144 : vector<1x32xf32> to vector<8x32xf32>
    %163 = arith.mulf %161, %162 : vector<8x32xf32>
    %164 = vector.broadcast %145 : vector<1x32xf32> to vector<8x32xf32>
    %165 = arith.addf %163, %164 : vector<8x32xf32>
    %166 = arith.truncf %165 : vector<8x32xf32> to vector<8x32xbf16>
    %cst_83 = arith.constant dense<0.000000e+00> : vector<8x32xf32>
    %167 = tpu.matmul %166, %12, %cst_83 {dimension_numbers = #tpu.dot_dimension_numbers<[1], [0], [0], [1], [0, 0, 1, 1], [], []>} : vector<8x32xbf16>, vector<32x32xbf16>, vector<8x32xf32> -> vector<8x32xf32>
    %168 = vector.broadcast %14 : vector<1x32xf32> to vector<8x32xf32>
    %169 = arith.addf %167, %168 : vector<8x32xf32>
    %170 = arith.truncf %36 : vector<16x32xf32> to vector<16x32xbf16>
    %cst_84 = arith.constant dense<0.000000e+00> : vector<16x64xf32>
    %171 = tpu.matmul %170, %16, %cst_84 {dimension_numbers = #tpu.dot_dimension_numbers<[1], [0], [0], [1], [0, 0, 1, 1], [], []>} : vector<16x32xbf16>, vector<32x64xbf16>, vector<16x64xf32> -> vector<16x64xf32>
    %172 = vector.broadcast %18 : vector<1x64xf32> to vector<16x64xf32>
    %173 = arith.addf %171, %172 : vector<16x64xf32>
    %174 = vector.extract_strided_slice %173 {offsets = [0, 0], sizes = [16, 32], strides = [1, 1]} : vector<16x64xf32> to vector<16x32xf32>
    %175 = vector.extract_strided_slice %173 {offsets = [0, 32], sizes = [16, 32], strides = [1, 1]} : vector<16x64xf32> to vector<16x32xf32>
    %176 = arith.truncf %169 : vector<8x32xf32> to vector<8x32xbf16>
    %177 = vector.shape_cast %176 : vector<8x32xbf16> to vector<1x8x32xbf16>
    %178 = arith.truncf %174 : vector<16x32xf32> to vector<16x32xbf16>
    %179 = vector.shape_cast %178 : vector<16x32xbf16> to vector<1x16x32xbf16>
    %180 = arith.truncf %175 : vector<16x32xf32> to vector<16x32xbf16>
    %181 = vector.shape_cast %180 : vector<16x32xbf16> to vector<1x16x32xbf16>
    %182 = vector.shape_cast %38 : vector<1x1x16xf32> to vector<1x1x16xf32>
    %183 = vector.broadcast %182 : vector<1x1x16xf32> to vector<1x8x16xf32>
    %184 = vector.extract_strided_slice %177 {offsets = [0, 0, 0], sizes = [1, 8, 8], strides = [1, 1, 1]} : vector<1x8x32xbf16> to vector<1x8x8xbf16>
    %185 = vector.extract_strided_slice %179 {offsets = [0, 0, 0], sizes = [1, 16, 8], strides = [1, 1, 1]} : vector<1x16x32xbf16> to vector<1x16x8xbf16>
    "tpu.trace_start"() <{level = 10 : i32, message = "bqd,bkd->bqk"}> : () -> ()
    %cst_85 = arith.constant dense<0.000000e+00> : vector<1x8x16xf32>
    %186 = tpu.matmul %184, %185, %cst_85 {dimension_numbers = #tpu.dot_dimension_numbers<[2], [2], [1], [1], [0, 0, 0, 1, 1, 1], [0], [0]>} : vector<1x8x8xbf16>, vector<1x16x8xbf16>, vector<1x8x16xf32> -> vector<1x8x16xf32>
    "tpu.trace_stop"() : () -> ()
    %187 = arith.addf %186, %183 : vector<1x8x16xf32>
    %cst_86 = arith.constant dense<0xFF800000> : vector<1x8xf32>
    %188 = vector.multi_reduction <maximumf>, %187, %cst_86 [2] : vector<1x8x16xf32> to vector<1x8xf32>
    %189 = vector.shape_cast %188 : vector<1x8xf32> to vector<1x8x1xf32>
    %190 = vector.broadcast %189 : vector<1x8x1xf32> to vector<1x8x16xf32>
    %191 = arith.subf %187, %190 : vector<1x8x16xf32>
    %192 = math.exp %191 : vector<1x8x16xf32>
    %cst_87 = arith.constant dense<0.000000e+00> : vector<1x8xf32>
    %193 = vector.multi_reduction <add>, %192, %cst_87 [2] : vector<1x8x16xf32> to vector<1x8xf32>
    %194 = vector.shape_cast %193 : vector<1x8xf32> to vector<1x8x1xf32>
    %195 = tpu.reciprocal %194 {approx = true} : vector<1x8x1xf32> -> vector<1x8x1xf32>
    %196 = vector.broadcast %195 : vector<1x8x1xf32> to vector<1x8x16xf32>
    %197 = arith.mulf %192, %196 : vector<1x8x16xf32>
    %198 = arith.truncf %197 : vector<1x8x16xf32> to vector<1x8x16xbf16>
    %199 = vector.extract_strided_slice %181 {offsets = [0, 0, 0], sizes = [1, 16, 8], strides = [1, 1, 1]} : vector<1x16x32xbf16> to vector<1x16x8xbf16>
    "tpu.trace_start"() <{level = 10 : i32, message = "bqk,bkd->bqd"}> : () -> ()
    %cst_88 = arith.constant dense<0.000000e+00> : vector<1x8x8xf32>
    %200 = tpu.matmul %198, %199, %cst_88 {dimension_numbers = #tpu.dot_dimension_numbers<[2], [1], [1], [2], [0, 0, 0, 1, 1, 2], [0], [0]>} : vector<1x8x16xbf16>, vector<1x16x8xbf16>, vector<1x8x8xf32> -> vector<1x8x8xf32>
    "tpu.trace_stop"() : () -> ()
    %201 = vector.shape_cast %200 : vector<1x8x8xf32> to vector<8x8xf32>
    %202 = arith.truncf %201 : vector<8x8xf32> to vector<8x8xbf16>
    %203 = vector.extract_strided_slice %20 {offsets = [0, 0], sizes = [8, 32], strides = [1, 1]} : vector<32x32xbf16> to vector<8x32xbf16>
    %cst_89 = arith.constant dense<0.000000e+00> : vector<8x32xf32>
    %204 = tpu.matmul %202, %203, %cst_89 {dimension_numbers = #tpu.dot_dimension_numbers<[1], [0], [0], [1], [0, 0, 1, 1], [], []>} : vector<8x8xbf16>, vector<8x32xbf16>, vector<8x32xf32> -> vector<8x32xf32>
    %205 = vector.extract_strided_slice %177 {offsets = [0, 0, 8], sizes = [1, 8, 8], strides = [1, 1, 1]} : vector<1x8x32xbf16> to vector<1x8x8xbf16>
    %206 = vector.extract_strided_slice %179 {offsets = [0, 0, 8], sizes = [1, 16, 8], strides = [1, 1, 1]} : vector<1x16x32xbf16> to vector<1x16x8xbf16>
    "tpu.trace_start"() <{level = 10 : i32, message = "bqd,bkd->bqk"}> : () -> ()
    %cst_90 = arith.constant dense<0.000000e+00> : vector<1x8x16xf32>
    %207 = tpu.matmul %205, %206, %cst_90 {dimension_numbers = #tpu.dot_dimension_numbers<[2], [2], [1], [1], [0, 0, 0, 1, 1, 1], [0], [0]>} : vector<1x8x8xbf16>, vector<1x16x8xbf16>, vector<1x8x16xf32> -> vector<1x8x16xf32>
    "tpu.trace_stop"() : () -> ()
    %208 = arith.addf %207, %183 : vector<1x8x16xf32>
    %cst_91 = arith.constant dense<0xFF800000> : vector<1x8xf32>
    %209 = vector.multi_reduction <maximumf>, %208, %cst_91 [2] : vector<1x8x16xf32> to vector<1x8xf32>
    %210 = vector.shape_cast %209 : vector<1x8xf32> to vector<1x8x1xf32>
    %211 = vector.broadcast %210 : vector<1x8x1xf32> to vector<1x8x16xf32>
    %212 = arith.subf %208, %211 : vector<1x8x16xf32>
    %213 = math.exp %212 : vector<1x8x16xf32>
    %cst_92 = arith.constant dense<0.000000e+00> : vector<1x8xf32>
    %214 = vector.multi_reduction <add>, %213, %cst_92 [2] : vector<1x8x16xf32> to vector<1x8xf32>
    %215 = vector.shape_cast %214 : vector<1x8xf32> to vector<1x8x1xf32>
    %216 = tpu.reciprocal %215 {approx = true} : vector<1x8x1xf32> -> vector<1x8x1xf32>
    %217 = vector.broadcast %216 : vector<1x8x1xf32> to vector<1x8x16xf32>
    %218 = arith.mulf %213, %217 : vector<1x8x16xf32>
    %219 = arith.truncf %218 : vector<1x8x16xf32> to vector<1x8x16xbf16>
    %220 = vector.extract_strided_slice %181 {offsets = [0, 0, 8], sizes = [1, 16, 8], strides = [1, 1, 1]} : vector<1x16x32xbf16> to vector<1x16x8xbf16>
    "tpu.trace_start"() <{level = 10 : i32, message = "bqk,bkd->bqd"}> : () -> ()
    %cst_93 = arith.constant dense<0.000000e+00> : vector<1x8x8xf32>
    %221 = tpu.matmul %219, %220, %cst_93 {dimension_numbers = #tpu.dot_dimension_numbers<[2], [1], [1], [2], [0, 0, 0, 1, 1, 2], [0], [0]>} : vector<1x8x16xbf16>, vector<1x16x8xbf16>, vector<1x8x8xf32> -> vector<1x8x8xf32>
    "tpu.trace_stop"() : () -> ()
    %222 = vector.shape_cast %221 : vector<1x8x8xf32> to vector<8x8xf32>
    %223 = arith.truncf %222 : vector<8x8xf32> to vector<8x8xbf16>
    %224 = vector.extract_strided_slice %20 {offsets = [8, 0], sizes = [8, 32], strides = [1, 1]} : vector<32x32xbf16> to vector<8x32xbf16>
    %cst_94 = arith.constant dense<0.000000e+00> : vector<8x32xf32>
    %225 = tpu.matmul %223, %224, %cst_94 {dimension_numbers = #tpu.dot_dimension_numbers<[1], [0], [0], [1], [0, 0, 1, 1], [], []>} : vector<8x8xbf16>, vector<8x32xbf16>, vector<8x32xf32> -> vector<8x32xf32>
    %226 = arith.addf %204, %225 : vector<8x32xf32>
    %227 = vector.extract_strided_slice %177 {offsets = [0, 0, 16], sizes = [1, 8, 8], strides = [1, 1, 1]} : vector<1x8x32xbf16> to vector<1x8x8xbf16>
    %228 = vector.extract_strided_slice %179 {offsets = [0, 0, 16], sizes = [1, 16, 8], strides = [1, 1, 1]} : vector<1x16x32xbf16> to vector<1x16x8xbf16>
    "tpu.trace_start"() <{level = 10 : i32, message = "bqd,bkd->bqk"}> : () -> ()
    %cst_95 = arith.constant dense<0.000000e+00> : vector<1x8x16xf32>
    %229 = tpu.matmul %227, %228, %cst_95 {dimension_numbers = #tpu.dot_dimension_numbers<[2], [2], [1], [1], [0, 0, 0, 1, 1, 1], [0], [0]>} : vector<1x8x8xbf16>, vector<1x16x8xbf16>, vector<1x8x16xf32> -> vector<1x8x16xf32>
    "tpu.trace_stop"() : () -> ()
    %230 = arith.addf %229, %183 : vector<1x8x16xf32>
    %cst_96 = arith.constant dense<0xFF800000> : vector<1x8xf32>
    %231 = vector.multi_reduction <maximumf>, %230, %cst_96 [2] : vector<1x8x16xf32> to vector<1x8xf32>
    %232 = vector.shape_cast %231 : vector<1x8xf32> to vector<1x8x1xf32>
    %233 = vector.broadcast %232 : vector<1x8x1xf32> to vector<1x8x16xf32>
    %234 = arith.subf %230, %233 : vector<1x8x16xf32>
    %235 = math.exp %234 : vector<1x8x16xf32>
    %cst_97 = arith.constant dense<0.000000e+00> : vector<1x8xf32>
    %236 = vector.multi_reduction <add>, %235, %cst_97 [2] : vector<1x8x16xf32> to vector<1x8xf32>
    %237 = vector.shape_cast %236 : vector<1x8xf32> to vector<1x8x1xf32>
    %238 = tpu.reciprocal %237 {approx = true} : vector<1x8x1xf32> -> vector<1x8x1xf32>
    %239 = vector.broadcast %238 : vector<1x8x1xf32> to vector<1x8x16xf32>
    %240 = arith.mulf %235, %239 : vector<1x8x16xf32>
    %241 = arith.truncf %240 : vector<1x8x16xf32> to vector<1x8x16xbf16>
    %242 = vector.extract_strided_slice %181 {offsets = [0, 0, 16], sizes = [1, 16, 8], strides = [1, 1, 1]} : vector<1x16x32xbf16> to vector<1x16x8xbf16>
    "tpu.trace_start"() <{level = 10 : i32, message = "bqk,bkd->bqd"}> : () -> ()
    %cst_98 = arith.constant dense<0.000000e+00> : vector<1x8x8xf32>
    %243 = tpu.matmul %241, %242, %cst_98 {dimension_numbers = #tpu.dot_dimension_numbers<[2], [1], [1], [2], [0, 0, 0, 1, 1, 2], [0], [0]>} : vector<1x8x16xbf16>, vector<1x16x8xbf16>, vector<1x8x8xf32> -> vector<1x8x8xf32>
    "tpu.trace_stop"() : () -> ()
    %244 = vector.shape_cast %243 : vector<1x8x8xf32> to vector<8x8xf32>
    %245 = arith.truncf %244 : vector<8x8xf32> to vector<8x8xbf16>
    %246 = vector.extract_strided_slice %20 {offsets = [16, 0], sizes = [8, 32], strides = [1, 1]} : vector<32x32xbf16> to vector<8x32xbf16>
    %cst_99 = arith.constant dense<0.000000e+00> : vector<8x32xf32>
    %247 = tpu.matmul %245, %246, %cst_99 {dimension_numbers = #tpu.dot_dimension_numbers<[1], [0], [0], [1], [0, 0, 1, 1], [], []>} : vector<8x8xbf16>, vector<8x32xbf16>, vector<8x32xf32> -> vector<8x32xf32>
    %248 = arith.addf %226, %247 : vector<8x32xf32>
    %249 = vector.extract_strided_slice %177 {offsets = [0, 0, 24], sizes = [1, 8, 8], strides = [1, 1, 1]} : vector<1x8x32xbf16> to vector<1x8x8xbf16>
    %250 = vector.extract_strided_slice %179 {offsets = [0, 0, 24], sizes = [1, 16, 8], strides = [1, 1, 1]} : vector<1x16x32xbf16> to vector<1x16x8xbf16>
    "tpu.trace_start"() <{level = 10 : i32, message = "bqd,bkd->bqk"}> : () -> ()
    %cst_100 = arith.constant dense<0.000000e+00> : vector<1x8x16xf32>
    %251 = tpu.matmul %249, %250, %cst_100 {dimension_numbers = #tpu.dot_dimension_numbers<[2], [2], [1], [1], [0, 0, 0, 1, 1, 1], [0], [0]>} : vector<1x8x8xbf16>, vector<1x16x8xbf16>, vector<1x8x16xf32> -> vector<1x8x16xf32>
    "tpu.trace_stop"() : () -> ()
    %252 = arith.addf %251, %183 : vector<1x8x16xf32>
    %cst_101 = arith.constant dense<0xFF800000> : vector<1x8xf32>
    %253 = vector.multi_reduction <maximumf>, %252, %cst_101 [2] : vector<1x8x16xf32> to vector<1x8xf32>
    %254 = vector.shape_cast %253 : vector<1x8xf32> to vector<1x8x1xf32>
    %255 = vector.broadcast %254 : vector<1x8x1xf32> to vector<1x8x16xf32>
    %256 = arith.subf %252, %255 : vector<1x8x16xf32>
    %257 = math.exp %256 : vector<1x8x16xf32>
    %cst_102 = arith.constant dense<0.000000e+00> : vector<1x8xf32>
    %258 = vector.multi_reduction <add>, %257, %cst_102 [2] : vector<1x8x16xf32> to vector<1x8xf32>
    %259 = vector.shape_cast %258 : vector<1x8xf32> to vector<1x8x1xf32>
    %260 = tpu.reciprocal %259 {approx = true} : vector<1x8x1xf32> -> vector<1x8x1xf32>
    %261 = vector.broadcast %260 : vector<1x8x1xf32> to vector<1x8x16xf32>
    %262 = arith.mulf %257, %261 : vector<1x8x16xf32>
    %263 = arith.truncf %262 : vector<1x8x16xf32> to vector<1x8x16xbf16>
    %264 = vector.extract_strided_slice %181 {offsets = [0, 0, 24], sizes = [1, 16, 8], strides = [1, 1, 1]} : vector<1x16x32xbf16> to vector<1x16x8xbf16>
    "tpu.trace_start"() <{level = 10 : i32, message = "bqk,bkd->bqd"}> : () -> ()
    %cst_103 = arith.constant dense<0.000000e+00> : vector<1x8x8xf32>
    %265 = tpu.matmul %263, %264, %cst_103 {dimension_numbers = #tpu.dot_dimension_numbers<[2], [1], [1], [2], [0, 0, 0, 1, 1, 2], [0], [0]>} : vector<1x8x16xbf16>, vector<1x16x8xbf16>, vector<1x8x8xf32> -> vector<1x8x8xf32>
    "tpu.trace_stop"() : () -> ()
    %266 = vector.shape_cast %265 : vector<1x8x8xf32> to vector<8x8xf32>
    %267 = arith.truncf %266 : vector<8x8xf32> to vector<8x8xbf16>
    %268 = vector.extract_strided_slice %20 {offsets = [24, 0], sizes = [8, 32], strides = [1, 1]} : vector<32x32xbf16> to vector<8x32xbf16>
    %cst_104 = arith.constant dense<0.000000e+00> : vector<8x32xf32>
    %269 = tpu.matmul %267, %268, %cst_104 {dimension_numbers = #tpu.dot_dimension_numbers<[1], [0], [0], [1], [0, 0, 1, 1], [], []>} : vector<8x8xbf16>, vector<8x32xbf16>, vector<8x32xf32> -> vector<8x32xf32>
    %270 = arith.addf %248, %269 : vector<8x32xf32>
    %271 = vector.broadcast %22 : vector<1x32xf32> to vector<8x32xf32>
    %272 = arith.addf %270, %271 : vector<8x32xf32>
    %273 = arith.addf %165, %272 : vector<8x32xf32>
    %274 = vector.extract_strided_slice %32 {offsets = [1, 0], sizes = [1, 32], strides = [1, 1]} : vector<3x32xf32> to vector<1x32xf32>
    %275 = vector.extract_strided_slice %34 {offsets = [1, 0], sizes = [1, 32], strides = [1, 1]} : vector<3x32xf32> to vector<1x32xf32>
    %cst_105 = arith.constant dense<0.000000e+00> : vector<8xf32>
    %276 = vector.multi_reduction <add>, %273, %cst_105 [1] : vector<8x32xf32> to vector<8xf32>
    %277 = vector.shape_cast %276 : vector<8xf32> to vector<8x1xf32>
    %cst_106 = arith.constant 3.200000e+01 : f32
    %278 = vector.broadcast %cst_106 : f32 to vector<8x1xf32>
    %279 = arith.divf %277, %278 : vector<8x1xf32>
    %280 = vector.broadcast %279 : vector<8x1xf32> to vector<8x32xf32>
    %281 = arith.subf %273, %280 : vector<8x32xf32>
    %282 = arith.mulf %281, %281 : vector<8x32xf32>
    %cst_107 = arith.constant dense<0.000000e+00> : vector<8xf32>
    %283 = vector.multi_reduction <add>, %282, %cst_107 [1] : vector<8x32xf32> to vector<8xf32>
    %284 = vector.shape_cast %283 : vector<8xf32> to vector<8x1xf32>
    %cst_108 = arith.constant 3.200000e+01 : f32
    %285 = vector.broadcast %cst_108 : f32 to vector<8x1xf32>
    %286 = arith.divf %284, %285 : vector<8x1xf32>
    %cst_109 = arith.constant 9.99999974E-6 : f32
    %287 = vector.broadcast %cst_109 : f32 to vector<8x1xf32>
    %288 = arith.addf %286, %287 : vector<8x1xf32>
    %289 = math.rsqrt %288 : vector<8x1xf32>
    %290 = vector.broadcast %289 : vector<8x1xf32> to vector<8x32xf32>
    %291 = arith.mulf %281, %290 : vector<8x32xf32>
    %292 = vector.broadcast %274 : vector<1x32xf32> to vector<8x32xf32>
    %293 = arith.mulf %291, %292 : vector<8x32xf32>
    %294 = vector.broadcast %275 : vector<1x32xf32> to vector<8x32xf32>
    %295 = arith.addf %293, %294 : vector<8x32xf32>
    %296 = arith.truncf %295 : vector<8x32xf32> to vector<8x32xbf16>
    %cst_110 = arith.constant dense<0.000000e+00> : vector<8x64xf32>
    %297 = tpu.matmul %296, %24, %cst_110 {dimension_numbers = #tpu.dot_dimension_numbers<[1], [0], [0], [1], [0, 0, 1, 1], [], []>} : vector<8x32xbf16>, vector<32x64xbf16>, vector<8x64xf32> -> vector<8x64xf32>
    %298 = vector.broadcast %26 : vector<1x64xf32> to vector<8x64xf32>
    %299 = arith.addf %297, %298 : vector<8x64xf32>
    %cst_111 = arith.constant 0.000000e+00 : f32
    %300 = vector.broadcast %cst_111 : f32 to vector<8x64xf32>
    %301 = arith.maximumf %299, %300 : vector<8x64xf32>
    %302 = arith.truncf %301 : vector<8x64xf32> to vector<8x64xbf16>
    %cst_112 = arith.constant dense<0.000000e+00> : vector<8x32xf32>
    %303 = tpu.matmul %302, %28, %cst_112 {dimension_numbers = #tpu.dot_dimension_numbers<[1], [0], [0], [1], [0, 0, 1, 1], [], []>} : vector<8x64xbf16>, vector<64x32xbf16>, vector<8x32xf32> -> vector<8x32xf32>
    %304 = vector.broadcast %30 : vector<1x32xf32> to vector<8x32xf32>
    %305 = arith.addf %303, %304 : vector<8x32xf32>
    %306 = arith.addf %295, %305 : vector<8x32xf32>
    %307 = vector.extract_strided_slice %32 {offsets = [2, 0], sizes = [1, 32], strides = [1, 1]} : vector<3x32xf32> to vector<1x32xf32>
    %308 = vector.extract_strided_slice %34 {offsets = [2, 0], sizes = [1, 32], strides = [1, 1]} : vector<3x32xf32> to vector<1x32xf32>
    %cst_113 = arith.constant dense<0.000000e+00> : vector<8xf32>
    %309 = vector.multi_reduction <add>, %306, %cst_113 [1] : vector<8x32xf32> to vector<8xf32>
    %310 = vector.shape_cast %309 : vector<8xf32> to vector<8x1xf32>
    %cst_114 = arith.constant 3.200000e+01 : f32
    %311 = vector.broadcast %cst_114 : f32 to vector<8x1xf32>
    %312 = arith.divf %310, %311 : vector<8x1xf32>
    %313 = vector.broadcast %312 : vector<8x1xf32> to vector<8x32xf32>
    %314 = arith.subf %306, %313 : vector<8x32xf32>
    %315 = arith.mulf %314, %314 : vector<8x32xf32>
    %cst_115 = arith.constant dense<0.000000e+00> : vector<8xf32>
    %316 = vector.multi_reduction <add>, %315, %cst_115 [1] : vector<8x32xf32> to vector<8xf32>
    %317 = vector.shape_cast %316 : vector<8xf32> to vector<8x1xf32>
    %cst_116 = arith.constant 3.200000e+01 : f32
    %318 = vector.broadcast %cst_116 : f32 to vector<8x1xf32>
    %319 = arith.divf %317, %318 : vector<8x1xf32>
    %cst_117 = arith.constant 9.99999974E-6 : f32
    %320 = vector.broadcast %cst_117 : f32 to vector<8x1xf32>
    %321 = arith.addf %319, %320 : vector<8x1xf32>
    %322 = math.rsqrt %321 : vector<8x1xf32>
    %323 = vector.broadcast %322 : vector<8x1xf32> to vector<8x32xf32>
    %324 = arith.mulf %314, %323 : vector<8x32xf32>
    %325 = vector.broadcast %307 : vector<1x32xf32> to vector<8x32xf32>
    %326 = arith.mulf %324, %325 : vector<8x32xf32>
    %327 = vector.broadcast %308 : vector<1x32xf32> to vector<8x32xf32>
    %328 = arith.addf %326, %327 : vector<8x32xf32>
    %c0_118 = arith.constant 0 : index
    %c0_119 = arith.constant 0 : index
    %329 = vector.load %arg23[%c0_118, %c0_119] : memref<8x32xf32, #tpu.memory_space<vmem>>, vector<8x32xf32>
    tpu.vector_store %arg23[%c0_118, %c0_119], %328 {strides = array<i32>} : memref<8x32xf32, #tpu.memory_space<vmem>>, vector<8x32xf32>,
    %c1_i32 = arith.constant 1 : i32
    %330 = arith.cmpi eq, %arg1, %c1_i32 : i32
    %331 = arith.extui %330 : i1 to i32
    %c0_i32_120 = arith.constant 0 : i32
    %332 = arith.cmpi ne, %331, %c0_i32_120 : i32
    scf.if %332 {
      %c0_121 = arith.constant 0 : index
      %c0_122 = arith.constant 0 : index
      %333 = vector.load %arg23[%c0_121, %c0_122] : memref<8x32xf32, #tpu.memory_space<vmem>>, vector<1x32xf32>
      %334 = vector.shape_cast %333 : vector<1x32xf32> to vector<1x1x32xf32>
      %c0_123 = arith.constant 0 : index
      %c0_124 = arith.constant 0 : index
      %c0_125 = arith.constant 0 : index
      %335 = vector.load %arg22[%c0_123, %c0_124, %c0_125] : memref<1x1x32xf32, #tpu.memory_space<vmem>>, vector<1x1x32xf32>
      tpu.vector_store %arg22[%c0_123, %c0_124, %c0_125], %334 {strides = array<i32>} : memref<1x1x32xf32, #tpu.memory_space<vmem>>, vector<1x1x32xf32>,
    } else {
    }
    return
  }
  func.func @transform_0(%arg0: i32, %arg1: i32) -> (i32, i32) {
    %c0_i32 = arith.constant 0 : i32
    %c0_i32_0 = arith.constant 0 : i32
    return %arg0, %c0_i32 : i32, i32
  }
  func.func @transform_1(%arg0: i32, %arg1: i32) -> (i32, i32) {
    %c0_i32 = arith.constant 0 : i32
    %c0_i32_0 = arith.constant 0 : i32
    return %arg0, %c0_i32 : i32, i32
  }
  func.func @transform_2(%arg0: i32, %arg1: i32) -> (i32, i32, i32) {
    %c0_i32 = arith.constant 0 : i32
    %c0_i32_0 = arith.constant 0 : i32
    %c0_i32_1 = arith.constant 0 : i32
    return %arg0, %c0_i32, %c0_i32_0 : i32, i32, i32
  }
  func.func @transform_3(%arg0: i32, %arg1: i32) -> (i32, i32, i32) {
    %c0_i32 = arith.constant 0 : i32
    %c0_i32_0 = arith.constant 0 : i32
    %c0_i32_1 = arith.constant 0 : i32
    return %arg0, %c0_i32, %c0_i32_0 : i32, i32, i32
  }
  func.func @transform_4(%arg0: i32, %arg1: i32) -> (i32, i32, i32) {
    %c0_i32 = arith.constant 0 : i32
    %c0_i32_0 = arith.constant 0 : i32
    %c0_i32_1 = arith.constant 0 : i32
    return %arg1, %c0_i32, %c0_i32_0 : i32, i32, i32
  }
  func.func @transform_5(%arg0: i32, %arg1: i32) -> (i32, i32, i32) {
    %c0_i32 = arith.constant 0 : i32
    %c0_i32_0 = arith.constant 0 : i32
    %c0_i32_1 = arith.constant 0 : i32
    return %arg1, %c0_i32, %c0_i32_0 : i32, i32, i32
  }
  func.func @transform_6(%arg0: i32, %arg1: i32) -> (i32, i32, i32) {
    %c0_i32 = arith.constant 0 : i32
    %c0_i32_0 = arith.constant 0 : i32
    %c0_i32_1 = arith.constant 0 : i32
    return %arg1, %c0_i32, %c0_i32_0 : i32, i32, i32
  }
  func.func @transform_7(%arg0: i32, %arg1: i32) -> (i32, i32, i32) {
    %c0_i32 = arith.constant 0 : i32
    %c0_i32_0 = arith.constant 0 : i32
    %c0_i32_1 = arith.constant 0 : i32
    return %arg1, %c0_i32, %c0_i32_0 : i32, i32, i32
  }
  func.func @transform_8(%arg0: i32, %arg1: i32) -> (i32, i32, i32) {
    %c0_i32 = arith.constant 0 : i32
    %c0_i32_0 = arith.constant 0 : i32
    %c0_i32_1 = arith.constant 0 : i32
    return %arg1, %c0_i32, %c0_i32_0 : i32, i32, i32
  }
  func.func @transform_9(%arg0: i32, %arg1: i32) -> (i32, i32, i32) {
    %c0_i32 = arith.constant 0 : i32
    %c0_i32_0 = arith.constant 0 : i32
    %c0_i32_1 = arith.constant 0 : i32
    return %arg1, %c0_i32, %c0_i32_0 : i32, i32, i32
  }
  func.func @transform_10(%arg0: i32, %arg1: i32) -> (i32, i32, i32) {
    %c0_i32 = arith.constant 0 : i32
    %c0_i32_0 = arith.constant 0 : i32
    %c0_i32_1 = arith.constant 0 : i32
    return %arg1, %c0_i32, %c0_i32_0 : i32, i32, i32
  }
  func.func @transform_11(%arg0: i32, %arg1: i32) -> (i32, i32, i32) {
    %c0_i32 = arith.constant 0 : i32
    %c0_i32_0 = arith.constant 0 : i32
    %c0_i32_1 = arith.constant 0 : i32
    return %arg1, %c0_i32, %c0_i32_0 : i32, i32, i32
  }
  func.func @transform_12(%arg0: i32, %arg1: i32) -> (i32, i32, i32) {
    %c0_i32 = arith.constant 0 : i32
    %c0_i32_0 = arith.constant 0 : i32
    %c0_i32_1 = arith.constant 0 : i32
    return %arg1, %c0_i32, %c0_i32_0 : i32, i32, i32
  }
  func.func @transform_13(%arg0: i32, %arg1: i32) -> (i32, i32, i32) {
    %c0_i32 = arith.constant 0 : i32
    %c0_i32_0 = arith.constant 0 : i32
    %c0_i32_1 = arith.constant 0 : i32
    return %arg1, %c0_i32, %c0_i32_0 : i32, i32, i32
  }
  func.func @transform_14(%arg0: i32, %arg1: i32) -> (i32, i32, i32) {
    %c0_i32 = arith.constant 0 : i32
    %c0_i32_0 = arith.constant 0 : i32
    %c0_i32_1 = arith.constant 0 : i32
    return %arg1, %c0_i32, %c0_i32_0 : i32, i32, i32
  }
  func.func @transform_15(%arg0: i32, %arg1: i32) -> (i32, i32, i32) {
    %c0_i32 = arith.constant 0 : i32
    %c0_i32_0 = arith.constant 0 : i32
    %c0_i32_1 = arith.constant 0 : i32
    return %arg1, %c0_i32, %c0_i32_0 : i32, i32, i32
  }
  func.func @transform_16(%arg0: i32, %arg1: i32) -> (i32, i32, i32) {
    %c0_i32 = arith.constant 0 : i32
    %c0_i32_0 = arith.constant 0 : i32
    %c0_i32_1 = arith.constant 0 : i32
    return %arg1, %c0_i32, %c0_i32_0 : i32, i32, i32
  }
  func.func @transform_17(%arg0: i32, %arg1: i32) -> (i32, i32, i32) {
    %c0_i32 = arith.constant 0 : i32
    %c0_i32_0 = arith.constant 0 : i32
    %c0_i32_1 = arith.constant 0 : i32
    return %arg1, %c0_i32, %c0_i32_0 : i32, i32, i32
  }
  func.func @transform_18(%arg0: i32, %arg1: i32) -> (i32, i32, i32) {
    %c0_i32 = arith.constant 0 : i32
    %c0_i32_0 = arith.constant 0 : i32
    %c0_i32_1 = arith.constant 0 : i32
    return %arg1, %c0_i32, %c0_i32_0 : i32, i32, i32
  }
  func.func @transform_19(%arg0: i32, %arg1: i32) -> (i32, i32, i32) {
    %c0_i32 = arith.constant 0 : i32
    %c0_i32_0 = arith.constant 0 : i32
    %c0_i32_1 = arith.constant 0 : i32
    return %arg1, %c0_i32, %c0_i32_0 : i32, i32, i32
  }
  func.func @transform_20(%arg0: i32, %arg1: i32) -> (i32, i32, i32) {
    %c0_i32 = arith.constant 0 : i32
    %c0_i32_0 = arith.constant 0 : i32
    %c0_i32_1 = arith.constant 0 : i32
    return %arg0, %c0_i32, %c0_i32_0 : i32, i32, i32
  }
}

</mosaic_0001>

<bundles_post_ra>
// kernel: tpu_custom_call.1
= control target key start
LH: loop header
LB: loop body
LE: loop exit
PB: predicated region body
PF: predicated region fallthrough
CT: control target
= control target key end

     0   :  { %s5452_s0 = inlined_call_operand.hbm [shape: f32[16,32], index: 0, kind: input, shape index: {}]   ;;  %s5453_s1 = inlined_call_operand.vmem [shape: f32[32,32], index: 1, kind: input, shape index: {}]   ;;  %s5454_s2 = inlined_call_operand.hbm [shape: f32[2,1,8], index: 2, kind: input, shape index: {}]   ;;  %s5455_s3 = inlined_call_operand.hbm [shape: f32[2,1,16], index: 3, kind: input, shape index: {}]   ;;  %s5456_s4 = inlined_call_operand.vmem [shape: bf16[2,32,96], index: 4, kind: input, shape index: {}]   ;;  %s5457_s5 = inlined_call_operand.hbm [shape: f32[2,1,96], index: 5, kind: input, shape index: {}]   ;;  %s5458_s6 = inlined_call_operand.vmem [shape: bf16[2,32,32], index: 6, kind: input, shape index: {}]   ;;  %s5459_s7 = inlined_call_operand.hbm [shape: f32[2,1,32], index: 7, kind: input, shape index: {}]   ;;  %s5460_s8 = inlined_call_operand.vmem [shape: bf16[2,32,32], index: 8, kind: input, shape index: {}]   ;;  %s5461_s9 = inlined_call_operand.hbm [shape: f32[2,1,32], index: 9, kind: input, shape index: {}]   ;;  %s5462_s10 = inlined_call_operand.hbm [shape: bf16[2,32,64], index: 10, kind: input, shape index: {}]   ;;  %s5463_s11 = inlined_call_operand.hbm [shape: f32[2,1,64], index: 11, kind: input, shape index: {}]   ;;  %s5464_s12 = inlined_call_operand.hbm [shape: bf16[2,32,32], index: 12, kind: input, shape index: {}]   ;;  %s5465_s13 = inlined_call_operand.hbm [shape: f32[2,1,32], index: 13, kind: input, shape index: {}]   ;;  %s5466_s14 = inlined_call_operand.hbm [shape: bf16[2,32,64], index: 14, kind: input, shape index: {}]   ;;  %s5467_s15 = inlined_call_operand.vmem [shape: f32[2,1,64], index: 15, kind: input, shape index: {}]   ;;  %s5468_s16 = inlined_call_operand.vmem [shape: bf16[2,64,32], index: 16, kind: input, shape index: {}]   ;;  %s5469_s17 = inlined_call_operand.vmem [shape: f32[2,1,32], index: 17, kind: input, shape index: {}]   ;;  %s5470_s18 = inlined_call_operand.vmem [shape: f32[2,3,32], index: 18, kind: input, shape index: {}]   ;;  %s5471_s19 = inlined_call_operand.vmem [shape: f32[2,3,32], index: 19, kind: input, shape index: {}]   ;;  %s5472_s20 = inlined_call_operand.hbm [shape: f32[2,1,32], index: 20, kind: output, shape index: {}]  }
   0x1   :  { %5521 = sst [smem:[#allocation49_spill]] %s5452_s0 }
   0x2   :  { %5522 = sst [smem:[#allocation50_spill]] %s5453_s1 }
   0x3   :  { %5523 = sst [smem:[#allocation51_spill]] %s5454_s2 }
   0x4   :  { %5524 = sst [smem:[#allocation52_spill]] %s5455_s3 }
   0x5   :  { %5525 = sst [smem:[#allocation53_spill]] %s5456_s4 }
   0x6   :  { %5526 = sst [smem:[#allocation54_spill]] %s5457_s5 }
   0x7   :  { %5527 = sst [smem:[#allocation55_spill]] %s5458_s6 }
   0x8   :  { %5528 = sst [smem:[#allocation56_spill]] %s5459_s7 }
   0x9   :  { %5529 = sst [smem:[#allocation57_spill]] %s5460_s8 }
   0xa   :  { %5530 = sst [smem:[#allocation58_spill]] %s5461_s9 }
   0xb   :  { %5531 = sst [smem:[#allocation59_spill]] %s5462_s10 }
   0xc   :  { %5532 = sst [smem:[#allocation60_spill]] %s5463_s11 }
   0xd   :  { %5533 = sst [smem:[#allocation61_spill]] %s5464_s12 }
   0xe   :  { %5534 = sst [smem:[#allocation62_spill]] %s5465_s13 }
   0xf   :  { %5535 = sst [smem:[#allocation63_spill]] %s5466_s14 }
  0x10   :  { %5536 = sst [smem:[#allocation64_spill]] %s5467_s15 }
  0x11   :  { %5537 = sst [smem:[#allocation65_spill]] %s5468_s16 }
  0x12   :  { %5538 = sst [smem:[#allocation66_spill]] %s5469_s17 }
  0x13   :  { %5539 = sst [smem:[#allocation67_spill]] %s5470_s18 }
  0x14   :  { %5540 = sst [smem:[#allocation68_spill]] %s5471_s19 }
  0x15   :  { %5541 = sst [smem:[#allocation69_spill]] %s5472_s20 }
  0x16   :  { %25 = vsyncpa [#allocation4], 0 }
  0x17   :  { %27 = vsyncpa [#allocation4 + $0x1], 0 }
  0x18   :  { %28 = vsyncpa [#allocation7], 0 }
  0x19   :  { %30 = vsyncpa [#allocation7 + $0x1], 0 }
  0x1a   :  { %31 = vsyncpa [#allocation10], 0 }
  0x1b   :  { %33 = vsyncpa [#allocation10 + $0x1], 0 }
  0x1c   :  { %34 = vsyncpa [#allocation13], 0 }
  0x1d   :  { %36 = vsyncpa [#allocation13 + $0x1], 0 }
  0x1e   :  { %37 = vsyncpa [#allocation16], 0 }
  0x1f   :  { %39 = vsyncpa [#allocation16 + $0x1], 0 }
  0x20   :  { %40 = vsyncpa [#allocation19], 0 }
  0x21   :  { %42 = vsyncpa [#allocation19 + $0x1], 0 }
  0x22   :  { %43 = vsyncpa [#allocation5], 0 }
  0x23   :  { %45 = vsyncpa [#allocation5 + $0x1], 0  ;;  %s4468_s1 = smov 0   ;;  %s4470_s22 = smov 0  }
  0x24   :  { %s4472_s23 = smov 0   ;;  %s4474_s24 = smov 0  }
  0x25   :  { %s4476_s2 = smov 0   ;;  %s4478_s25 = smov 0  }
  0x26   :  { %s4480_s3 = smov 0   ;;  %s4482_s26 = smov 0  }
  0x27   :  { %s4484_s27 = smov 0   ;;  %s4486_s28 = smov 0  }
  0x28   :  { %s4488_s4 = smov 0  }
  0x29 LB: > { %5542 = sst [smem:[#allocation29_spill]] %s4298_s22  ;;  %s4522_s29 = sadd.s32 4294967295, %s4334_s4   ;;  %s4334_s4 = sphi %s4488_s4, %s51_s4   ;;  %s4330_s28 = sphi %s4486_s28, %s5657_s28   ;;  %s4326_s27 = sphi %s4484_s27, %s5656_s27   ;;  %s4322_s26 = sphi %s4482_s26, %s5655_s26   ;;  %s4318_s3 = sphi %s4480_s3, %s5654_s3   ;;  %s4314_s25 = sphi %s4478_s25, %s5653_s25   ;;  %s4310_s2 = sphi %s4476_s2, %s5652_s2   ;;  %s4306_s24 = sphi %s4474_s24, %s5651_s24   ;;  %s4302_s23 = sphi %s4472_s23, %s5650_s23   ;;  %s4298_s22 = sphi %s4470_s22, %s5649_s22   ;;  %s4294_s1 = sphi %s4468_s1, %s5648_s1  }
  0x2a   : > { %5543 = sst [smem:[#allocation30_spill]] %s4302_s23  ;;  %s3292_s30 = sadd.s32 4294967294, %s4334_s4  }
  0x2b   : > { %5544 = sst [smem:[#allocation31_spill]] %s4306_s24  ;;  %p77_p0 = scmp.ne.s32.totalorder %s4314_s25, %s4310_s2 }
  0x2c   : > { %5545 = sst [smem:[#allocation32_spill]] %s4310_s2  ;;  %p78_p1 = scmp.eq.s32.totalorder %s4334_s4, 0 }
  0x2d   : > { %5546 = sst [smem:[#allocation33_spill]] %s4314_s25  ;;  %p83_p2 = scmp.ne.s32.totalorder %s4310_s2, %s4306_s24 }
  0x2e   : > { %5547 = sst [smem:[#allocation34_spill]] %s4318_s3  ;;  %p84_p3 = scmp.eq.s32.totalorder %s4522_s29, 0 }
  0x2f   : > { %5548 = sst [smem:[#allocation35_spill]] %s4322_s26  ;;  %p4536_p4 = por %p78_p1, %p77_p0 }
  0x30   : > { %5549 = sst [smem:[#allocation36_spill]] %s4326_s27  ;;  %p4541_p5 = por %p84_p3, %p83_p2 }
  0x31   : > { %5550 = sst [smem:[#allocation37_spill]] %s4330_s28  ;;  %p207_p6 = scmp.ne.s32.totalorder %s4302_s23, %s4298_s22 }
  0x32   : > { %5551 = sst [smem:[#allocation38_spill]] %s4334_s4  ;;  %p213_p7 = scmp.ne.s32.totalorder %s4298_s22, %s4294_s1 }
  0x33   : > { %5552 = sst [smem:[#allocation39_spill]] %s4522_s29  ;;  %p601_p8 = scmp.eq.s32.totalorder %s4522_s29, 3 }
  0x34   : > { %s5554_s18 = scalar_select %p4541_p5, 1, 0 }
  0x35   : > { %p4549_p9 = por %p207_p6, %p78_p1  ;;  %p607_p10 = scmp.eq.s32.totalorder %s3292_s30, 3 }
  0x36   : > { %5555 = sst [smem:[#allocation40_spill]] %s5554_s18  ;;  %p4553_p11 = por %p213_p7, %p84_p3 }
  0x37   : > { %s5556_s21 = scalar_select %p4549_p9, 1, 0 }
  0x38   : > { %s5557_s0 = scalar_select %p4553_p11, 1, 0 }
  0x39   : > { %p4560_p12 = por %p601_p8, %p77_p0  ;;  %p4564_p13 = por %p607_p10, %p83_p2 }
  0x3a   : > { %5558 = sst [smem:[#allocation41_spill]] %s5557_s0  ;;  %p5491_p5 = scmp.lt.s32.totalorder %s4334_s4, 4 }
  0x3b   : > { %s5559_s24 = scalar_select %p4560_p12, 1, 0 }
  0x3c   : > { %s5561_s19 = scalar_select %p4564_p13, 1, 0 }
  0x3d   : > { %5560 = sst [smem:[#allocation42_spill]] %s5559_s24  ;;  %s4570_s1 = sand.u32 1, %s4314_s25  }
  0x3e   : > { %5562 = sst [smem:[#allocation43_spill]] %s5561_s19  ;;  %s4573_s17 = sand.u32 1, %s4334_s4  }
  0x3f   : > { %p4579_p1 = pnand %p5491_p5, %p4536_p4  ;;  %s3297_s16 = sshll.u32 %s4330_s28, 4 }
  0x40   : > { %s657_s24 = scalar_lea.vmem [#allocation6], %s4570_s1  ;;  %s5564_s19 = sld [smem:[#allocation51_spill]] }
  0x41   : > { %s5563_s30 = scalar_select %p4579_p1, 1, 0 }
  0x42   : > { %s664_s8 = sshll.u32 %s657_s24, 4  ;;  %s5565_s0 = sld [smem:[#allocation52_spill]]  ;;  %s4590_s8 = int_to_ptr.vmem [resolvable:$true] %s664_s8 }
  0x43   : > { %s5494_s29 = scalar_lea.sflag [#allocation7], %s4573_s17  ;;  %p4602_p2 = pneg %p4579_p1 }
  0x45   : > { %s5566_s24 = scalar_select %p4602_p2, 1, 0 }
  0x46   : > { %s4588_s3 = scalar_lea.hbm %s5564_s19, %s3297_s16  ;;  %s3867_s2 = scalar_lea.hbm %s5564_s19, 32 }
  0x47   : > { %s3862_s18 = scalar_lea.hbm %s4588_s3, 16  ;;  %p3868_p6 = scmp.lt.u32.totalorder %s4588_s3, %s5564_s19 }
  0x48   : > { %s4595_s22 = scalar_lea.hbm %s5565_s0, %s3297_s16  ;;  %p3863_p0 = scmp.ne.s32.totalorder %s4588_s3, %s3862_s18 }
  0x49   : > { %p3869_p7 = scmp.lt.u32.totalorder %s3867_s2, %s3862_s18  ;;  %p3871_p10 = scmp.lt.u32.totalorder %s3862_s18, %s4588_s3 }
  0x4a   : > { %p3865_p3 = pnand %p4602_p2, %p3863_p0 }
  0x4b   : > { %p3870_p8 = por %p3869_p7, %p3868_p6 }
  0x4c   : > { %p3866_p4 = pneg %p3865_p3 }
  0x4d   : > { %p3872_p5 = por %p3871_p10, %p3870_p8 }
  0x4f   : > { %p3873_p13 = pnand %p3872_p5, %p3866_p4 }
  0x51   : > { %3876 = shalt.err (!%p3873_p13)
}
  0x52   : > { %s3877_s16 = scalar_lea.vmem %s4590_s8, 16  ;;  %s4336_s20 = smov [#allocation6]  }
  0x53   : > { %p3878_p0 = scmp.ne.s32.totalorder %s4590_s8, %s3877_s16  ;;  %s3882_s6 = sshll.u32 %s4336_s20, 4  ;;  %s3883_s6 = int_to_ptr.vmem [resolvable:$false] %s3882_s6 }
  0x54   : > { %s3884_s14 = scalar_lea.vmem %s3883_s6, 32  ;;  %p3885_p11 = scmp.lt.s32.totalorder %s4590_s8, %s3883_s6 }
  0x55   : > { %p3880_p3 = pnand %p3878_p0, %p4602_p2  ;;  %p3886_p9 = scmp.lt.s32.totalorder %s3884_s14, %s3877_s16 }
  0x57   : > { %p3881_p12 = pneg %p3880_p3  ;;  %p3887_p6 = por %p3886_p9, %p3885_p11 }
  0x59   : > { %p3888_p7 = pnand %p3887_p6, %p3881_p12 }
  0x5b   : > { %3891 = shalt.err (!%p3888_p7)
}
  0x5c   : > { %3675 = dma.hbm_to_vmem [thread:$0]  (!%p4579_p1), %s4588_s3, 16, %s4590_s8, %s5494_s29  }
  0x5d   : > { %p5567_p5 = scmp.ne.s32.totalorder %s5556_s21, 0  ;;  %p5568_p9 = scmp.lt.s32.totalorder %s4334_s4, 4 }
  0x5e   : > { %p3313_p12 = scmp.ge.s32.totalorder %s4334_s4, 1  ;;  %p892_p13 = scmp.lt.s32.totalorder %s4334_s4, 5 }
  0x5f   : > { %p4631_p11 = pnand %p5568_p9, %p5567_p5  ;;  %s60_s15 = sadd.s32 1, %s4326_s27 }
  0x60   : > { %p4637_p4 = pnand %p3313_p12, %p892_p13  ;;  %p61_p8 = scmp.ge.s32.totalorder %s60_s15, 2 }
  0x61   : > { %s5569_s18 = scalar_select %p4631_p11, 1, 0 }
  0x62   : > { %s5570_s2 = scalar_select %p4637_p4, 1, 0 }
  0x63   : > { %s4643_s26 = sand.u32 1, %s4302_s23   ;;  %s4646_s8 = sshll.u32 %s4326_s27, 4 }
  0x64   : > { %5571 = sst [smem:[#allocation44_spill]] %s5570_s2  ;;  %s5659_s15 = smov (%p61_p8, %s60_s15), 0 }
  0x65   : > { %5572 = sst [smem:[#allocation45_spill]] %s5659_s15  ;;  %s5573_s3 = sadd.s32 1, %s4330_s28 }
  0x66   : > { %s5661_s3 = smov (!%p61_p8, %s5573_s3), %s4330_s28  ;;  %s197_s21 = ssub.s32 %s4326_s27, %s5659_s15 }
  0x67   : > { %p65_p10 = scmp.ge.s32.totalorder %s5661_s3, 2  ;;  %p198_p0 = scmp.eq.s32.totalorder %s197_s21, 0 }
  0x68   : > { %s5574_s5 = sld [smem:[#allocation54_spill]]  ;;  %s699_s14 = scalar_lea.vmem [#allocation9], %s4643_s26 }
  0x69   : > { %s706_s29 = sshll.u32 %s699_s14, 4  ;;  %s5663_s3 = smov (%p65_p10, %s5661_s3), 0  ;;  %s4671_s29 = int_to_ptr.vmem [resolvable:$true] %s706_s29 }
  0x6a   : > { %5575 = sst [smem:[#allocation46_spill]] %s5663_s3  ;;  %s5576_s19 = sadd.s32 1, %s4302_s23 }
  0x6b   : > { %s4667_s4 = scalar_select %p198_p0, %s4302_s23, %s5576_s19  }
  0x6c   : > { %s67_s15 = ssub.s32 %s4330_s28, %s5663_s3  ;;  %p4682_p7 = pneg %p4631_p11 }
  0x6d   : > { %5577 = sst [smem:[#allocation47_spill]] %s4667_s4  ;;  %p4673_p3 = scmp.eq.s32.totalorder %s67_s15, 0 }
  0x6e   : > { %s4659_s6 = scalar_lea.hbm %s5574_s5, %s4646_s8  ;;  %s3897_s4 = scalar_lea.hbm %s5574_s5, 32 }
  0x6f   : > { %s5578_s21 = scalar_select %p4673_p3, 1, 0 }
  0x70   : > { %s3892_s20 = scalar_lea.hbm %s4659_s6, 16  ;;  %p3898_p12 = scmp.lt.u32.totalorder %s4659_s6, %s5574_s5 }
  0x71   : > { %p3893_p6 = scmp.ne.s32.totalorder %s4659_s6, %s3892_s20  ;;  %p3899_p13 = scmp.lt.u32.totalorder %s3897_s4, %s3892_s20 }
  0x72   : > { %s5579_s14 = scalar_select %p4682_p7, 1, 0 }
  0x73   : > { %p3895_p5 = pnand %p4682_p7, %p3893_p6  ;;  %p3900_p8 = por %p3899_p13, %p3898_p12 }
  0x74   : > { %p3901_p10 = scmp.lt.u32.totalorder %s3892_s20, %s4659_s6 }
  0x75   : > { %p3896_p9 = pneg %p3895_p5 }
  0x76   : > { %p3902_p0 = por %p3901_p10, %p3900_p8 }
  0x78   : > { %p3903_p4 = pnand %p3902_p0, %p3896_p9 }
  0x7a   : > { %3906 = shalt.err (!%p3903_p4)
}
  0x7b   : > { %s3907_s16 = scalar_lea.vmem %s4671_s29, 16  ;;  %s4337_s3 = smov [#allocation9]  }
  0x7c   : > { %p3908_p6 = scmp.ne.s32.totalorder %s4671_s29, %s3907_s16  ;;  %s3912_s19 = sshll.u32 %s4337_s3, 4  ;;  %s3913_s19 = int_to_ptr.vmem [resolvable:$false] %s3912_s19 }
  0x7d   : > { %s3914_s23 = scalar_lea.vmem %s3913_s19, 32  ;;  %p3915_p2 = scmp.lt.s32.totalorder %s4671_s29, %s3913_s19 }
  0x7e   : > { %p3910_p5 = pnand %p3908_p6, %p4682_p7  ;;  %p3916_p3 = scmp.lt.s32.totalorder %s3914_s23, %s3907_s16 }
  0x80   : > { %p3911_p1 = pneg %p3910_p5  ;;  %p3917_p12 = por %p3916_p3, %p3915_p2 }
  0x82   : > { %p3918_p13 = pnand %p3917_p12, %p3911_p1 }
  0x84   : > { %3921 = shalt.err (!%p3918_p13)
}
  0x85   : > { %s5580_s4 = scalar_lea.sflag [#allocation10], %s4573_s17  ;;  %s5581_s20 = sadd.s32 1, %s4314_s25 }
  0x86   : > { %3681 = dma.hbm_to_vmem [thread:$0]  (!%p4631_p11), %s4659_s6, 16, %s4671_s29, %s5580_s4  }
  0x87   : > { %p5582_p4 = scmp.ne.s32.totalorder %s5578_s21, 0  ;;  %s5584_s9 = sld [smem:[#allocation58_spill]] }
  0x88   : > { %s749_s23 = scalar_lea.vmem [#allocation12], %s4643_s26  ;;  %s5509_s2 = scalar_lea.sflag [#allocation13], %s4573_s17 }
  0x89   : > { %s4712_s16 = scalar_select %p5582_p4, %s4314_s25, %s5581_s20  }
  0x8a   : > { %s756_s5 = sshll.u32 %s749_s23, 4  ;;  %s757_s5 = int_to_ptr.vmem [resolvable:$true] %s756_s5 }
  0x8b   : > { %5583 = sst [smem:[#allocation48_spill]] %s4712_s16 }
  0x8d   : > { %s4718_s19 = scalar_lea.hbm %s5584_s9, %s4646_s8  ;;  %s3927_s21 = scalar_lea.hbm %s5584_s9, 32 }
  0x8e   : > { %s3922_s12 = scalar_lea.hbm %s4718_s19, 16  ;;  %p3928_p9 = scmp.lt.u32.totalorder %s4718_s19, %s5584_s9 }
  0x8f   : > { %p3923_p1 = scmp.ne.s32.totalorder %s4718_s19, %s3922_s12  ;;  %p3929_p8 = scmp.lt.u32.totalorder %s3927_s21, %s3922_s12 }
  0x90   : > { %p3931_p0 = scmp.lt.u32.totalorder %s3922_s12, %s4718_s19 }
  0x91   : > { %p3925_p2 = pnand %p3923_p1, %p4682_p7  ;;  %p3930_p10 = por %p3929_p8, %p3928_p9 }
  0x93   : > { %p3926_p3 = pneg %p3925_p2  ;;  %p3932_p6 = por %p3931_p0, %p3930_p10 }
  0x95   : > { %p3933_p5 = pnand %p3932_p6, %p3926_p3 }
  0x97   : > { %3936 = shalt.err (!%p3933_p5)
}
  0x98   : > { %s3937_s15 = scalar_lea.vmem %s757_s5, 16  ;;  %s4338_s3 = smov [#allocation12]  }
  0x99   : > { %p3938_p12 = scmp.ne.s32.totalorder %s757_s5, %s3937_s15  ;;  %s3942_s23 = sshll.u32 %s4338_s3, 4  ;;  %s3943_s23 = int_to_ptr.vmem [resolvable:$false] %s3942_s23 }
  0x9a   : > { %s3944_s29 = scalar_lea.vmem %s3943_s23, 32  ;;  %p3945_p1 = scmp.lt.s32.totalorder %s757_s5, %s3943_s23 }
  0x9b   : > { %p3940_p13 = pnand %p3938_p12, %p4682_p7  ;;  %p3946_p2 = scmp.lt.s32.totalorder %s3944_s29, %s3937_s15 }
  0x9d   : > { %p3941_p4 = pneg %p3940_p13  ;;  %p3947_p11 = por %p3946_p2, %p3945_p1 }
  0x9f   : > { %p3948_p8 = pnand %p3947_p11, %p3941_p4 }
  0xa1   : > { %3951 = shalt.err (!%p3948_p8)
}
  0xa2   : > { %p5585_p9 = scmp.ne.s32.totalorder %s5569_s18, 0  ;;  %s5586_s11 = sld [smem:[#allocation60_spill]] }
  0xa3   : > { %s787_s4 = scalar_lea.vmem [#allocation15], %s4643_s26  ;;  %s5510_s15 = scalar_lea.sflag [#allocation16], %s4573_s17 }
  0xa4   : > { %3687 = dma.hbm_to_vmem [thread:$0]  (!%p5585_p9), %s4718_s19, 16, %s757_s5, %s5509_s2  }
  0xa5   : > { %s794_s20 = sshll.u32 %s787_s4, 4  ;;  %s795_s20 = int_to_ptr.vmem [resolvable:$true] %s794_s20 }
  0xa8   : > { %s4745_s21 = scalar_lea.hbm %s5586_s11, %s4646_s8  ;;  %s3957_s19 = scalar_lea.hbm %s5586_s11, 32 }
  0xa9   : > { %s3952_s3 = scalar_lea.hbm %s4745_s21, 16  ;;  %p3958_p0 = scmp.lt.u32.totalorder %s4745_s21, %s5586_s11 }
  0xaa   : > { %p3953_p11 = scmp.ne.s32.totalorder %s4745_s21, %s3952_s3  ;;  %p3959_p6 = scmp.lt.u32.totalorder %s3957_s19, %s3952_s3 }
  0xab   : > { %p3961_p12 = scmp.lt.u32.totalorder %s3952_s3, %s4745_s21 }
  0xac   : > { %p3955_p3 = pnand %p3953_p11, %p4682_p7  ;;  %p3960_p5 = por %p3959_p6, %p3958_p0 }
  0xae   : > { %p3956_p10 = pneg %p3955_p3  ;;  %p3962_p13 = por %p3961_p12, %p3960_p5 }
  0xb0   : > { %p3963_p4 = pnand %p3962_p13, %p3956_p10 }
  0xb2   : > { %3966 = shalt.err (!%p3963_p4)
}
  0xb3   : > { %s3967_s6 = scalar_lea.vmem %s795_s20, 16  ;;  %s4339_s4 = smov [#allocation15]  }
  0xb4   : > { %p3968_p1 = scmp.ne.s32.totalorder %s795_s20, %s3967_s6  ;;  %s3972_s2 = sshll.u32 %s4339_s4, 4  ;;  %s3973_s2 = int_to_ptr.vmem [resolvable:$false] %s3972_s2 }
  0xb5   : > { %s3974_s23 = scalar_lea.vmem %s3973_s2, 32  ;;  %p3975_p11 = scmp.lt.s32.totalorder %s795_s20, %s3973_s2 }
  0xb6   : > { %p3970_p2 = pnand %p3968_p1, %p4682_p7  ;;  %p3976_p3 = scmp.lt.s32.totalorder %s3974_s23, %s3967_s6 }
  0xb8   : > { %p3971_p8 = pneg %p3970_p2  ;;  %p3977_p9 = por %p3976_p3, %p3975_p11 }
  0xba   : > { %p3978_p0 = pnand %p3977_p9, %p3971_p8 }
  0xbc   : > { %3981 = shalt.err (!%p3978_p0)
}
  0xbd   : > { %p5587_p6 = scmp.ne.s32.totalorder %s5569_s18, 0  ;;  %s5588_s13 = sld [smem:[#allocation62_spill]] }
  0xbe   : > { %s825_s2 = scalar_lea.vmem [#allocation18], %s4643_s26  ;;  %s5511_s12 = scalar_lea.sflag [#allocation19], %s4573_s17 }
  0xbf   : > { %3693 = dma.hbm_to_vmem [thread:$0]  (!%p5587_p6), %s4745_s21, 16, %s795_s20, %s5510_s15  }
  0xc0   : > { %s832_s29 = sshll.u32 %s825_s2, 4  ;;  %s833_s29 = int_to_ptr.vmem [resolvable:$true] %s832_s29 }
  0xc3   : > { %s4772_s19 = scalar_lea.hbm %s5588_s13, %s4646_s8  ;;  %s3987_s20 = scalar_lea.hbm %s5588_s13, 32 }
  0xc4   : > { %s3982_s6 = scalar_lea.hbm %s4772_s19, 16  ;;  %p3988_p12 = scmp.lt.u32.totalorder %s4772_s19, %s5588_s13 }
  0xc5   : > { %p3983_p9 = scmp.ne.s32.totalorder %s4772_s19, %s3982_s6  ;;  %p3989_p13 = scmp.lt.u32.totalorder %s3987_s20, %s3982_s6 }
  0xc6   : > { %p3991_p1 = scmp.lt.u32.totalorder %s3982_s6, %s4772_s19 }
  0xc7   : > { %p3985_p10 = pnand %p3983_p9, %p4682_p7  ;;  %p3990_p4 = por %p3989_p13, %p3988_p12 }
  0xc9   : > { %p3986_p5 = pneg %p3985_p10  ;;  %p3992_p2 = por %p3991_p1, %p3990_p4 }
  0xcb   : > { %p3993_p8 = pnand %p3992_p2, %p3986_p5 }
  0xcd   : > { %3996 = shalt.err (!%p3993_p8)
}
  0xce   : > { %s3997_s5 = scalar_lea.vmem %s833_s29, 16  ;;  %s4340_s2 = smov [#allocation18]  }
  0xcf   : > { %p3998_p11 = scmp.ne.s32.totalorder %s833_s29, %s3997_s5  ;;  %s4002_s15 = sshll.u32 %s4340_s2, 4  ;;  %s4003_s15 = int_to_ptr.vmem [resolvable:$false] %s4002_s15 }
  0xd0   : > { %s4004_s4 = scalar_lea.vmem %s4003_s15, 32  ;;  %p4005_p9 = scmp.lt.s32.totalorder %s833_s29, %s4003_s15 }
  0xd1   : > { %p4000_p3 = pnand %p3998_p11, %p4682_p7  ;;  %p4006_p10 = scmp.lt.s32.totalorder %s4004_s4, %s3997_s5 }
  0xd3   : > { %p4001_p0 = pneg %p4000_p3  ;;  %p4007_p6 = por %p4006_p10, %p4005_p9 }
  0xd5   : > { %p4008_p12 = pnand %p4007_p6, %p4001_p0 }
  0xd7   : > { %4011 = shalt.err (!%p4008_p12)
}
  0xd8   : > { %p5589_p13 = scmp.ne.s32.totalorder %s5569_s18, 0  ;;  %s3295_s6 = sshll.u32 %s4570_s1, 3 }
  0xd9   : > { %s3296_s21 = sshll.u32 %s4330_s28, 7  ;;  %s5590_s3 = sld [smem:[#allocation49_spill]] }
  0xda   : > { %3699 = dma.hbm_to_vmem [thread:$0]  (!%p5589_p13), %s4772_s19, 16, %s833_s29, %s5511_s12  }
  0xdb   : > { %s631_s5 = scalar_lea.vmem [#allocation3], %s3295_s6  ;;  %s628_s4 = scalar_lea.sflag [#allocation4], %s4570_s1 }
  0xdc   : > { %s638_s2 = sshll.u32 %s631_s5, 4  ;;  %p5592_p5 = scmp.ne.s32.totalorder %s5566_s24, 0  ;;  %s639_s2 = int_to_ptr.vmem [resolvable:$true] %s638_s2 }
  0xdf   : > { %s5591_s9 = smov %s5590_s3  ;;  %s4800_s15 = scalar_lea.hbm %s5590_s3, %s3296_s21 }
  0xe0   : > { %s4012_s11 = scalar_lea.hbm %s4800_s15, 128  ;;  %s4017_s12 = scalar_lea.hbm %s5591_s9, 256 }
  0xe1   : > { %p4013_p6 = scmp.ne.s32.totalorder %s4800_s15, %s4012_s11  ;;  %p4018_p2 = scmp.lt.u32.totalorder %s4800_s15, %s5591_s9 }
  0xe2   : > { %p4019_p8 = scmp.lt.u32.totalorder %s4017_s12, %s4012_s11  ;;  %p4021_p3 = scmp.lt.u32.totalorder %s4012_s11, %s4800_s15 }
  0xe3   : > { %p4015_p4 = pnand %p4013_p6, %p5592_p5 }
  0xe4   : > { %p4020_p11 = por %p4019_p8, %p4018_p2 }
  0xe5   : > { %p4016_p1 = pneg %p4015_p4 }
  0xe6   : > { %p4022_p0 = por %p4021_p3, %p4020_p11 }
  0xe8   : > { %p4023_p9 = pnand %p4022_p0, %p4016_p1 }
  0xea   : > { %4026 = shalt.err (!%p4023_p9)
}
  0xeb   : > { %s4027_s6 = scalar_lea.vmem %s639_s2, 128  ;;  %s4341_s23 = smov [#allocation3]  }
  0xec   : > { %p4028_p10 = scmp.ne.s32.totalorder %s639_s2, %s4027_s6  ;;  %s4032_s3 = sshll.u32 %s4341_s23, 4  ;;  %s4033_s3 = int_to_ptr.vmem [resolvable:$false] %s4032_s3 }
  0xed   : > { %s4034_s5 = scalar_lea.vmem %s4033_s3, 256  ;;  %p4035_p4 = scmp.lt.s32.totalorder %s639_s2, %s4033_s3 }
  0xee   : > { %p4030_p12 = pnand %p4028_p10, %p5592_p5  ;;  %p4036_p13 = scmp.lt.s32.totalorder %s4034_s5, %s4027_s6 }
  0xf0   : > { %p4031_p6 = pneg %p4030_p12  ;;  %p4037_p7 = por %p4036_p13, %p4035_p4 }
  0xf2   : > { %p4038_p2 = pnand %p4037_p7, %p4031_p6 }
  0xf4   : > { %4041 = shalt.err (!%p4038_p2)
}
  0xf5   : > { %p5593_p8 = scmp.ne.s32.totalorder %s5563_s30, 0  ;;  %s674_s11 = scalar_lea.vmem [#allocation8], %s4570_s1 }
  0xf6   : > { %s681_s12 = sshll.u32 %s674_s11, 4  ;;  %s5594_s7 = sld [smem:[#allocation56_spill]]  ;;  %s682_s12 = int_to_ptr.vmem [resolvable:$true] %s681_s12 }
  0xf7   : > { %3672 = dma.hbm_to_vmem [thread:$0]  (!%p5593_p8), %s4800_s15, 128, %s639_s2, %s628_s4  }
  0xf8   : > { %s4042_s21 = scalar_lea.hbm %s4595_s22, 16  ;;  %s4047_s3 = scalar_lea.hbm %s5565_s0, 32 }
  0xf9   : > { %p4043_p7 = scmp.ne.s32.totalorder %s4595_s22, %s4042_s21  ;;  %p4048_p11 = scmp.lt.u32.totalorder %s4595_s22, %s5565_s0 }
  0xfa   : > { %p4049_p3 = scmp.lt.u32.totalorder %s4047_s3, %s4042_s21  ;;  %p4051_p9 = scmp.lt.u32.totalorder %s4042_s21, %s4595_s22 }
  0xfb   : > { %p4045_p13 = pnand %p4043_p7, %p5592_p5 }
  0xfc   : > { %s4825_s20 = scalar_lea.hbm %s5594_s7, %s4646_s8  ;;  %p4050_p0 = por %p4049_p3, %p4048_p11 }
  0xfd   : > { %p4046_p1 = pneg %p4045_p13 }
  0xfe   : > { %p4052_p10 = por %p4051_p9, %p4050_p0 }
 0x100   : > { %p4053_p12 = pnand %p4052_p10, %p4046_p1 }
 0x102   : > { %4056 = shalt.err (!%p4053_p12)
}
 0x103   : > { %s4057_s1 = scalar_lea.vmem %s682_s12, 16  ;;  %s4342_s8 = smov [#allocation8]  }
 0x104   : > { %p4058_p6 = scmp.ne.s32.totalorder %s682_s12, %s4057_s1  ;;  %s4062_s15 = sshll.u32 %s4342_s8, 4  ;;  %s4063_s15 = int_to_ptr.vmem [resolvable:$false] %s4062_s15 }
 0x105   : > { %s4064_s2 = scalar_lea.vmem %s4063_s15, 32  ;;  %p4065_p7 = scmp.lt.s32.totalorder %s682_s12, %s4063_s15 }
 0x106   : > { %p4060_p4 = pnand %p4058_p6, %p5592_p5  ;;  %p4066_p13 = scmp.lt.s32.totalorder %s4064_s2, %s4057_s1 }
 0x108   : > { %p4061_p2 = pneg %p4060_p4  ;;  %p4067_p8 = por %p4066_p13, %p4065_p7 }
 0x10a   : > { %p4068_p3 = pnand %p4067_p8, %p4061_p2 }
 0x10c   : > { %4071 = shalt.err (!%p4068_p3)
}
 0x10d   : > { %p5595_p11 = scmp.ne.s32.totalorder %s5563_s30, 0  ;;  %s5596_s9 = scalar_lea.sflag [#allocation7], %s4573_s17 }
 0x10e   : > { %s724_s24 = scalar_lea.vmem [#allocation11], %s4643_s26  ;;  %s4848_s11 = sshll.u32 %s4643_s26, 4 }
 0x10f   : > { %3678 = dma.hbm_to_vmem [thread:$0]  (!%p5595_p11), %s4595_s22, 16, %s682_s12, %s5596_s9  }
 0x110   : > { %s731_s4 = sshll.u32 %s724_s24, 4  ;;  %s4072_s19 = scalar_lea.hbm %s4825_s20, 16  ;;  %s732_s4 = int_to_ptr.vmem [resolvable:$true] %s731_s4 }
 0x111   : > { %p4073_p5 = scmp.ne.s32.totalorder %s4825_s20, %s4072_s19  ;;  %p5597_p8 = scmp.ne.s32.totalorder %s5579_s14, 0 }
 0x112   : > { %s4077_s21 = scalar_lea.hbm %s5594_s7, 32  ;;  %p4078_p9 = scmp.lt.u32.totalorder %s4825_s20, %s5594_s7 }
 0x113   : > { %p4075_p1 = pnand %p4073_p5, %p5597_p8  ;;  %p4079_p10 = scmp.lt.u32.totalorder %s4077_s21, %s4072_s19 }
 0x114   : > { %p4081_p6 = scmp.lt.u32.totalorder %s4072_s19, %s4825_s20 }
 0x115   : > { %p4076_p0 = pneg %p4075_p1  ;;  %p4080_p12 = por %p4079_p10, %p4078_p9 }
 0x117   : > { %p4082_p4 = por %p4081_p6, %p4080_p12 }
 0x119   : > { %p4083_p2 = pnand %p4082_p4, %p4076_p0 }
 0x11b   : > { %4086 = shalt.err (!%p4083_p2)
}
 0x11c   : > { %s4087_s22 = scalar_lea.vmem %s732_s4, 16  ;;  %s4343_s26 = smov [#allocation11]  }
 0x11d   : > { %p4088_p7 = scmp.ne.s32.totalorder %s732_s4, %s4087_s22  ;;  %s4092_s12 = sshll.u32 %s4343_s26, 4  ;;  %s4093_s12 = int_to_ptr.vmem [resolvable:$false] %s4092_s12 }
 0x11e   : > { %s4094_s3 = scalar_lea.vmem %s4093_s12, 32  ;;  %p4095_p11 = scmp.lt.s32.totalorder %s732_s4, %s4093_s12 }
 0x11f   : > { %p4090_p13 = pnand %p4088_p7, %p5597_p8  ;;  %p4096_p5 = scmp.lt.s32.totalorder %s4094_s3, %s4087_s22 }
 0x121   : > { %p4091_p3 = pneg %p4090_p13  ;;  %p4097_p1 = por %p4096_p5, %p4095_p11 }
 0x123   : > { %p4098_p9 = pnand %p4097_p1, %p4091_p3 }
 0x125   : > { %4101 = shalt.err (!%p4098_p9)
}
 0x126   : > { %p5598_p10 = scmp.ne.s32.totalorder %s5569_s18, 0  ;;  %s5599_s5 = scalar_lea.sflag [#allocation10], %s4573_s17 }
 0x127   : > { %s4870_s1 = sshll.u32 %s4326_s27, 8  ;;  %s767_s8 = scalar_lea.vmem [#allocation14], %s4848_s11 }
 0x128   : > { %3684 = dma.hbm_to_vmem [thread:$0]  (!%p5598_p10), %s4825_s20, 16, %s732_s4, %s5599_s5  }
 0x129   : > { %s774_s15 = sshll.u32 %s767_s8, 4  ;;  %s5600_s10 = sld [smem:[#allocation59_spill]]  ;;  %s4879_s15 = int_to_ptr.vmem [resolvable:$true] %s774_s15 }
 0x12f   : > { %s4877_s24 = scalar_lea.hbm %s5600_s10, %s4870_s1  ;;  %s4107_s30 = scalar_lea.hbm %s5600_s10, 512 }
 0x130   : > { %s4102_s19 = scalar_lea.hbm %s4877_s24, 256  ;;  %p4108_p4 = scmp.lt.u32.totalorder %s4877_s24, %s5600_s10 }
 0x131   : > { %p4103_p0 = scmp.ne.s32.totalorder %s4877_s24, %s4102_s19  ;;  %p4109_p2 = scmp.lt.u32.totalorder %s4107_s30, %s4102_s19 }
 0x132   : > { %p4111_p13 = scmp.lt.u32.totalorder %s4102_s19, %s4877_s24 }
 0x133   : > { %p4105_p12 = pnand %p4103_p0, %p5597_p8  ;;  %p4110_p7 = por %p4109_p2, %p4108_p4 }
 0x135   : > { %p4106_p6 = pneg %p4105_p12  ;;  %p4112_p3 = por %p4111_p13, %p4110_p7 }
 0x137   : > { %p4113_p11 = pnand %p4112_p3, %p4106_p6 }
 0x139   : > { %4116 = shalt.err (!%p4113_p11)
}
 0x13a   : > { %s4117_s6 = scalar_lea.vmem %s4879_s15, 256  ;;  %s4344_s23 = smov [#allocation14]  }
 0x13b   : > { %p4118_p5 = scmp.ne.s32.totalorder %s4879_s15, %s4117_s6  ;;  %s4122_s22 = sshll.u32 %s4344_s23, 4  ;;  %s4123_s22 = int_to_ptr.vmem [resolvable:$false] %s4122_s22 }
 0x13c   : > { %s4124_s26 = scalar_lea.vmem %s4123_s22, 512  ;;  %p4125_p0 = scmp.lt.s32.totalorder %s4879_s15, %s4123_s22 }
 0x13d   : > { %p4120_p1 = pnand %p4118_p5, %p5597_p8  ;;  %p4126_p12 = scmp.lt.s32.totalorder %s4124_s26, %s4117_s6 }
 0x13f   : > { %p4121_p9 = pneg %p4120_p1  ;;  %p4127_p4 = por %p4126_p12, %p4125_p0 }
 0x141   : > { %p4128_p2 = pnand %p4127_p4, %p4121_p9 }
 0x143   : > { %4131 = shalt.err (!%p4128_p2)
}
 0x144   : > { %s4345_s12 = smov 64   ;;  %s4346_s3 = smov 4  }
 0x145   : > { %s5601_s5 = scalar_lea.sflag [#allocation13], %s4573_s17  ;;  %s5602_s9 = sld [smem:[#allocation61_spill]] }
 0x146   : > { %3690 = dma.hbm_to_vmem [thread:$0]  (!%p5598_p10), %s4877_s24, 256, %s4879_s15, %s5601_s5, %s4345_s12, %s4345_s12, %s4346_s3  }
 0x147   : > { %s805_s20 = scalar_lea.vmem [#allocation17], %s4848_s11  ;;  %s5603_s21 = sld [smem:[#allocation63_spill]] }
 0x148   : > { %s812_s4 = sshll.u32 %s805_s20, 4  ;;  %s4914_s4 = int_to_ptr.vmem [resolvable:$true] %s812_s4 }
 0x14b   : > { %s4911_s19 = scalar_lea.hbm %s5602_s9, %s4870_s1  ;;  %s4137_s22 = scalar_lea.hbm %s5602_s9, 512 }
 0x14c   : > { %s4132_s23 = scalar_lea.hbm %s4911_s19, 256  ;;  %p4138_p3 = scmp.lt.u32.totalorder %s4911_s19, %s5602_s9 }
 0x14d   : > { %s4920_s6 = scalar_lea.hbm %s5603_s21, %s4870_s1  ;;  %p4133_p6 = scmp.ne.s32.totalorder %s4911_s19, %s4132_s23 }
 0x14e   : > { %p4139_p11 = scmp.lt.u32.totalorder %s4137_s22, %s4132_s23  ;;  %p4141_p1 = scmp.lt.u32.totalorder %s4132_s23, %s4911_s19 }
 0x14f   : > { %p4135_p7 = pnand %p4133_p6, %p5597_p8 }
 0x150   : > { %p4140_p5 = por %p4139_p11, %p4138_p3 }
 0x151   : > { %p4136_p13 = pneg %p4135_p7 }
 0x152   : > { %p4142_p9 = por %p4141_p1, %p4140_p5 }
 0x154   : > { %p4143_p0 = pnand %p4142_p9, %p4136_p13 }
 0x156   : > { %4146 = shalt.err (!%p4143_p0)
}
 0x157   : > { %s4147_s1 = scalar_lea.vmem %s4914_s4, 256  ;;  %s4347_s8 = smov [#allocation17]  }
 0x158   : > { %p4148_p12 = scmp.ne.s32.totalorder %s4914_s4, %s4147_s1  ;;  %s4152_s2 = sshll.u32 %s4347_s8, 4  ;;  %s4153_s2 = int_to_ptr.vmem [resolvable:$false] %s4152_s2 }
 0x159   : > { %s4154_s20 = scalar_lea.vmem %s4153_s2, 512  ;;  %p4155_p6 = scmp.lt.s32.totalorder %s4914_s4, %s4153_s2 }
 0x15a   : > { %p4150_p4 = pnand %p4148_p12, %p5597_p8  ;;  %p4156_p7 = scmp.lt.s32.totalorder %s4154_s20, %s4147_s1 }
 0x15c   : > { %p4151_p2 = pneg %p4150_p4  ;;  %p4157_p3 = por %p4156_p7, %p4155_p6 }
 0x15e   : > { %p4158_p11 = pnand %p4157_p3, %p4151_p2 }
 0x160   : > { %4161 = shalt.err (!%p4158_p11)
}
 0x161   : > { %s5604_s30 = scalar_lea.sflag [#allocation16], %s4573_s17  ;;  %s843_s29 = scalar_lea.vmem [#allocation20], %s4848_s11 }
 0x162   : > { %3696 = dma.hbm_to_vmem [thread:$0]  (!%p5598_p10), %s4911_s19, 256, %s4914_s4, %s5604_s30, %s4345_s12, %s4345_s12, %s4346_s3  }
 0x163   : > { %s850_s23 = sshll.u32 %s843_s29, 4  ;;  %s4162_s15 = scalar_lea.hbm %s4920_s6, 256  ;;  %s4949_s23 = int_to_ptr.vmem [resolvable:$true] %s850_s23 }
 0x164   : > { %p4163_p13 = scmp.ne.s32.totalorder %s4920_s6, %s4162_s15  ;;  %s4167_s26 = scalar_lea.hbm %s5603_s21, 512 }
 0x165   : > { %p4168_p9 = scmp.lt.u32.totalorder %s4920_s6, %s5603_s21  ;;  %p4169_p0 = scmp.lt.u32.totalorder %s4167_s26, %s4162_s15 }
 0x166   : > { %p4165_p5 = pnand %p4163_p13, %p5597_p8  ;;  %p4171_p4 = scmp.lt.u32.totalorder %s4162_s15, %s4920_s6 }
 0x167   : > { %p4170_p12 = por %p4169_p0, %p4168_p9 }
 0x168   : > { %p4166_p1 = pneg %p4165_p5 }
 0x169   : > { %p4172_p2 = por %p4171_p4, %p4170_p12 }
 0x16b   : > { %p4173_p6 = pnand %p4172_p2, %p4166_p1 }
 0x16d   : > { %4176 = shalt.err (!%p4173_p6)
}
 0x16e   : > { %s4177_s11 = scalar_lea.vmem %s4949_s23, 256  ;;  %s4348_s19 = smov [#allocation20]  }
 0x16f   : > { %p4178_p7 = scmp.ne.s32.totalorder %s4949_s23, %s4177_s11  ;;  %s4182_s4 = sshll.u32 %s4348_s19, 4  ;;  %s4183_s4 = int_to_ptr.vmem [resolvable:$false] %s4182_s4 }
 0x170   : > { %s4184_s8 = scalar_lea.vmem %s4183_s4, 512  ;;  %p4185_p13 = scmp.lt.s32.totalorder %s4949_s23, %s4183_s4 }
 0x171   : > { %p4180_p3 = pnand %p4178_p7, %p5597_p8  ;;  %p4186_p5 = scmp.lt.s32.totalorder %s4184_s8, %s4177_s11 }
 0x173   : > { %p4181_p11 = pneg %p4180_p3  ;;  %p4187_p9 = por %p4186_p5, %p4185_p13 }
 0x175   : > { %p4188_p0 = pnand %p4187_p9, %p4181_p11 }
 0x177   : > { %4191 = shalt.err (!%p4188_p0)
}
 0x178   : > { %s5605_s2 = scalar_lea.sflag [#allocation19], %s4573_s17  ;;  %s5606_s14 = sld [smem:[#allocation44_spill]] }
 0x179   : > { %3702 = dma.hbm_to_vmem [thread:$0]  (!%p5598_p10), %s4920_s6, 256, %s4949_s23, %s5605_s2, %s4345_s12, %s4345_s12, %s4346_s3  }
 0x17e   : > { %p5607_p8 = scmp.ne.s32.totalorder %s5606_s14, 0 }
 0x17f   : > { %s5608_s20 = sld [smem:[#allocation32_spill]] (!%p5607_p8)  ;;  %s5609_s30 = sld [smem:[#allocation40_spill]] (!%p5607_p8) }
 0x180   : > { %896 = sbr.rel (%p5607_p8) target bundleno = 7045 (0x1b85), region = 100 }
 0x185   : > { %s4980_s29 = sand.u32 (!%p5607_p8), 1, %s5608_s20   ;;  %p5610_p1 = scmp.ne.s32.totalorder (!%p5607_p8), %s5609_s30, 0 }
 0x186   : > { %s3314_s15 = sshll.u32 (!%p5607_p8), %s4980_s29, 3  ;;  %s899_s24 = scalar_lea.sflag (!%p5607_p8), [#allocation4], %s4980_s29 }
 0x187   : > { %s4984_s18 = scalar_lea.vmem [#allocation3], %s3314_s15 }
 0x188   : > { %4265 = dma.done.wait (%p5610_p1), %s899_s24, 128  }
 0x189   : > { %4267 = vsyncadd (%p5610_p1), %s899_s24, 4294967168  ;;  %s5611_s17 = sld [smem:[#allocation39_spill]] }
 0x18f   : > { %s907_s12 = sand.u32 1, %s5611_s17  }
 0x190   : > { %s908_s3 = scalar_lea.sflag [#allocation7], %s907_s12 }
 0x191   : > { %4269 = dma.done.wait (%p5610_p1), %s908_s3, 32  }
 0x192   : > { %4271 = vsyncadd (%p5610_p1), %s908_s3, 4294967264  ;;  %s5612_s23 = sld [smem:[#allocation29_spill]]  ;;  %s924_s1 = scalar_lea.sflag [#allocation10], %s907_s12 }
 0x193   : > { %s5613_s22 = sld [smem:[#allocation41_spill]] }
 0x198   : > { %s4997_s26 = sand.u32 1, %s5612_s23  }
 0x199   : > { %p5614_p10 = scmp.ne.s32.totalorder %s5613_s22, 0 }
 0x19b   : > { %4273 = dma.done.wait (%p5614_p10), %s924_s1, 32  }
 0x19c   : > { %4275 = vsyncadd (%p5614_p10), %s924_s1, 4294967264  ;;  %s940_s4 = scalar_lea.sflag [#allocation13], %s907_s12 }
 0x19d   : > { %4277 = dma.done.wait (%p5614_p10), %s940_s4, 272  }
 0x19e   : > { %4279 = vsyncadd (%p5614_p10), %s940_s4, 4294967024  ;;  %s5012_s2 = sshll.u32 %s4997_s26, 4  ;;  %s957_s20 = scalar_lea.sflag [#allocation16], %s907_s12 }
 0x19f   : > { %4281 = dma.done.wait (%p5614_p10), %s957_s20, 272  }
 0x1a0   : > { %4283 = vsyncadd (%p5614_p10), %s957_s20, 4294967024  ;;  %s5021_s15 = scalar_lea.vmem [#allocation17], %s5012_s2  ;;  %s974_s24 = scalar_lea.sflag [#allocation19], %s907_s12 }
 0x1a1   : > { %4285 = dma.done.wait (%p5614_p10), %s974_s24, 272  }
 0x1a2   : > { %4287 = vsyncadd (%p5614_p10), %s974_s24, 4294967024  ;;  %s5615_s3 = sld [smem:[#allocation35_spill]]  ;;  %s5616_s23 = sld [smem:[#allocation34_spill]] }
 0x1a3   : > { %s5618_s30 = sld [smem:[#allocation53_spill]]  ;;  %s5619_s11 = sld [smem:[#allocation50_spill]] }
 0x1a4   : > { %s5620_s10 = sld [smem:[#allocation55_spill]]  ;;  %s5621_s27 = sld [smem:[#allocation57_spill]] }
 0x1a5   : > { %s5622_s8 = sld [smem:[#allocation65_spill]]  ;;  %s1122_s25 = scalar_lea.vmem [#allocation21], %s4980_s29 }
 0x1a8   : > { %s3318_s1 = sshll.u32 %s5615_s3, 1  ;;  %p1129_p12 = scmp.lt.s32.totalorder %s5616_s23, 1 }
 0x1a9   : > { %p1124_p4 = scmp.lt.s32.totalorder %s3318_s1, 3  ;;  %p3330_p2 = scmp.ne.s32.totalorder %s5616_s23, 0 }
 0x1aa   : > { %s5031_s4 = scalar_select %p1129_p12, %s5616_s23, 1 }
 0x1ab   : > { %s5665_s1 = smov (!%p1124_p4, %s3318_s1), 3  ;;  %v1168_v0 = vld [vmem:[%s4984_s18] sm:$0xff] (!%p3330_p2)  ;;  %vm1169_vm0 = vcmask (!%p3330_p2), 261120  }
 0x1ac   : > { %s3388_s12 = sshll.u32 %s5031_s4, 4  ;;  %s3319_s5 = sshll.u32 %s5665_s1, 3  ;;  %1170 = vst.msk [vmem:[#allocation2] sm:$0xff] (!%p3330_p2), %vm1169_vm0, %v1168_v0 }
 0x1ad   : > { %s1133_s14 = scalar_lea.vmem %s5618_s30, %s3388_s12  ;;  %s5044_s0 = scalar_lea.vmem %s5619_s11, %s3319_s5 }
 0x1ae   : > { %s5049_s13 = scalar_lea.vmem %s5620_s10, %s3388_s12  ;;  %s5054_s20 = scalar_lea.vmem %s5621_s27, %s3388_s12 }
 0x1af   : > { %s3391_s1 = sshll.u32 %s5031_s4, 5  ;;  %s5623_s5 = sld [smem:[#allocation66_spill]] }
 0x1b0   : > { %s5060_s30 = scalar_lea.vmem %s5622_s8, %s3391_s1  ;;  %s3328_s19 = sshll.u32 %s5031_s4, 2 }
 0x1b1   : > { %s5624_s10 = sld [smem:[#allocation67_spill]]  ;;  %s5625_s27 = sld [smem:[#allocation68_spill]] }
 0x1b2   : > { %s985_s12 = scalar_lea.vmem [#allocation20], %s5012_s2  ;;  %1167 = sbr.rel (%p3330_p2) target bundleno = 441 (0x1b9), region = 148 }
 0x1b5   : > { %s1154_s11 = scalar_lea.vmem %s5623_s5, %s5031_s4 }
 0x1b7   : > { %s5070_s9 = scalar_lea.vmem %s5624_s10, %s3328_s19  ;;  %s5075_s21 = scalar_lea.vmem %s5625_s27, %s3328_s19 }
 0x1b9 PF: > { %v3812_v1 = vld [vmem:[%s1133_s14] sm:$0xff]   ;;  %v4349_v2 = vmov 0.0   ;;  %v3813_v3 = vld [vmem:[%s1133_s14 + $0x8] sm:$0xff]   ;;  %vm4350_vm1 = vmmov 0   ;;  %vm1236_vm2 = vcmask 261120   ;;  %s5626_s16 = scalar_lea.vmem [#allocation9], %s4997_s26 }
 0x1ba   : > { %3457 = vmatprep.subr.bf16.mxu1 %v4349_v2  ;;  %3471 = vmatprep.subr.bf16.mxu0 %v4349_v2  ;;  %v5085_v4 = vld [vmem:[#allocation2] sm:$0xff]  ;;  %s4351_s18 = smov 120   ;;  %s4352_s14 = smov 96   ;;  %vm1290_vm3 = vcmask 64512   ;;  %vm1354_vm4 = vcmask 1043456   ;;  %vm2129_vm5 = vcmask 130048  }
 0x1bb   : > { %3458 = vmatpush3.bf16.msra.mxu1 %v3812_v1  ;;  %3461 = vmatprep.mubr.msk.bf16.mxu1 %vm4350_vm1, %v4349_v2  ;;  %v1217_v5 = vpack.c.bf16 %v5085_v4, %v5085_v4  ;;  %v3331_v6 = vld [vmem:[%s5626_s16] ss:$0 sm:$0xff]  ;;  %s4353_s17 = smov 88   ;;  %s5627_s23 = scalar_lea.vmem [#allocation6], %s4980_s29  ;;  %v1177_v55 = vld [vmem:[%s5049_s13 + $0x4] sm:$0xf] }
 0x1bc   : > { %3459 = vmatprep.subr.bf16.mxu1 %v4349_v2  ;;  %3473 = vmatprep.mubr.msk.bf16.mxu0 %vm4350_vm1, %v4349_v2  ;;  %v5119_v18 = vld [vmem:[%s5627_s23] ss:$0 sm:$0xff]  ;;  %s4354_s1 = smov 64   ;;  %s4355_s22 = smov 56   ;;  %v1514_v56 = vsel %vm1354_vm4, %v1177_v55, 0  ;;  %vm2829_vm6 = vcmask 523264  }
 0x1bd   : > { %s4356_s24 = smov 112   ;;  %s4357_s8 = smov 80   ;;  %v1176_v53 = vld [vmem:[%s5049_s13] sm:$0xf] }
 0x1be   : > { %v1560_v54 = vsel %vm1354_vm4, %v1176_v53, 0  ;;  %s4358_s3 = smov 72   ;;  %s4359_s6 = smov 104  }
 0x1bf   : > { %3460 = vmatpush3.bf16.msra.mxu1 %v3813_v3  ;;  %s4360_s5 = smov 48   ;;  %s4361_s19 = smov 40  }
 0x1c0   : > { %3465 = vmatprep.subr.bf16.mxu1 %v4349_v2  ;;  %s5628_s7 = scalar_lea.vmem [#allocation11], %s4997_s26  ;;  %s5634_s28 = scalar_lea.vmem [#allocation18], %s4997_s26 }
 0x1c2   : > { %3462 = vmatmul.mubr.msk.bf16.vlgmr.msra.gmra.mrb[0].mxu1 %vm1236_vm2, %v1217_v5 }
 0x1c3   : > { %3467 = vmatprep.mubr.msk.bf16.mxu1 %vm4350_vm1, %v4349_v2 }
 0x295   : > { %v1274_v7 = vpop.f32.mrb[0].mxu1 }
 0x296   : > { %v1275_v8 = vadd.f32 %v3331_v6, %v1274_v7  ;;  %v3463_v9 = vpop.f32.mrb[1].mxu1 }
 0x297   : > { %v1277_v10 = vpop.f32.mrb[2].mxu1 }
 0x298   : > { %v5098_v11 = vpack.c.bf16 %v1275_v8, %v1275_v8  ;;  %v3464_v12 = vpop.f32.mrb[3].mxu1 }
 0x29a   : > { %1399 = vrot.lane.b32.xlu1 %v5098_v11, %s4351_s18  ;;  %1288 = vrot.lane.b32.xlu0 %v5098_v11, %s4352_s14 }
 0x29e   : > { %1401 = vrot.lane.b32.xlu0 %v5098_v11, %s4353_s17 }
 0x30c   : > { %v1289_v13 = vpop.permute.xlu0 %1288  ;;  %v1400_v17 = vpop.permute.xlu1 %1399 }
 0x30d   : > { %v1295_v14 = vsel %vm1290_vm3, %v1289_v13, 0 }
 0x30e   : > { %3466 = vmatpush3.bf16.xpose.msra.mxu1 %v1295_v14 }
 0x30f   : > { %3477 = vmatprep.subr.bf16.mxu1 %v4349_v2 }
 0x310   : > { %v1402_v15 = vpop.permute.xlu0 %1401 }
 0x311   : > { %v1407_v16 = vsel %vm1290_vm3, %v1402_v15, 0 }
 0x315   : > { %3468 = vmatmul.mubr.msk.bf16.vlgmr.msra.gmra.mrb[4].mxu1 %vm1290_vm3, %v5098_v11 }
 0x316   : > { %3478 = vmatpush3.bf16.xpose.msra.mxu1 %v1407_v16  ;;  %3479 = vmatprep.mubr.msk.bf16.mxu1 %vm4350_vm1, %v4349_v2 }
 0x317   : > { %3489 = vmatprep.subr.bf16.mxu1 %v4349_v2 }
 0x31d   : > { %3480 = vmatmul.mubr.msk.bf16.vlgmr.msra.gmra.mrb[8].mxu1 %vm1290_vm3, %v1400_v17 }
 0x31e   : > { %3491 = vmatprep.mubr.msk.bf16.mxu1 %vm4350_vm1, %v4349_v2  ;;  %3490 = vmatpush3.bf16.msra.mxu1 %v1514_v56 }
 0x31f   : > { %3501 = vmatprep.subr.bf16.mxu1 %v4349_v2 }
 0x3e8   : > { %v1331_v19 = vpop.f32.mrb[4].mxu1 }
 0x3e9   : > { %v1332_v20 = vadd.f32 %v5119_v18, %v1331_v19  ;;  %v3469_v21 = vpop.f32.mrb[5].mxu1 }
 0x3ea   : > { %v1334_v22 = vpop.f32.mrb[6].mxu1 }
 0x3eb   : > { %v3470_v23 = vpop.f32.mrb[7].mxu1  ;;  %v1337_v24 = vsel %vm1290_vm3, %v1332_v20, -inf }
 0x3ec   : > { %1338 = vmax.xlane.f32.xlu1 %v1337_v24 }
 0x3f0   : > { %v1443_v25 = vpop.f32.mrb[8].mxu1 }
 0x3f1   : > { %v1444_v26 = vadd.f32 %v5119_v18, %v1443_v25  ;;  %v3481_v27 = vpop.f32.mrb[9].mxu1 }
 0x3f2   : > { %v1446_v28 = vpop.f32.mrb[10].mxu1 }
 0x3f3   : > { %v3482_v29 = vpop.f32.mrb[11].mxu1  ;;  %v1449_v30 = vsel %vm1290_vm3, %v1444_v26, -inf }
 0x3f4   : > { %1450 = vmax.xlane.f32.xlu0 %v1449_v30 }
 0x479   : > { %v1339_v31 = vpop.xlane.xlu1 %1338 }
 0x47a   : > { %v1340_v32 = vsub.f32 %v1332_v20, %v1339_v31 }
 0x47c   : > { %v1341_v33 = vmul.f32 1.442695, %v1340_v32 }
 0x47e   : > { %3824 = vpow2.f32 %v1341_v33 }
 0x481   : > { %v1451_v34 = vpop.xlane.xlu0 %1450 }
 0x482   : > { %v1452_v35 = vsub.f32 %v1444_v26, %v1451_v34 }
 0x484   : > { %v1453_v36 = vmul.f32 1.442695, %v1452_v35 }
 0x486   : > { %3826 = vpow2.f32 %v1453_v36 }
 0x488   : > { %v3825_v37 = vpop.eup %3824 }
 0x489   : > { %v1343_v38 = vsel %vm1290_vm3, %v3825_v37, 0.0 }
 0x48a   : > { %1344 = vadd.xlane.f32.xlu0 %v1343_v38 }
 0x490   : > { %v3827_v39 = vpop.eup %3826 }
 0x491   : > { %v1455_v40 = vsel %vm1290_vm3, %v3827_v39, 0.0 }
 0x492   : > { %1456 = vadd.xlane.f32.xlu1 %v1455_v40 }
 0x4a0   : > { %1349 = vrot.lane.b32.xlu0 %v5098_v11, %s4354_s1 }
 0x4a3   : > { %1461 = vrot.lane.b32.xlu1 %v5098_v11, %s4355_s22 }
 0x4a4   : > { %1602 = vrot.lane.b32.xlu0 %v5098_v11, %s4356_s24 }
 0x4a7   : > { %1604 = vrot.lane.b32.xlu1 %v5098_v11, %s4357_s8 }
 0x517   : > { %v1345_v41 = vpop.xlane.xlu0 %1344 }
 0x518   : > { %3828 = vrcp.f32 %v1345_v41 }
 0x51b   : > { %v1350_v42 = vpop.permute.xlu0 %1349 }
 0x51c   : > { %v1356_v43 = vsel %vm1354_vm4, %v1350_v42, 0 }
 0x51d   : > { %3472 = vmatpush3.bf16.msra.mxu0 %v1356_v43 }
 0x51e   : > { %3483 = vmatprep.subr.bf16.mxu0 %v4349_v2 }
 0x51f   : > { %v1457_v44 = vpop.xlane.xlu1 %1456  ;;  %v1603_v7 = vpop.permute.xlu0 %1602 }
 0x520   : > { %3830 = vrcp.f32 %v1457_v44 }
 0x522   : > { %v3829_v45 = vpop.eup %3828 }
 0x523   : > { %v1347_v46 = vmul.f32 %v3829_v45, %v3825_v37  ;;  %v1462_v47 = vpop.permute.xlu1 %1461 }
 0x524   : > { %v1467_v49 = vsel %vm1354_vm4, %v1462_v47, 0 }
 0x525   : > { %v1348_v48 = vpack.c.bf16 %v1347_v46, %v1347_v46 }
 0x527   : > { %3474 = vmatmul.mubr.msk.bf16.vlgmr.msra.gmra.mrb[0].mxu0 %vm1290_vm3, %v1348_v48  ;;  %v1605_v62 = vpop.permute.xlu1 %1604 }
 0x528   : > { %3484 = vmatpush3.bf16.msra.mxu0 %v1467_v49  ;;  %3485 = vmatprep.mubr.msk.bf16.mxu0 %vm4350_vm1, %v4349_v2  ;;  %v1610_v5 = vsel %vm1290_vm3, %v1605_v62, 0 }
 0x529   : > { %3495 = vmatprep.subr.bf16.mxu0 %v4349_v2 }
 0x52a   : > { %v3831_v50 = vpop.eup %3830 }
 0x52b   : > { %v1459_v51 = vmul.f32 %v3831_v50, %v3827_v39  ;;  %v1178_v39 = vld [vmem:[%s5049_s13 + $0x8] sm:$0xf] }
 0x52c   : > { %v1717_v40 = vsel %vm1354_vm4, %v1178_v39, 0  ;;  %v5226_v39 = vld [vmem:[%s5070_s9] sm:$0x7]  ;;  %s5633_s9 = scalar_lea.vmem [#allocation8], %s4980_s29 }
 0x52d   : > { %v1460_v52 = vpack.c.bf16 %v1459_v51, %v1459_v51 }
 0x52f   : > { %3486 = vmatmul.mubr.msk.bf16.vlgmr.msra.gmra.mrb[4].mxu0 %vm1290_vm3, %v1460_v52 }
 0x530   : > { %3497 = vmatprep.mubr.msk.bf16.mxu0 %vm4350_vm1, %v4349_v2  ;;  %3496 = vmatpush3.bf16.msra.mxu0 %v1560_v54 }
 0x531   : > { %3507 = vmatprep.subr.bf16.mxu0 %v4349_v2 }
 0x5fa   : > { %v1392_v57 = vpop.f32.mrb[0].mxu0 }
 0x5fb   : > { %v1398_v58 = vpack.c.bf16 %v1392_v57, %v1392_v57  ;;  %v3475_v59 = vpop.f32.mrb[1].mxu0 }
 0x5fc   : > { %v1395_v60 = vpop.f32.mrb[2].mxu0 }
 0x5fd   : > { %v3476_v61 = vpop.f32.mrb[3].mxu0  ;;  %3498 = vmatmul.mubr.msk.bf16.vlgmr.msra.gmra.mrb[8].mxu0 %vm1290_vm3, %v1398_v58 }
 0x5fe   : > { %3509 = vmatprep.mubr.msk.bf16.mxu0 %vm4350_vm1, %v4349_v2 }
 0x602   : > { %v1503_v63 = vpop.f32.mrb[4].mxu0 }
 0x603   : > { %v1509_v0 = vpack.c.bf16 %v1503_v63, %v1503_v63  ;;  %v3487_v1 = vpop.f32.mrb[5].mxu0 }
 0x604   : > { %v1506_v3 = vpop.f32.mrb[6].mxu0 }
 0x605   : > { %v3488_v6 = vpop.f32.mrb[7].mxu0  ;;  %3492 = vmatmul.mubr.msk.bf16.vlgmr.msra.gmra.mrb[12].mxu1 %vm1290_vm3, %v1509_v0  ;;  %v1179_v3 = vld [vmem:[%s5049_s13 + $0xc] sm:$0xf]  ;;  %s5629_s13 = scalar_lea.vmem [#allocation14], %s5012_s2 }
 0x606   : > { %3502 = vmatpush3.bf16.xpose.msra.mxu1 %v1610_v5  ;;  %3503 = vmatprep.mubr.msk.bf16.mxu1 %vm4350_vm1, %v4349_v2  ;;  %v1875_v5 = vsel %vm1354_vm4, %v1179_v3, 0  ;;  %s5630_s10 = smov %s5629_s13 }
 0x607   : > { %3513 = vmatprep.subr.bf16.mxu1 %v4349_v2 }
 0x60d   : > { %3504 = vmatmul.mubr.msk.bf16.vlgmr.msra.gmra.mrb[16].mxu1 %vm1290_vm3, %v1603_v7 }
 0x60e   : > { %3515 = vmatprep.mubr.msk.bf16.mxu1 %vm4350_vm1, %v4349_v2  ;;  %3514 = vmatpush3.bf16.msra.mxu1 %v1717_v40  ;;  %v5229_v40 = vld [vmem:[%s5075_s21] sm:$0x7] }
 0x60f   : > { %3525 = vmatprep.subr.bf16.mxu1 %v4349_v2 }
 0x6d0   : > { %v1596_v8 = vpop.f32.mrb[8].mxu0 }
 0x6d1   : > { %v3499_v9 = vpop.f32.mrb[9].mxu0 }
 0x6d2   : > { %v1599_v10 = vpop.f32.mrb[10].mxu0 }
 0x6d3   : > { %v3500_v12 = vpop.f32.mrb[11].mxu0 }
 0x6d4   : > { %v3348_v12 = vld [vmem:[%s5628_s7] ss:$0 sm:$0xff] }
 0x6d8   : > { %v1550_v13 = vpop.f32.mrb[12].mxu1 }
 0x6d9   : > { %v5160_v14 = vadd.f32 %v1596_v8, %v1550_v13  ;;  %v3493_v15 = vpop.f32.mrb[13].mxu1 }
 0x6da   : > { %v1553_v16 = vpop.f32.mrb[14].mxu1 }
 0x6db   : > { %v3494_v17 = vpop.f32.mrb[15].mxu1 }
 0x6e0   : > { %v1646_v19 = vpop.f32.mrb[16].mxu1 }
 0x6e1   : > { %v1647_v20 = vadd.f32 %v5119_v18, %v1646_v19  ;;  %v3505_v21 = vpop.f32.mrb[17].mxu1 }
 0x6e2   : > { %v1649_v22 = vpop.f32.mrb[18].mxu1 }
 0x6e3   : > { %v3506_v23 = vpop.f32.mrb[19].mxu1  ;;  %v1652_v24 = vsel %vm1290_vm3, %v1647_v20, -inf }
 0x6e4   : > { %1653 = vmax.xlane.f32.xlu1 %v1652_v24 }
 0x6f5   : > { %1762 = vrot.lane.b32.xlu1 %v5098_v11, %s4358_s3 }
 0x6f9   : > { %1760 = vrot.lane.b32.xlu1 %v5098_v11, %s4359_s6 }
 0x771   : > { %v1654_v25 = vpop.xlane.xlu1 %1653 }
 0x772   : > { %v1655_v26 = vsub.f32 %v1647_v20, %v1654_v25 }
 0x774   : > { %v1656_v27 = vmul.f32 1.442695, %v1655_v26 }
 0x775   : > { %v1763_v35 = vpop.permute.xlu1 %1762 }
 0x776   : > { %3832 = vpow2.f32 %v1656_v27  ;;  %v1768_v37 = vsel %vm1290_vm3, %v1763_v35, 0  ;;  %v3814_v27 = vld [vmem:[%s5629_s13] sm:$0xff]   ;;  %v1940_v35 = vlaneseq }
 0x779   : > { %v1761_v38 = vpop.permute.xlu1 %1760 }
 0x780   : > { %v3833_v28 = vpop.eup %3832 }
 0x781   : > { %v1658_v29 = vsel %vm1290_vm3, %v3833_v28, 0.0 }
 0x782   : > { %1659 = vadd.xlane.f32.xlu0 %v1658_v29  ;;  %v1214_v29 = vld [vmem:[%s5044_s0 + $0x8] sm:$0xff] }
 0x798   : > { %1664 = vrot.lane.b32.xlu0 %v5098_v11, %s4360_s5 }
 0x80f   : > { %v1660_v30 = vpop.xlane.xlu0 %1659 }
 0x810   : > { %3834 = vrcp.f32 %v1660_v30 }
 0x813   : > { %v1665_v31 = vpop.permute.xlu0 %1664 }
 0x814   : > { %v1670_v32 = vsel %vm1354_vm4, %v1665_v31, 0  ;;  %v3816_v31 = vld [vmem:[%s5054_s20] sm:$0xff]  }
 0x815   : > { %3508 = vmatpush3.bf16.msra.mxu0 %v1670_v32  ;;  %v3817_v32 = vld [vmem:[%s5054_s20 + $0x8] sm:$0xff]   ;;  %s5632_s20 = scalar_lea.vmem [#allocation12], %s4997_s26 }
 0x816   : > { %3519 = vmatprep.subr.bf16.mxu0 %v4349_v2 }
 0x81a   : > { %v3835_v33 = vpop.eup %3834 }
 0x81b   : > { %v1662_v34 = vmul.f32 %v3835_v33, %v3833_v28  ;;  %v3815_v28 = vld [vmem:[%s5630_s10 + $0x8] sm:$0xff]  }
 0x81d   : > { %v1663_v36 = vpack.c.bf16 %v1662_v34, %v1662_v34 }
 0x81f   : > { %3510 = vmatmul.mubr.msk.bf16.vlgmr.msra.gmra.mrb[12].mxu0 %vm1290_vm3, %v1663_v36 }
 0x820   : > { %3520 = vmatpush3.bf16.xpose.msra.mxu0 %v1768_v37  ;;  %3521 = vmatprep.mubr.msk.bf16.mxu0 %vm4350_vm1, %v4349_v2  ;;  %v5222_v37 = vshrl.u32 %v1940_v35, 7 }
 0x821   : > { %3531 = vmatprep.subr.bf16.mxu0 %v4349_v2 }
 0x827   : > { %3522 = vmatmul.mubr.msk.bf16.vlgmr.msra.gmra.mrb[16].mxu0 %vm1290_vm3, %v1761_v38  ;;  %v1942_v38 = vsub.s32 0, %v5222_v37 }
 0x828   : > { %3533 = vmatprep.mubr.msk.bf16.mxu0 %vm4350_vm1, %v4349_v2  ;;  %3532 = vmatpush3.bf16.msra.mxu0 %v1875_v5 }
 0x829   : > { %3545 = vmatprep.subr.bf16.mxu0 %v4349_v2 }
 0x8f2   : > { %v1706_v41 = vpop.f32.mrb[12].mxu0 }
 0x8f3   : > { %v1712_v42 = vpack.c.bf16 %v1706_v41, %v1706_v41  ;;  %v3511_v43 = vpop.f32.mrb[13].mxu0  ;;  %v1943_v41 = vrot.slane %v5226_v39, %v1942_v38 }
 0x8f4   : > { %v1709_v44 = vpop.f32.mrb[14].mxu0 }
 0x8f5   : > { %v3512_v45 = vpop.f32.mrb[15].mxu0  ;;  %3516 = vmatmul.mubr.msk.bf16.vlgmr.msra.gmra.mrb[20].mxu1 %vm1290_vm3, %v1712_v42  ;;  %v1948_v44 = vrot.slane %v5229_v40, %v1942_v38  ;;  %v1191_v38 = vld [vmem:[%s5021_s15] sm:$0xf] }
 0x8f6   : > { %3527 = vmatprep.mubr.msk.bf16.mxu1 %vm4350_vm1, %v4349_v2 }
 0x8fa   : > { %v1804_v46 = vpop.f32.mrb[16].mxu0 }
 0x8fb   : > { %v1805_v47 = vadd.f32 %v5119_v18, %v1804_v46  ;;  %v3523_v48 = vpop.f32.mrb[17].mxu0 }
 0x8fc   : > { %v1807_v49 = vpop.f32.mrb[18].mxu0 }
 0x8fd   : > { %v3524_v50 = vpop.f32.mrb[19].mxu0  ;;  %v1810_v51 = vsel %vm1290_vm3, %v1805_v47, -inf }
 0x8fe   : > { %1811 = vmax.xlane.f32.xlu0 %v1810_v51 }
 0x914   : > { %1822 = vrot.lane.b32.xlu0 %v5098_v11, %s4361_s19 }
 0x98b   : > { %v1812_v52 = vpop.xlane.xlu0 %1811 }
 0x98c   : > { %v1813_v53 = vsub.f32 %v1805_v47, %v1812_v52 }
 0x98e   : > { %v1814_v54 = vmul.f32 1.442695, %v1813_v53 }
 0x98f   : > { %v1823_v55 = vpop.permute.xlu0 %1822 }
 0x990   : > { %3836 = vpow2.f32 %v1814_v54  ;;  %v1828_v56 = vsel %vm1354_vm4, %v1823_v55, 0 }
 0x991   : > { %3526 = vmatpush3.bf16.msra.mxu1 %v1828_v56 }
 0x992   : > { %3537 = vmatprep.subr.bf16.mxu1 %v4349_v2 }
 0x99a   : > { %v3837_v18 = vpop.eup %3836 }
 0x99b   : > { %v1816_v57 = vsel %vm1290_vm3, %v3837_v18, 0.0 }
 0x99c   : > { %1817 = vadd.xlane.f32.xlu1 %v1816_v57 }
 0x9c8   : > { %v1753_v58 = vpop.f32.mrb[20].mxu1 }
 0x9c9   : > { %v1759_v59 = vadd.f32 %v1753_v58, %v5160_v14  ;;  %v3517_v60 = vpop.f32.mrb[21].mxu1 }
 0x9ca   : > { %v1756_v11 = vpop.f32.mrb[22].mxu1 }
 0x9cb   : > { %v3518_v61 = vpop.f32.mrb[23].mxu1 }
 0xa29   : > { %v1818_v62 = vpop.xlane.xlu1 %1817 }
 0xa2a   : > { %3838 = vrcp.f32 %v1818_v62 }
 0xa34   : > { %v3839_v63 = vpop.eup %3838 }
 0xa35   : > { %v1820_v0 = vmul.f32 %v3839_v63, %v3837_v18  ;;  %v3349_v18 = vld [vmem:[%s5632_s20] ss:$0 sm:$0xff] }
 0xa37   : > { %v1821_v1 = vpack.c.bf16 %v1820_v0, %v1820_v0 }
 0xa39   : > { %3528 = vmatmul.mubr.msk.bf16.vlgmr.msra.gmra.mrb[24].mxu1 %vm1290_vm3, %v1821_v1  ;;  %v5266_v1 = vld [vmem:[%s5633_s9] ss:$0 sm:$0xff] }
 0xa3a   : > { %3541 = vmatprep.mubr.msk.bf16.mxu1 %vm4350_vm1, %v4349_v2  ;;  %3538 = vmatpush3.bf16.msra.mxu1 %v3816_v31 }
 0xa3b   : > { %3539 = vmatprep.subr.bf16.mxu1 %v4349_v2 }
 0xa3e   : > { %3540 = vmatpush3.bf16.msra.mxu1 %v3817_v32 }
 0xa3f   : > { %3553 = vmatprep.subr.bf16.mxu1 %v4349_v2 }
 0xb0c   : > { %v1864_v6 = vpop.f32.mrb[24].mxu1 }
 0xb0d   : > { %v1870_v7 = vpack.c.bf16 %v1864_v6, %v1864_v6  ;;  %v3529_v8 = vpop.f32.mrb[25].mxu1 }
 0xb0e   : > { %v1867_v9 = vpop.f32.mrb[26].mxu1 }
 0xb0f   : > { %v3530_v10 = vpop.f32.mrb[27].mxu1  ;;  %3534 = vmatmul.mubr.msk.bf16.vlgmr.msra.gmra.mrb[20].mxu0 %vm1290_vm3, %v1870_v7 }
 0xb10   : > { %3549 = vmatprep.mubr.msk.bf16.mxu0 %vm4350_vm1, %v4349_v2  ;;  %3546 = vmatpush3.bf16.msra.mxu0 %v3814_v27 }
 0xb11   : > { %3547 = vmatprep.subr.bf16.mxu0 %v4349_v2 }
 0xb14   : > { %3548 = vmatpush3.bf16.msra.mxu0 %v3815_v28 }
 0xb15   : > { %3559 = vmatprep.subr.bf16.mxu0 %v4349_v2 }
 0xbe2   : > { %v1911_v13 = vpop.f32.mrb[20].mxu0 }
 0xbe3   : > { %v1917_v14 = vadd.f32 %v1911_v13, %v1759_v59  ;;  %v3535_v15 = vpop.f32.mrb[21].mxu0 }
 0xbe4   : > { %v1914_v16 = vpop.f32.mrb[22].mxu0 }
 0xbe5   : > { %v1924_v17 = vadd.f32 %v3348_v12, %v1917_v14  ;;  %v3536_v19 = vpop.f32.mrb[23].mxu0 }
 0xbe7   : > { %v1925_v20 = vadd.f32 %v1924_v17, %v5085_v4  ;;  %v1213_v4 = vld [vmem:[%s5044_s0] sm:$0xff]  ;;  %s5631_s0 = scalar_lea.vmem [#allocation15], %s4997_s26 }
 0xbe8   : > { %v2012_v30 = vpack.c.bf16 %v1214_v29, %v1213_v4  ;;  %v3353_v48 = vld [vmem:[%s5631_s0] ss:$0 sm:$0xff] }
 0xbe9   : > { %v1926_v21 = vsel %vm1236_vm2, %v1925_v20, 0.0 }
 0xbea   : > { %1927 = vadd.xlane.f32.xlu1 %v1926_v21  ;;  %3550 = vmatmul.mubr.msk.bf16.vlgmr.msra.gmra.mrb[24].mxu0 %vm1236_vm2, %v2012_v30 }
 0xbeb   : > { %3561 = vmatprep.mubr.msk.bf16.mxu0 %vm4350_vm1, %v4349_v2 }
 0xc77   : > { %v1928_v22 = vpop.xlane.xlu1 %1927 }
 0xc78   : > { %v1930_v23 = vmul.f32 0.03125, %v1928_v22 }
 0xc7a   : > { %v1931_v24 = vsub.f32 %v1925_v20, %v1930_v23 }
 0xc7c   : > { %v1932_v25 = vmul.f32 %v1931_v24, %v1931_v24 }
 0xc7e   : > { %v1933_v26 = vsel %vm1236_vm2, %v1932_v25, 0.0 }
 0xc7f   : > { %1934 = vadd.xlane.f32.xlu1 %v1933_v26 }
 0xcbd   : > { %v2068_v49 = vpop.f32.mrb[24].mxu0 }
 0xcbe   : > { %v2069_v50 = vadd.f32 %v3353_v48, %v2068_v49  ;;  %v3551_v51 = vpop.f32.mrb[25].mxu0 }
 0xcbf   : > { %v2071_v52 = vpop.f32.mrb[26].mxu0 }
 0xcc0   : > { %v2072_v53 = vadd.f32 %v3353_v48, %v2071_v52  ;;  %v3552_v54 = vpop.f32.mrb[27].mxu0 }
 0xcc2   : > { %v5242_v55 = vpack.c.bf16 %v2072_v53, %v2069_v50 }
 0xcc4   : > { %2193 = vrot.lane.b32.xlu1 %v5242_v55, %s4351_s18  ;;  %v2087_v56 = vsel %vm1290_vm3, %v5242_v55, 0 }
 0xd0c   : > { %v1935_v33 = vpop.xlane.xlu1 %1934 }
 0xd0d   : > { %v1936_v34 = vmul.f32 0.03125, %v1935_v33 }
 0xd0f   : > { %v1937_v36 = vadd.f32 1e-05, %v1936_v34 }
 0xd11   : > { %3840 = vrsqrt.f32 %v1937_v36 }
 0xd1b   : > { %v3841_v42 = vpop.eup %3840 }
 0xd1c   : > { %v1939_v43 = vmul.f32 %v3841_v42, %v1931_v24  ;;  %v1192_v42 = vld [vmem:[%s5021_s15 + $0x4] sm:$0xf] }
 0xd1e   : > { %v1944_v45 = vmul.f32 %v1943_v41, %v1939_v43  ;;  %v2350_v41 = vsel %vm1354_vm4, %v1191_v38, 0  ;;  %v2304_v43 = vsel %vm1354_vm4, %v1192_v42, 0 }
 0xd20   : > { %v5233_v46 = vadd.f32 %v1948_v44, %v1944_v45 }
 0xd22   : > { %v1950_v47 = vpack.c.bf16 %v5233_v46, %v5233_v46 }
 0xd24   : > { %3542 = vmatmul.mubr.msk.bf16.vlgmr.msra.gmra.mrb[28].mxu1 %vm1236_vm2, %v1950_v47 }
 0xd25   : > { %3555 = vmatprep.mubr.msk.bf16.mxu1 %vm4350_vm1, %v4349_v2  ;;  %3554 = vmatpush3.bf16.xpose.msra.mxu1 %v2087_v56 }
 0xd26   : > { %3565 = vmatprep.subr.bf16.mxu1 %v4349_v2 }
 0xd36   : > { %v2194_v58 = vpop.permute.xlu1 %2193 }
 0xd37   : > { %v2199_v63 = vsel %vm1290_vm3, %v2194_v58, 0 }
 0xdf7   : > { %v2006_v57 = vpop.f32.mrb[28].mxu1 }
 0xdf8   : > { %v2007_v59 = vadd.f32 %v3349_v18, %v2006_v57  ;;  %v3543_v60 = vpop.f32.mrb[29].mxu1 }
 0xdf9   : > { %v2009_v11 = vpop.f32.mrb[30].mxu1 }
 0xdfa   : > { %v5251_v61 = vpack.c.bf16 %v2007_v59, %v2007_v59  ;;  %v3544_v62 = vpop.f32.mrb[31].mxu1 }
 0xdfc   : > { %2191 = vrot.lane.b32.xlu0 %v5251_v61, %s4351_s18  ;;  %3556 = vmatmul.mubr.msk.bf16.vlgmr.msra.gmra.mrb[32].mxu1 %vm1290_vm3, %v5251_v61 }
 0xdfd   : > { %3566 = vmatpush3.bf16.xpose.msra.mxu1 %v2199_v63  ;;  %3567 = vmatprep.mubr.msk.bf16.mxu1 %vm4350_vm1, %v4349_v2 }
 0xdfe   : > { %3577 = vmatprep.subr.bf16.mxu1 %v4349_v2 }
 0xe6e   : > { %v2192_v0 = vpop.permute.xlu0 %2191 }
 0xe6f   : > { %3568 = vmatmul.mubr.msk.bf16.vlgmr.msra.gmra.mrb[36].mxu1 %vm1290_vm3, %v2192_v0 }
 0xe70   : > { %3579 = vmatprep.mubr.msk.bf16.mxu1 %vm4350_vm1, %v4349_v2  ;;  %3578 = vmatpush3.bf16.msra.mxu1 %v2304_v43 }
 0xe71   : > { %3589 = vmatprep.subr.bf16.mxu1 %v4349_v2 }
 0xecf   : > { %v2123_v3 = vpop.f32.mrb[32].mxu1 }
 0xed0   : > { %v2124_v5 = vadd.f32 %v5266_v1, %v2123_v3  ;;  %v3557_v6 = vpop.f32.mrb[33].mxu1 }
 0xed1   : > { %v2126_v7 = vpop.f32.mrb[34].mxu1 }
 0xed2   : > { %v3558_v8 = vpop.f32.mrb[35].mxu1  ;;  %v2130_v9 = vsel %vm2129_vm5, %v2124_v5, -inf }
 0xed3   : > { %2131 = vmax.xlane.f32.xlu0 %v2130_v9 }
 0xf42   : > { %v2235_v10 = vpop.f32.mrb[36].mxu1 }
 0xf43   : > { %v2236_v12 = vadd.f32 %v5266_v1, %v2235_v10  ;;  %v3569_v13 = vpop.f32.mrb[37].mxu1 }
 0xf44   : > { %v2238_v14 = vpop.f32.mrb[38].mxu1 }
 0xf45   : > { %v3570_v15 = vpop.f32.mrb[39].mxu1  ;;  %v2241_v16 = vsel %vm2129_vm5, %v2236_v12, -inf }
 0xf46   : > { %2242 = vmax.xlane.f32.xlu1 %v2241_v16 }
 0xf57   : > { %2253 = vrot.lane.b32.xlu1 %v5242_v55, %s4353_s17 }
 0xf5b   : > { %2394 = vrot.lane.b32.xlu1 %v5242_v55, %s4356_s24 }
 0xf60   : > { %v2132_v17 = vpop.xlane.xlu0 %2131 }
 0xf61   : > { %v2133_v19 = vsub.f32 %v2124_v5, %v2132_v17 }
 0xf63   : > { %v2134_v20 = vmul.f32 1.442695, %v2133_v19 }
 0xf65   : > { %3842 = vpow2.f32 %v2134_v20 }
 0xf6f   : > { %v3843_v21 = vpop.eup %3842 }
 0xf70   : > { %v2136_v22 = vsel %vm2129_vm5, %v3843_v21, 0.0 }
 0xf71   : > { %2137 = vadd.xlane.f32.xlu0 %v2136_v22 }
 0xfd3   : > { %v2243_v23 = vpop.xlane.xlu1 %2242 }
 0xfd4   : > { %v2244_v24 = vsub.f32 %v2236_v12, %v2243_v23 }
 0xfd6   : > { %v2245_v25 = vmul.f32 1.442695, %v2244_v24 }
 0xfd7   : > { %v2254_v33 = vpop.permute.xlu1 %2253 }
 0xfd8   : > { %3844 = vpow2.f32 %v2245_v25 }
 0xfdb   : > { %v2395_v50 = vpop.permute.xlu1 %2394 }
 0xfdc   : > { %v2400_v56 = vsel %vm1290_vm3, %v2395_v50, 0 }
 0xfe2   : > { %v3845_v26 = vpop.eup %3844 }
 0xfe3   : > { %v2247_v27 = vsel %vm2129_vm5, %v3845_v26, 0.0 }
 0xfe4   : > { %2248 = vadd.xlane.f32.xlu0 %v2247_v27 }
 0xffa   : > { %2143 = vrot.lane.b32.xlu0 %v5242_v55, %s4352_s14 }
 0xffe   : > { %2392 = vrot.lane.b32.xlu0 %v5251_v61, %s4356_s24  ;;  %v2138_v28 = vpop.xlane.xlu0 %2137 }
 0xfff   : > { %3846 = vrcp.f32 %v2138_v28 }
0x1009   : > { %v3847_v4 = vpop.eup %3846 }
0x100a   : > { %v2140_v30 = vmul.f32 %v3847_v4, %v3843_v21 }
0x100c   : > { %v2141_v32 = vpack.c.bf16 %v2140_v30, %v2140_v30 }
0x1071   : > { %v2249_v29 = vpop.xlane.xlu0 %2248 }
0x1072   : > { %3848 = vrcp.f32 %v2249_v29 }
0x1075   : > { %v2144_v31 = vpop.permute.xlu0 %2143 }
0x1076   : > { %3560 = vmatpush3.bf16.msra.mxu0 %v2144_v31 }
0x1077   : > { %3571 = vmatprep.subr.bf16.mxu0 %v4349_v2 }
0x1079   : > { %3562 = vmatmul.mubr.msk.bf16.vlgmr.msra.gmra.mrb[28].mxu0 %vm2129_vm5, %v2141_v32  ;;  %v2393_v57 = vpop.permute.xlu0 %2392 }
0x107a   : > { %3572 = vmatpush3.bf16.msra.mxu0 %v2254_v33  ;;  %3573 = vmatprep.mubr.msk.bf16.mxu0 %vm4350_vm1, %v4349_v2 }
0x107b   : > { %3583 = vmatprep.subr.bf16.mxu0 %v4349_v2 }
0x107c   : > { %v3849_v34 = vpop.eup %3848 }
0x107d   : > { %v2251_v35 = vmul.f32 %v3849_v34, %v3845_v26  ;;  %v1193_v26 = vld [vmem:[%s5021_s15 + $0x8] sm:$0xf] }
0x107e   : > { %v2505_v27 = vsel %vm1354_vm4, %v1193_v26, 0 }
0x107f   : > { %v2252_v36 = vpack.c.bf16 %v2251_v35, %v2251_v35 }
0x1081   : > { %3574 = vmatmul.mubr.msk.bf16.vlgmr.msra.gmra.mrb[32].mxu0 %vm2129_vm5, %v2252_v36 }
0x1082   : > { %3585 = vmatprep.mubr.msk.bf16.mxu0 %vm4350_vm1, %v4349_v2  ;;  %3584 = vmatpush3.bf16.msra.mxu0 %v2350_v41 }
0x1083   : > { %3595 = vmatprep.subr.bf16.mxu0 %v4349_v2 }
0x114c   : > { %v2183_v44 = vpop.f32.mrb[28].mxu0 }
0x114d   : > { %v2189_v45 = vpack.c.bf16 %v2183_v44, %v2183_v44  ;;  %v3563_v47 = vpop.f32.mrb[29].mxu0 }
0x114e   : > { %v2186_v48 = vpop.f32.mrb[30].mxu0 }
0x114f   : > { %v3564_v49 = vpop.f32.mrb[31].mxu0  ;;  %3586 = vmatmul.mubr.msk.bf16.vlgmr.msra.gmra.mrb[36].mxu0 %vm1290_vm3, %v2189_v45 }
0x1150   : > { %3597 = vmatprep.mubr.msk.bf16.mxu0 %vm4350_vm1, %v4349_v2 }
0x1154   : > { %v2293_v51 = vpop.f32.mrb[32].mxu0 }
0x1155   : > { %v2299_v52 = vpack.c.bf16 %v2293_v51, %v2293_v51  ;;  %v3575_v53 = vpop.f32.mrb[33].mxu0 }
0x1156   : > { %v2296_v54 = vpop.f32.mrb[34].mxu0 }
0x1157   : > { %v3576_v18 = vpop.f32.mrb[35].mxu0  ;;  %3580 = vmatmul.mubr.msk.bf16.vlgmr.msra.gmra.mrb[40].mxu1 %vm1290_vm3, %v2299_v52 }
0x1158   : > { %3590 = vmatpush3.bf16.xpose.msra.mxu1 %v2400_v56  ;;  %3591 = vmatprep.mubr.msk.bf16.mxu1 %vm4350_vm1, %v4349_v2  ;;  %v1194_v56 = vld [vmem:[%s5021_s15 + $0xc] sm:$0xf]  ;;  %s5635_s15 = sld [smem:[#allocation64_spill]] }
0x1159   : > { %3601 = vmatprep.subr.bf16.mxu1 %v4349_v2  ;;  %v2661_v18 = vsel %vm1354_vm4, %v1194_v56, 0 }
0x115e   : > { %s5636_s27 = scalar_lea.vmem %s5635_s15, %s5031_s4  ;;  %s5638_s4 = sld [smem:[#allocation34_spill]] }
0x115f   : > { %3592 = vmatmul.mubr.msk.bf16.vlgmr.msra.gmra.mrb[44].mxu1 %vm1290_vm3, %v2393_v57 }
0x1160   : > { %3603 = vmatprep.mubr.msk.bf16.mxu1 %vm4350_vm1, %v4349_v2  ;;  %3602 = vmatpush3.bf16.msra.mxu1 %v2505_v27 }
0x1161   : > { %3613 = vmatprep.subr.bf16.mxu1 %v4349_v2 }
0x1164   : > { %p3381_p6 = scmp.ne.s32.totalorder %s5638_s4, 1 }
0x1165   : > { %vm2903_vm7 = vcmask (!%p3381_p6), 253952  }
0x1222   : > { %v2386_v58 = vpop.f32.mrb[36].mxu0 }
0x1223   : > { %v3587_v59 = vpop.f32.mrb[37].mxu0 }
0x1224   : > { %v2389_v60 = vpop.f32.mrb[38].mxu0 }
0x1225   : > { %v3588_v11 = vpop.f32.mrb[39].mxu0 }
0x122a   : > { %v2340_v62 = vpop.f32.mrb[40].mxu1 }
0x122b   : > { %v5307_v63 = vadd.f32 %v2386_v58, %v2340_v62  ;;  %v3581_v0 = vpop.f32.mrb[41].mxu1  ;;  %v3370_v62 = vld [vmem:[%s5634_s28] ss:$0 sm:$0xff] }
0x122c   : > { %v2343_v3 = vpop.f32.mrb[42].mxu1 }
0x122d   : > { %v3582_v5 = vpop.f32.mrb[43].mxu1 }
0x1232   : > { %v2436_v6 = vpop.f32.mrb[44].mxu1 }
0x1233   : > { %v2437_v7 = vadd.f32 %v5266_v1, %v2436_v6  ;;  %v3593_v8 = vpop.f32.mrb[45].mxu1 }
0x1234   : > { %v2439_v9 = vpop.f32.mrb[46].mxu1 }
0x1235   : > { %v3594_v10 = vpop.f32.mrb[47].mxu1  ;;  %v2442_v12 = vsel %vm2129_vm5, %v2437_v7, -inf }
0x1236   : > { %2443 = vmax.xlane.f32.xlu1 %v2442_v12 }
0x1247   : > { %2550 = vrot.lane.b32.xlu1 %v5242_v55, %s4359_s6 }
0x124b   : > { %2548 = vrot.lane.b32.xlu1 %v5251_v61, %s4359_s6 }
0x12c3   : > { %v2444_v13 = vpop.xlane.xlu1 %2443 }
0x12c4   : > { %v2445_v14 = vsub.f32 %v2437_v7, %v2444_v13 }
0x12c6   : > { %v2446_v15 = vmul.f32 1.442695, %v2445_v14 }
0x12c7   : > { %v2551_v22 = vpop.permute.xlu1 %2550 }
0x12c8   : > { %3850 = vpow2.f32 %v2446_v15  ;;  %v2556_v24 = vsel %vm1290_vm3, %v2551_v22, 0  ;;  %v2727_v22 = vsub.s32 1, %v5222_v37 }
0x12ca   : > { %v2733_v26 = vrot.slane %v5229_v40, %v2727_v22 }
0x12cb   : > { %v2549_v25 = vpop.permute.xlu1 %2548 }
0x12d2   : > { %v3851_v16 = vpop.eup %3850 }
0x12d3   : > { %v2448_v17 = vsel %vm2129_vm5, %v3851_v16, 0.0 }
0x12d4   : > { %2449 = vadd.xlane.f32.xlu0 %v2448_v17  ;;  %v3819_v17 = vld [vmem:[%s985_s12 + $0x8] sm:$0xff]  }
0x12ea   : > { %2454 = vrot.lane.b32.xlu0 %v5242_v55, %s4357_s8 }
0x1361   : > { %v2450_v19 = vpop.xlane.xlu0 %2449 }
0x1362   : > { %3852 = vrcp.f32 %v2450_v19  ;;  %v3821_v19 = vld [vmem:[%s5060_s30 + $0x8] sm:$0xff]  }
0x1365   : > { %v2455_v20 = vpop.permute.xlu0 %2454 }
0x1366   : > { %3596 = vmatpush3.bf16.msra.mxu0 %v2455_v20 }
0x1367   : > { %3607 = vmatprep.subr.bf16.mxu0 %v4349_v2 }
0x136c   : > { %v3853_v21 = vpop.eup %3852 }
0x136d   : > { %v2452_v61 = vmul.f32 %v3853_v21, %v3851_v16  ;;  %v3818_v16 = vld [vmem:[%s985_s12] sm:$0xff]  }
0x136f   : > { %v2453_v23 = vpack.c.bf16 %v2452_v61, %v2452_v61 }
0x1371   : > { %3598 = vmatmul.mubr.msk.bf16.vlgmr.msra.gmra.mrb[40].mxu0 %vm2129_vm5, %v2453_v23  ;;  %v2728_v23 = vrot.slane %v5226_v39, %v2727_v22 }
0x1372   : > { %3608 = vmatpush3.bf16.xpose.msra.mxu0 %v2556_v24  ;;  %3609 = vmatprep.mubr.msk.bf16.mxu0 %vm4350_vm1, %v4349_v2 }
0x1373   : > { %3619 = vmatprep.subr.bf16.mxu0 %v4349_v2 }
0x1379   : > { %3610 = vmatmul.mubr.msk.bf16.vlgmr.msra.gmra.mrb[44].mxu0 %vm1290_vm3, %v2549_v25 }
0x137a   : > { %3621 = vmatprep.mubr.msk.bf16.mxu0 %vm4350_vm1, %v4349_v2  ;;  %3620 = vmatpush3.bf16.msra.mxu0 %v2661_v18  ;;  %v2889_v18 = vsub.s32 2, %v5222_v37 }
0x137b   : > { %3633 = vmatprep.subr.bf16.mxu0 %v4349_v2 }
0x1444   : > { %v2494_v28 = vpop.f32.mrb[40].mxu0 }
0x1445   : > { %v2500_v4 = vpack.c.bf16 %v2494_v28, %v2494_v28  ;;  %v3599_v29 = vpop.f32.mrb[41].mxu0 }
0x1446   : > { %v2497_v30 = vpop.f32.mrb[42].mxu0  ;;  %v3822_v29 = vld [vmem:[%s5060_s30 + $0x10] sm:$0xff]  }
0x1447   : > { %v3600_v31 = vpop.f32.mrb[43].mxu0  ;;  %3604 = vmatmul.mubr.msk.bf16.vlgmr.msra.gmra.mrb[48].mxu1 %vm1290_vm3, %v2500_v4  ;;  %v3823_v30 = vld [vmem:[%s5060_s30 + $0x18] sm:$0xff]  }
0x1448   : > { %3615 = vmatprep.mubr.msk.bf16.mxu1 %vm4350_vm1, %v4349_v2  ;;  %v3371_v31 = vld [vmem:[%s5636_s27] ss:$0 sm:$0xff] }
0x144c   : > { %v2592_v32 = vpop.f32.mrb[44].mxu0 }
0x144d   : > { %v2593_v33 = vadd.f32 %v5266_v1, %v2592_v32  ;;  %v3611_v34 = vpop.f32.mrb[45].mxu0 }
0x144e   : > { %v2595_v35 = vpop.f32.mrb[46].mxu0 }
0x144f   : > { %v3612_v36 = vpop.f32.mrb[47].mxu0  ;;  %v2598_v38 = vsel %vm2129_vm5, %v2593_v33, -inf }
0x1450   : > { %2599 = vmax.xlane.f32.xlu0 %v2598_v38 }
0x1466   : > { %2610 = vrot.lane.b32.xlu0 %v5242_v55, %s4358_s3 }
0x14dd   : > { %v2600_v41 = vpop.xlane.xlu0 %2599 }
0x14de   : > { %v2601_v42 = vsub.f32 %v2593_v33, %v2600_v41 }
0x14e0   : > { %v2602_v43 = vmul.f32 1.442695, %v2601_v42 }
0x14e1   : > { %v2611_v44 = vpop.permute.xlu0 %2610 }
0x14e2   : > { %3854 = vpow2.f32 %v2602_v43  ;;  %3614 = vmatpush3.bf16.msra.mxu1 %v2611_v44 }
0x14e3   : > { %3625 = vmatprep.subr.bf16.mxu1 %v4349_v2 }
0x14ec   : > { %v3855_v45 = vpop.eup %3854 }
0x14ed   : > { %v2604_v1 = vsel %vm2129_vm5, %v3855_v45, 0.0 }
0x14ee   : > { %2605 = vadd.xlane.f32.xlu1 %v2604_v1 }
0x151a   : > { %v2541_v47 = vpop.f32.mrb[48].mxu1 }
0x151b   : > { %v2547_v48 = vadd.f32 %v2541_v47, %v5307_v63  ;;  %v3605_v49 = vpop.f32.mrb[49].mxu1 }
0x151c   : > { %v2544_v50 = vpop.f32.mrb[50].mxu1 }
0x151d   : > { %v3606_v51 = vpop.f32.mrb[51].mxu1 }
0x157b   : > { %v2606_v55 = vpop.xlane.xlu1 %2605 }
0x157c   : > { %3856 = vrcp.f32 %v2606_v55 }
0x1586   : > { %v3857_v52 = vpop.eup %3856 }
0x1587   : > { %v2608_v53 = vmul.f32 %v3857_v52, %v3855_v45 }
0x1589   : > { %v2609_v54 = vpack.c.bf16 %v2608_v53, %v2608_v53 }
0x158b   : > { %3616 = vmatmul.mubr.msk.bf16.vlgmr.msra.gmra.mrb[52].mxu1 %vm2129_vm5, %v2609_v54 }
0x158c   : > { %3629 = vmatprep.mubr.msk.bf16.mxu1 %vm4350_vm1, %v4349_v2  ;;  %3626 = vmatpush3.bf16.msra.mxu1 %v3818_v16 }
0x158d   : > { %3627 = vmatprep.subr.bf16.mxu1 %v4349_v2 }
0x1590   : > { %3628 = vmatpush3.bf16.msra.mxu1 %v3819_v17 }
0x165e   : > { %v2650_v57 = vpop.f32.mrb[52].mxu1 }
0x165f   : > { %v2656_v58 = vpack.c.bf16 %v2650_v57, %v2650_v57  ;;  %v3617_v59 = vpop.f32.mrb[53].mxu1  ;;  %v2890_v57 = vrot.slane %v5226_v39, %v2889_v18 }
0x1660   : > { %v2653_v60 = vpop.f32.mrb[54].mxu1  ;;  %v2895_v59 = vrot.slane %v5229_v40, %v2889_v18 }
0x1661   : > { %v3618_v11 = vpop.f32.mrb[55].mxu1  ;;  %3622 = vmatmul.mubr.msk.bf16.vlgmr.msra.gmra.mrb[48].mxu0 %vm1290_vm3, %v2656_v58 }
0x1662   : > { %3641 = vmatprep.mubr.msk.bf16.mxu0 %vm4350_vm1, %v4349_v2 }
0x1734   : > { %v2697_v63 = vpop.f32.mrb[48].mxu0 }
0x1735   : > { %v2703_v0 = vadd.f32 %v2697_v63, %v2547_v48  ;;  %v3623_v3 = vpop.f32.mrb[49].mxu0 }
0x1736   : > { %v2700_v5 = vpop.f32.mrb[50].mxu0 }
0x1737   : > { %v2710_v6 = vadd.f32 %v3370_v62, %v2703_v0  ;;  %v3624_v7 = vpop.f32.mrb[51].mxu0 }
0x1739   : > { %v2711_v8 = vadd.f32 %v2710_v6, %v5233_v46  ;;  %v3820_v46 = vld [vmem:[%s5060_s30] sm:$0xff]  }
0x173a   : > { %3634 = vmatpush3.bf16.msra.mxu0 %v3820_v46 }
0x173b   : > { %v2712_v9 = vsel %vm1236_vm2, %v2711_v8, 0.0  ;;  %3635 = vmatprep.subr.bf16.mxu0 %v4349_v2 }
0x173c   : > { %2713 = vadd.xlane.f32.xlu1 %v2712_v9 }
0x173e   : > { %3636 = vmatpush3.bf16.msra.mxu0 %v3821_v19 }
0x173f   : > { %3637 = vmatprep.subr.bf16.mxu0 %v4349_v2 }
0x1742   : > { %3638 = vmatpush3.bf16.msra.mxu0 %v3822_v29 }
0x1743   : > { %3639 = vmatprep.subr.bf16.mxu0 %v4349_v2  ;;  %v3375_v2 = vld [vmem:[%s1154_s11] ss:$0 sm:$0xff] }
0x1746   : > { %3640 = vmatpush3.bf16.msra.mxu0 %v3823_v30 }
0x17c9   : > { %v2714_v10 = vpop.xlane.xlu1 %2713 }
0x17ca   : > { %v2715_v12 = vmul.f32 0.03125, %v2714_v10 }
0x17cc   : > { %v2716_v13 = vsub.f32 %v2711_v8, %v2715_v12 }
0x17ce   : > { %v2717_v14 = vmul.f32 %v2716_v13, %v2716_v13 }
0x17d0   : > { %v2718_v15 = vsel %vm1236_vm2, %v2717_v14, 0.0 }
0x17d1   : > { %2719 = vadd.xlane.f32.xlu1 %v2718_v15 }
0x185e   : > { %v2720_v20 = vpop.xlane.xlu1 %2719 }
0x185f   : > { %v2721_v21 = vmul.f32 0.03125, %v2720_v20 }
0x1861   : > { %v2722_v61 = vadd.f32 1e-05, %v2721_v21 }
0x1863   : > { %3858 = vrsqrt.f32 %v2722_v61 }
0x186d   : > { %v3859_v24 = vpop.eup %3858 }
0x186e   : > { %v2724_v25 = vmul.f32 %v3859_v24, %v2716_v13 }
0x1870   : > { %v2729_v27 = vmul.f32 %v2728_v23, %v2724_v25 }
0x1872   : > { %v2734_v28 = vadd.f32 %v2733_v26, %v2729_v27 }
0x1874   : > { %v2735_v4 = vpack.c.bf16 %v2734_v28, %v2734_v28 }
0x1876   : > { %3630 = vmatmul.mubr.msk.bf16.vlgmr.msra.gmra.mrb[56].mxu1 %vm1236_vm2, %v2735_v4 }
0x1949   : > { %v2791_v32 = vpop.f32.mrb[56].mxu1 }
0x194a   : > { %v2792_v33 = vadd.f32 %v3371_v31, %v2791_v32  ;;  %v3631_v34 = vpop.f32.mrb[57].mxu1 }
0x194b   : > { %v2794_v35 = vpop.f32.mrb[58].mxu1 }
0x194c   : > { %v2797_v36 = vmax.f32 %v2792_v33, 0.0  ;;  %v3632_v38 = vpop.f32.mrb[59].mxu1 }
0x194e   : > { %v2798_v41 = vpack.c.bf16 %v2797_v36, %v2797_v36 }
0x1950   : > { %3642 = vmatmul.mubr.msk.bf16.vlgmr.msra.gmra.mrb[52].mxu0 %vm2829_vm6, %v2798_v41 }
0x1a23   : > { %v2867_v42 = vpop.f32.mrb[52].mxu0 }
0x1a24   : > { %v2868_v43 = vadd.f32 %v3375_v2, %v2867_v42  ;;  %v3643_v44 = vpop.f32.mrb[53].mxu0 }
0x1a25   : > { %v2870_v45 = vpop.f32.mrb[54].mxu0 }
0x1a26   : > { %v3644_v1 = vpop.f32.mrb[55].mxu0  ;;  %v2873_v47 = vadd.f32 %v2868_v43, %v2734_v28 }
0x1a28   : > { %v2874_v48 = vsel %vm1236_vm2, %v2873_v47, 0.0 }
0x1a29   : > { %2875 = vadd.xlane.f32.xlu1 %v2874_v48 }
0x1ab6   : > { %v2876_v49 = vpop.xlane.xlu1 %2875 }
0x1ab7   : > { %v2877_v50 = vmul.f32 0.03125, %v2876_v49 }
0x1ab9   : > { %v2878_v51 = vsub.f32 %v2873_v47, %v2877_v50 }
0x1abb   : > { %v2879_v55 = vmul.f32 %v2878_v51, %v2878_v51 }
0x1abd   : > { %v2880_v52 = vsel %vm1236_vm2, %v2879_v55, 0.0 }
0x1abe   : > { %2881 = vadd.xlane.f32.xlu1 %v2880_v52 }
0x1b4b   : > { %v2882_v53 = vpop.xlane.xlu1 %2881 }
0x1b4c   : > { %v2883_v54 = vmul.f32 0.03125, %v2882_v53 }
0x1b4e   : > { %v2884_v56 = vadd.f32 1e-05, %v2883_v54 }
0x1b50   : > { %3860 = vrsqrt.f32 %v2884_v56 }
0x1b5a   : > { %v3861_v58 = vpop.eup %3860 }
0x1b5b   : > { %v2886_v60 = vmul.f32 %v3861_v58, %v2878_v51  ;;  %2901 = sbr.rel (%p3381_p6) target bundleno = 7018 (0x1b6a), region = 152 }
0x1b5d   : > { %v2891_v11 = vmul.f32 %v2890_v57, %v2886_v60 }
0x1b5f   : > { %v2896_v62 = vadd.f32 %v2895_v59, %v2891_v11 }
0x1b61   : > { %2897 = vst.msk [vmem:[#allocation2] sm:$0xff] %vm1236_vm2, %v2896_v62 }
0x1b68   : > { %v2902_v63 = vld [vmem:[#allocation2] sm:$0x1] }
0x1b69   : > { %2904 = vst.msk [vmem:[%s1122_s25] sm:$0x1] %vm2903_vm7, %v2902_v63 }
0x1b6a PF: > { %s5639_s30 = sld [smem:[#allocation35_spill]]  ;;  %s5640_s11 = sld [smem:[#allocation42_spill]] }
0x1b6b   : > { %s5641_s23 = sld [smem:[#allocation69_spill]]  ;;  %s2918_s22 = sshll.u32 %s1122_s25, 4  ;;  %s2919_s22 = int_to_ptr.vmem [resolvable:$true] %s2918_s22 }
0x1b6c   : > { %s2906_s24 = scalar_lea.sflag [#allocation5], %s4980_s29  ;;  %s4192_s3 = scalar_lea.vmem %s2919_s22, 16 }
0x1b6d   : > { %p4193_p7 = scmp.ne.s32.totalorder %s2919_s22, %s4192_s3  ;;  %s4362_s6 = smov [#allocation21]  }
0x1b6e   : > { %s4196_s5 = sshll.u32 %s4362_s6, 4  ;;  %s4197_s5 = int_to_ptr.vmem [resolvable:$false] %s4196_s5 }
0x1b6f   : > { %s4198_s19 = scalar_lea.vmem %s4197_s5, 32  ;;  %p4199_p5 = scmp.lt.s32.totalorder %s2919_s22, %s4197_s5 }
0x1b70   : > { %s3382_s18 = sshll.u32 %s5639_s30, 4  ;;  %p5643_p3 = scmp.ne.s32.totalorder %s5640_s11, 0 }
0x1b71   : > { %s5642_s8 = smov %s5641_s23  ;;  %s5393_s1 = scalar_lea.hbm %s5641_s23, %s3382_s18 }
0x1b72   : > { %p4194_p11 = pnand %p4193_p7, %p5643_p3  ;;  %p4200_p9 = scmp.lt.s32.totalorder %s4198_s19, %s4192_s3 }
0x1b74   : > { %p4195_p13 = pneg %p4194_p11  ;;  %p4201_p0 = por %p4200_p9, %p4199_p5 }
0x1b76   : > { %p4202_p8 = pnand %p4201_p0, %p4195_p13 }
0x1b78   : > { %4205 = shalt.err (!%p4202_p8)
}
0x1b79   : > { %s4206_s25 = scalar_lea.hbm %s5393_s1, 16  ;;  %s4210_s13 = scalar_lea.hbm %s5642_s8, 32 }
0x1b7a   : > { %p4207_p1 = scmp.ne.s32.totalorder %s5393_s1, %s4206_s25  ;;  %p4211_p4 = scmp.lt.u32.totalorder %s5393_s1, %s5642_s8 }
0x1b7b   : > { %p4212_p2 = scmp.lt.u32.totalorder %s4210_s13, %s4206_s25  ;;  %p4214_p7 = scmp.lt.u32.totalorder %s4206_s25, %s5393_s1 }
0x1b7c   : > { %p4208_p10 = pnand %p4207_p1, %p5643_p3 }
0x1b7d   : > { %p4213_p6 = por %p4212_p2, %p4211_p4 }
0x1b7e   : > { %p4209_p12 = pneg %p4208_p10 }
0x1b7f   : > { %p4215_p11 = por %p4214_p7, %p4213_p6 }
0x1b81   : > { %p4216_p13 = pnand %p4215_p11, %p4209_p12 }
0x1b83   : > { %4219 = shalt.err (!%p4216_p13)
}
0x1b84   : > { %3667 = dma.vmem_to_hbm [thread:$0]  (%p5643_p3), %s2919_s22, 16, %s5393_s1, %s2906_s24  }
0x1b85 PF: > { %s5644_s20 = sld [smem:[#allocation38_spill]]  ;;  %s5645_s9 = sld [smem:[#allocation31_spill]] }
0x1b86   : > { %s5646_s28 = sld [smem:[#allocation43_spill]] }
0x1b8b   : > { %p3708_p5 = scmp.ge.s32.totalorder %s5644_s20, 2  ;;  %s2930_s26 = sand.u32 1, %s5645_s9  }
0x1b8c   : > { %p5647_p9 = scmp.ne.s32.totalorder %s5646_s28, 0  ;;  %s2931_s2 = scalar_lea.sflag [#allocation5], %s2930_s26 }
0x1b8e   : > { %p3704_p0 = pnand %p3708_p5, %p5647_p9 }
0x1b90   : > { %4289 = dma.done.wait (!%p3704_p0), %s2931_s2, 16  }
0x1b91   : > { %4291 = vsyncadd (!%p3704_p0), %s2931_s2, 4294967280  ;;  %s51_s4 = sadd.s32 1, %s5644_s20   ;;  %s5648_s1 = sld [smem:[#allocation29_spill]] }
0x1b92   : > { %p48_p8 = scmp.ge.s32.totalorder %s51_s4, 6   ;;  %s5649_s22 = sld [smem:[#allocation30_spill]] }
0x1b93   : > { %s5650_s23 = sld [smem:[#allocation47_spill]]  ;;  %s5651_s24 = sld [smem:[#allocation32_spill]] }
0x1b94   : > { %s5652_s2 = sld [smem:[#allocation33_spill]]  ;;  %s5653_s25 = sld [smem:[#allocation48_spill]] }
0x1b95   : > { %s5654_s3 = sld [smem:[#allocation36_spill]]  ;;  %s5655_s26 = sld [smem:[#allocation37_spill]] }
0x1b96   : > { %s5656_s27 = sld [smem:[#allocation45_spill]]  ;;  %s5657_s28 = sld [smem:[#allocation46_spill]] }
0x1b97   :  { %50 = sbr.rel (!%p48_p8) target bundleno = 41 (0x29), region = 300 }
0x1b9e   :  { %2935 = vsyncpa [#allocation4], 1 }
0x1b9f   :  { %2937 = vsyncpa [#allocation4 + $0x1], 1 }
0x1ba0   :  { %2938 = vsyncpa [#allocation7], 1 }
0x1ba1   :  { %2940 = vsyncpa [#allocation7 + $0x1], 1 }
0x1ba2   :  { %2941 = vsyncpa [#allocation10], 1 }
0x1ba3   :  { %2943 = vsyncpa [#allocation10 + $0x1], 1 }
0x1ba4   :  { %2944 = vsyncpa [#allocation13], 1 }
0x1ba5   :  { %2946 = vsyncpa [#allocation13 + $0x1], 1 }
0x1ba6   :  { %2947 = vsyncpa [#allocation16], 1 }
0x1ba7   :  { %2949 = vsyncpa [#allocation16 + $0x1], 1 }
0x1ba8   :  { %2950 = vsyncpa [#allocation19], 1 }
0x1ba9   :  { %2952 = vsyncpa [#allocation19 + $0x1], 1 }
0x1baa   :  { %2953 = vsyncpa [#allocation5], 1 }
0x1bab   :  { %2955 = vsyncpa [#allocation5 + $0x1], 1 }

</bundles_post_ra>
